<compile_context>
chip_gen: v7x
topology: tpu7x:2x2x1
jax: 0.10.0
libtpu: 0.0.40
codegen_flags: <defaults>
</compile_context>

<pallas_src>
import functools
import math

import jax
import jax.numpy as jnp
import numpy as np
from jax.experimental import pallas as pl
from jax.experimental.pallas import tpu as pltpu

LATENT_DIMS = 16
BATCH = 2
BN_EPS = 1e-5
LANE = 128


# ----------------------------- fused Pallas kernel -----------------------------

def _decoder_kernel(
    x_ref, w1_ref, b1_ref, w2_ref, b2_ref, e_ref,
    g1_ref, a1_ref, cb1_ref, bn_g_ref, bn_b_ref, grp_ref, grp_t_ref,
    g2_ref, a2_ref, cb2_ref,
    g3_ref, a3_ref, cb3_ref,
    g4_ref, a4_ref, cb4_ref,
    out_ref,
):
    def mm(a, b):
        return jnp.dot(a, b, preferred_element_type=jnp.float32)

    # ---- decoder_lin: Linear + ReLU, Linear + ReLU (lin2 columns pre-permuted) ----
    h = jnp.maximum(mm(x_ref[...], w1_ref[...]) + b1_ref[...], 0.0)      # (N, 128)
    h = jnp.maximum(mm(h, w2_ref[...]) + b2_ref[...], 0.0)               # (N, 512)

    # ---- Unflatten: rows (h, n), lanes (w, c)  ->  X (H0*N, W0*C0) = (8, 128) ----
    n_h0 = e_ref.shape[0]                       # 4
    fw = w2_ref.shape[1] // n_h0                # 128 (128-aligned lane slices)
    x = mm(e_ref[0], h[:, 0:fw])
    for hh in range(1, n_h0):
        x = x + mm(e_ref[hh], h[:, hh * fw:(hh + 1) * fw])

    def conv_t(x, g_ref, a_ref, b_ref):
        # out (Ho*N, Wo*Co) = sum_kh  A'_kh @ (x @ G_kh)  + bias_row
        acc = mm(a_ref[0], mm(x, g_ref[0]))
        for kh in range(1, g_ref.shape[0]):
            acc = acc + mm(a_ref[kh], mm(x, g_ref[kh]))
        return acc + b_ref[...]

    def hardtanh(v):
        return jnp.clip(v, -1.0, 1.0)

    # ---- ConvT(32->16, 5, s2) + BatchNorm2d(16) (batch stats) + Hardtanh ----
    x = conv_t(x, g1_ref, a1_ref, cb1_ref)                                # (22, 176)
    rows, feat = x.shape
    n_ch = grp_ref.shape[1]                                               # 16
    inv_count = 1.0 / float(rows * (feat // n_ch))                        # 1 / (N*Ho*Wo)
    s1 = mm(jnp.sum(x, axis=0, keepdims=True), grp_ref[...])              # (1, C)
    s2 = mm(jnp.sum(x * x, axis=0, keepdims=True), grp_ref[...])          # (1, C)
    mean = s1 * inv_count
    var = s2 * inv_count - mean * mean                                    # biased, like torch
    scale = bn_g_ref[...] * jax.lax.rsqrt(var + BN_EPS)
    shift = bn_b_ref[...] - mean * scale
    x = x * mm(scale, grp_t_ref[...]) + mm(shift, grp_t_ref[...])
    x = hardtanh(x)

    # ---- ConvT(16->8, 4, s2) + Hardtanh ----
    x = hardtanh(conv_t(x, g2_ref, a2_ref, cb2_ref))                      # (48, 192)
    # ---- ConvT(8->4, 2, s2) ----
    x = conv_t(x, g3_ref, a3_ref, cb3_ref)                                # (96, 192)
    # ---- ConvT(4->2, 3, s1, p1) + Tanh (folded weight lane-padded to 128) ----
    x = conv_t(x, g4_ref, a4_ref, cb4_ref)                                # (96, 128)
    out_ref[...] = jnp.tanh(x)                                            # unmasked lane-dense store


# ----------------------------- parameter preparation -----------------------------

def prepare_decoder_params(params, batch):
    """Fold unflatten / scatter / broadcast plumbing into constant operands (host side, once)."""
    p = {k: np.asarray(v, np.float32) for k, v in params.items()}
    n = int(batch)

    def scatter_1d(size_in, k, stride, pad):
        size_out = (size_in - 1) * stride - 2 * pad + k
        s = np.zeros((k, size_out, size_in), np.float32)
        for kk in range(k):
            for i in range(size_in):
                o = i * stride + kk - pad
                if 0 <= o < size_out:
                    s[kk, o, i] = 1.0
        return s, size_out

    def fold_conv_t(w, b, hi, wi, stride, pad):
        # w: (Cin, Cout, kH, kW) -- torch ConvTranspose2d layout
        ci, co, kh, kw = w.shape
        a1d, ho = scatter_1d(hi, kh, stride, pad)        # (kH, Ho, Hi)
        b1d, wo = scatter_1d(wi, kw, stride, pad)        # (kW, Wo, Wi)
        # G[kh, iw*Ci+ci, ow*Co+co] = sum_kw [ow == iw*s + kw - p] * w[ci, co, kh, kw]
        g = np.einsum("qoi,cdhq->hicod", b1d, w).reshape(kh, wi * ci, wo * co)
        a = np.stack([np.kron(a1d[i], np.eye(n, dtype=np.float32)) for i in range(kh)])
        bias_row = np.tile(b, wo).reshape(1, wo * co)
        return g, a, bias_row, ho, wo

    # Unflatten (32, 4, 4): fold (c, h, w) -> (h, w, c) reorder into lin2 columns.
    c0, h0, w0 = 32, 4, 4
    perm = np.empty(c0 * h0 * w0, np.int64)
    for hh in range(h0):
        for ww in range(w0):
            for cc in range(c0):
                perm[hh * (w0 * c0) + ww * c0 + cc] = cc * (h0 * w0) + hh * w0 + ww
    w2p = p["lin2_w"][:, perm]
    b2p = p["lin2_b"][perm].reshape(1, -1)

    # Row regrouping (N, H0*W0*C0) -> (H0*N, W0*C0): selection matrices E_h.
    e = np.zeros((h0, h0 * n, n), np.float32)
    for hh in range(h0):
        for nn in range(n):
            e[hh, hh * n + nn, nn] = 1.0

    g1, a1, cb1, ho1, wo1 = fold_conv_t(p["conv1_w"], p["conv1_b"], h0, w0, 2, 0)   # 4 -> 11
    g2, a2, cb2, ho2, wo2 = fold_conv_t(p["conv2_w"], p["conv2_b"], ho1, wo1, 2, 0)  # 11 -> 24
    g3, a3, cb3, ho3, wo3 = fold_conv_t(p["conv3_w"], p["conv3_b"], ho2, wo2, 2, 0)  # 24 -> 48
    g4, a4, cb4, ho4, wo4 = fold_conv_t(p["conv4_w"], p["conv4_b"], ho3, wo3, 1, 1)  # 48 -> 48

    c_bn = p["conv1_w"].shape[1]                                   # 16
    grp = np.tile(np.eye(c_bn, dtype=np.float32), (wo1, 1))        # (Wo*Co, Co)

    # Lane-pad the final folded conv so the kernel's only output store is a full
    # 128-lane (unmasked) store; padded lanes compute tanh(0)=0 and are sliced off.
    co4 = int(p["conv4_w"].shape[1])
    out_cols = wo4 * co4                                           # 96
    pad_cols = (-out_cols) % LANE                                  # 32
    if pad_cols:
        g4 = np.pad(g4, ((0, 0), (0, 0), (0, pad_cols)))
        cb4 = np.pad(cb4, ((0, 0), (0, pad_cols)))

    prep = dict(
        w1=p["lin1_w"], b1=p["lin1_b"].reshape(1, -1), w2=w2p, b2=b2p, e=e,
        g1=g1, a1=a1, cb1=cb1,
        bn_g=p["bn_gamma"].reshape(1, -1), bn_b=p["bn_beta"].reshape(1, -1),
        grp=grp, grp_t=grp.T.copy(),
        g2=g2, a2=a2, cb2=cb2, g3=g3, a3=a3, cb3=cb3, g4=g4, a4=a4, cb4=cb4,
    )
    meta = dict(ho=int(ho4), wo=int(wo4), co=co4, out_cols_padded=int(out_cols + pad_cols))
    return {k: jnp.asarray(v) for k, v in prep.items()}, meta


# ----------------------------- forward wrapper -----------------------------

@functools.partial(jax.jit, static_argnames=("ho", "wo", "co", "out_cols_padded"))
def decoder_forward(prep, x, *, ho, wo, co, out_cols_padded):
    n = x.shape[0]
    args = (
        x,
        prep["w1"], prep["b1"], prep["w2"], prep["b2"], prep["e"],
        prep["g1"], prep["a1"], prep["cb1"],
        prep["bn_g"], prep["bn_b"], prep["grp"], prep["grp_t"],
        prep["g2"], prep["a2"], prep["cb2"],
        prep["g3"], prep["a3"], prep["cb3"],
        prep["g4"], prep["a4"], prep["cb4"],
    )
    vmem = pl.BlockSpec(memory_space=pltpu.MemorySpace.VMEM)
    y2d = pl.pallas_call(
        _decoder_kernel,
        out_shape=jax.ShapeDtypeStruct((ho * n, out_cols_padded), jnp.float32),
        in_specs=[vmem] * len(args),
        out_specs=vmem,
        compiler_params=pltpu.CompilerParams(vmem_limit_bytes=64 << 20),
    )(*args)
    # rows = (oh, n), lanes = (ow, co)  ->  NCHW (n, co, oh, ow), as the torch module returns.
    y2d = y2d[:, : wo * co]
    return jnp.transpose(y2d.reshape(ho, n, wo, co), (1, 3, 0, 2))


# ----------------------------- init + NumPy reference -----------------------------

def init_params(key, latent_dims):
    ks = jax.random.split(key, 6)

    def uniform(k, shape, bound):
        return jax.random.uniform(k, shape, jnp.float32, -bound, bound)

    def linear(k, fin, fout):
        kw, kb = jax.random.split(k)
        bound = 1.0 / math.sqrt(fin)
        return uniform(kw, (fin, fout), bound), uniform(kb, (fout,), bound)

    def conv_t(k, cin, cout, ksz):
        kw, kb = jax.random.split(k)
        bound = 1.0 / math.sqrt(cin * ksz * ksz)
        return uniform(kw, (cin, cout, ksz, ksz), bound), uniform(kb, (cout,), bound)

    lin1_w, lin1_b = linear(ks[0], latent_dims, 128)
    lin2_w, lin2_b = linear(ks[1], 128, 4 * 4 * 32)
    conv1_w, conv1_b = conv_t(ks[2], 32, 16, 5)
    conv2_w, conv2_b = conv_t(ks[3], 16, 8, 4)
    conv3_w, conv3_b = conv_t(ks[4], 8, 4, 2)
    conv4_w, conv4_b = conv_t(ks[5], 4, 2, 3)
    return dict(
        lin1_w=lin1_w, lin1_b=lin1_b, lin2_w=lin2_w, lin2_b=lin2_b,
        conv1_w=conv1_w, conv1_b=conv1_b, conv2_w=conv2_w, conv2_b=conv2_b,
        conv3_w=conv3_w, conv3_b=conv3_b, conv4_w=conv4_w, conv4_b=conv4_b,
        bn_gamma=jnp.ones((16,), jnp.float32), bn_beta=jnp.zeros((16,), jnp.float32),
    )


def _conv_t_ref(x, w, b, stride, pad):
    n, ci, hi, wi = x.shape
    _, co, kh, kw = w.shape
    ho = (hi - 1) * stride - 2 * pad + kh
    wo = (wi - 1) * stride - 2 * pad + kw
    full = np.zeros((n, co, ho + 2 * pad, wo + 2 * pad), np.float64)
    for ikh in range(kh):
        for ikw in range(kw):
            contrib = np.einsum("nchw,cd->ndhw", x, w[:, :, ikh, ikw])
            full[:, :, ikh:ikh + stride * (hi - 1) + 1:stride,
                 ikw:ikw + stride * (wi - 1) + 1:stride] += contrib
    return full[:, :, pad:pad + ho, pad:pad + wo] + b.reshape(1, co, 1, 1)


def decoder_reference(params, x):
    p = {k: np.asarray(v, np.float64) for k, v in params.items()}
    x = np.asarray(x, np.float64)
    h = np.maximum(x @ p["lin1_w"] + p["lin1_b"], 0.0)
    h = np.maximum(h @ p["lin2_w"] + p["lin2_b"], 0.0)
    y = h.reshape(x.shape[0], 32, 4, 4)
    y = _conv_t_ref(y, p["conv1_w"], p["conv1_b"], 2, 0)
    mean = y.mean(axis=(0, 2, 3), keepdims=True)
    var = y.var(axis=(0, 2, 3), keepdims=True)                    # biased, training-mode BN
    y = (y - mean) / np.sqrt(var + BN_EPS)
    y = y * p["bn_gamma"].reshape(1, -1, 1, 1) + p["bn_beta"].reshape(1, -1, 1, 1)
    y = np.clip(y, -1.0, 1.0)
    y = np.clip(_conv_t_ref(y, p["conv2_w"], p["conv2_b"], 2, 0), -1.0, 1.0)
    y = _conv_t_ref(y, p["conv3_w"], p["conv3_b"], 2, 0)
    y = _conv_t_ref(y, p["conv4_w"], p["conv4_b"], 1, 1)
    return np.tanh(y)


if __name__ == "__main__":
    key = jax.random.PRNGKey(0)
    k_param, k_x = jax.random.split(key)

    params = init_params(k_param, LATENT_DIMS)
    x = jax.random.normal(k_x, (BATCH, LATENT_DIMS), jnp.float32)   # latent input

    prep, meta = prepare_decoder_params(params, BATCH)
    fwd = functools.partial(
        decoder_forward,
        ho=meta["ho"], wo=meta["wo"], co=meta["co"],
        out_cols_padded=meta["out_cols_padded"],
    )

    y = fwd(prep, x)
    jax.block_until_ready(y)

    assert y.shape == (BATCH, 2, 48, 48)
    assert y.dtype == jnp.float32
    assert bool(jnp.isfinite(y).all())

    # Light correctness check against a NumPy reference of the torch module.
    y_ref = decoder_reference(params, np.asarray(x))
    err = float(np.max(np.abs(np.asarray(y, np.float64) - y_ref)))
    assert err < 0.05, f"mismatch vs reference: max abs err {err}"

    print("KERNEL_OK")
</pallas_src>

<mosaic_0001>
module attributes {stable_mosaic.version = 11 : i64} {
  func.func @_decoder_kernel(%arg0: memref<2x16xf32, #tpu.memory_space<vmem>>, %arg1: memref<16x128xf32, #tpu.memory_space<vmem>>, %arg2: memref<1x128xf32, #tpu.memory_space<vmem>>, %arg3: memref<128x512xf32, #tpu.memory_space<vmem>>, %arg4: memref<1x512xf32, #tpu.memory_space<vmem>>, %arg5: memref<4x8x2xf32, #tpu.memory_space<vmem>>, %arg6: memref<5x128x176xf32, #tpu.memory_space<vmem>>, %arg7: memref<5x22x8xf32, #tpu.memory_space<vmem>>, %arg8: memref<1x176xf32, #tpu.memory_space<vmem>>, %arg9: memref<1x16xf32, #tpu.memory_space<vmem>>, %arg10: memref<1x16xf32, #tpu.memory_space<vmem>>, %arg11: memref<176x16xf32, #tpu.memory_space<vmem>>, %arg12: memref<16x176xf32, #tpu.memory_space<vmem>>, %arg13: memref<4x176x192xf32, #tpu.memory_space<vmem>>, %arg14: memref<4x48x22xf32, #tpu.memory_space<vmem>>, %arg15: memref<1x192xf32, #tpu.memory_space<vmem>>, %arg16: memref<2x192x192xf32, #tpu.memory_space<vmem>>, %arg17: memref<2x96x48xf32, #tpu.memory_space<vmem>>, %arg18: memref<1x192xf32, #tpu.memory_space<vmem>>, %arg19: memref<3x192x128xf32, #tpu.memory_space<vmem>>, %arg20: memref<3x96x96xf32, #tpu.memory_space<vmem>>, %arg21: memref<1x128xf32, #tpu.memory_space<vmem>>, %arg22: memref<96x128xf32, #tpu.memory_space<vmem>>) attributes {dimension_semantics = [], scalar_prefetch = 0 : i64, scratch_operands = 0 : i64, tpu.core_type = #tpu.core_type<tc>} {
    %c0 = arith.constant 0 : index
    %c0_0 = arith.constant 0 : index
    %0 = vector.load %arg0[%c0, %c0_0] : memref<2x16xf32, #tpu.memory_space<vmem>>, vector<2x16xf32>
    %c0_1 = arith.constant 0 : index
    %c0_2 = arith.constant 0 : index
    %1 = vector.load %arg1[%c0_1, %c0_2] : memref<16x128xf32, #tpu.memory_space<vmem>>, vector<16x128xf32>
    %cst = arith.constant dense<0.000000e+00> : vector<2x128xf32>
    %2 = tpu.matmul %0, %1, %cst {dimension_numbers = #tpu.dot_dimension_numbers<[1], [0], [0], [1], [0, 0, 1, 1], [], []>} : vector<2x16xf32>, vector<16x128xf32>, vector<2x128xf32> -> vector<2x128xf32>
    %c0_3 = arith.constant 0 : index
    %c0_4 = arith.constant 0 : index
    %3 = vector.load %arg2[%c0_3, %c0_4] : memref<1x128xf32, #tpu.memory_space<vmem>>, vector<1x128xf32>
    %4 = vector.broadcast %3 : vector<1x128xf32> to vector<2x128xf32>
    %5 = arith.addf %2, %4 : vector<2x128xf32>
    %cst_5 = arith.constant 0.000000e+00 : f32
    %6 = vector.broadcast %cst_5 : f32 to vector<2x128xf32>
    %7 = arith.maximumf %5, %6 : vector<2x128xf32>
    %c0_6 = arith.constant 0 : index
    %c0_7 = arith.constant 0 : index
    %8 = vector.load %arg3[%c0_6, %c0_7] : memref<128x512xf32, #tpu.memory_space<vmem>>, vector<128x512xf32>
    %cst_8 = arith.constant dense<0.000000e+00> : vector<2x512xf32>
    %9 = tpu.matmul %7, %8, %cst_8 {dimension_numbers = #tpu.dot_dimension_numbers<[1], [0], [0], [1], [0, 0, 1, 1], [], []>} : vector<2x128xf32>, vector<128x512xf32>, vector<2x512xf32> -> vector<2x512xf32>
    %c0_9 = arith.constant 0 : index
    %c0_10 = arith.constant 0 : index
    %10 = vector.load %arg4[%c0_9, %c0_10] : memref<1x512xf32, #tpu.memory_space<vmem>>, vector<1x512xf32>
    %11 = vector.broadcast %10 : vector<1x512xf32> to vector<2x512xf32>
    %12 = arith.addf %9, %11 : vector<2x512xf32>
    %cst_11 = arith.constant 0.000000e+00 : f32
    %13 = vector.broadcast %cst_11 : f32 to vector<2x512xf32>
    %14 = arith.maximumf %12, %13 : vector<2x512xf32>
    %c0_12 = arith.constant 0 : index
    %c0_13 = arith.constant 0 : index
    %c0_14 = arith.constant 0 : index
    %15 = vector.load %arg5[%c0_12, %c0_13, %c0_14] : memref<4x8x2xf32, #tpu.memory_space<vmem>>, vector<1x8x2xf32>
    %16 = vector.shape_cast %15 : vector<1x8x2xf32> to vector<8x2xf32>
    %17 = vector.extract_strided_slice %14 {offsets = [0, 0], sizes = [2, 128], strides = [1, 1]} : vector<2x512xf32> to vector<2x128xf32>
    %cst_15 = arith.constant dense<0.000000e+00> : vector<8x128xf32>
    %18 = tpu.matmul %16, %17, %cst_15 {dimension_numbers = #tpu.dot_dimension_numbers<[1], [0], [0], [1], [0, 0, 1, 1], [], []>} : vector<8x2xf32>, vector<2x128xf32>, vector<8x128xf32> -> vector<8x128xf32>
    %c1 = arith.constant 1 : index
    %c0_16 = arith.constant 0 : index
    %c0_17 = arith.constant 0 : index
    %19 = vector.load %arg5[%c1, %c0_16, %c0_17] : memref<4x8x2xf32, #tpu.memory_space<vmem>>, vector<1x8x2xf32>
    %20 = vector.shape_cast %19 : vector<1x8x2xf32> to vector<8x2xf32>
    %21 = vector.extract_strided_slice %14 {offsets = [0, 128], sizes = [2, 128], strides = [1, 1]} : vector<2x512xf32> to vector<2x128xf32>
    %cst_18 = arith.constant dense<0.000000e+00> : vector<8x128xf32>
    %22 = tpu.matmul %20, %21, %cst_18 {dimension_numbers = #tpu.dot_dimension_numbers<[1], [0], [0], [1], [0, 0, 1, 1], [], []>} : vector<8x2xf32>, vector<2x128xf32>, vector<8x128xf32> -> vector<8x128xf32>
    %23 = arith.addf %18, %22 : vector<8x128xf32>
    %c2 = arith.constant 2 : index
    %c0_19 = arith.constant 0 : index
    %c0_20 = arith.constant 0 : index
    %24 = vector.load %arg5[%c2, %c0_19, %c0_20] : memref<4x8x2xf32, #tpu.memory_space<vmem>>, vector<1x8x2xf32>
    %25 = vector.shape_cast %24 : vector<1x8x2xf32> to vector<8x2xf32>
    %26 = vector.extract_strided_slice %14 {offsets = [0, 256], sizes = [2, 128], strides = [1, 1]} : vector<2x512xf32> to vector<2x128xf32>
    %cst_21 = arith.constant dense<0.000000e+00> : vector<8x128xf32>
    %27 = tpu.matmul %25, %26, %cst_21 {dimension_numbers = #tpu.dot_dimension_numbers<[1], [0], [0], [1], [0, 0, 1, 1], [], []>} : vector<8x2xf32>, vector<2x128xf32>, vector<8x128xf32> -> vector<8x128xf32>
    %28 = arith.addf %23, %27 : vector<8x128xf32>
    %c3 = arith.constant 3 : index
    %c0_22 = arith.constant 0 : index
    %c0_23 = arith.constant 0 : index
    %29 = vector.load %arg5[%c3, %c0_22, %c0_23] : memref<4x8x2xf32, #tpu.memory_space<vmem>>, vector<1x8x2xf32>
    %30 = vector.shape_cast %29 : vector<1x8x2xf32> to vector<8x2xf32>
    %31 = vector.extract_strided_slice %14 {offsets = [0, 384], sizes = [2, 128], strides = [1, 1]} : vector<2x512xf32> to vector<2x128xf32>
    %cst_24 = arith.constant dense<0.000000e+00> : vector<8x128xf32>
    %32 = tpu.matmul %30, %31, %cst_24 {dimension_numbers = #tpu.dot_dimension_numbers<[1], [0], [0], [1], [0, 0, 1, 1], [], []>} : vector<8x2xf32>, vector<2x128xf32>, vector<8x128xf32> -> vector<8x128xf32>
    %33 = arith.addf %28, %32 : vector<8x128xf32>
    %c0_25 = arith.constant 0 : index
    %c0_26 = arith.constant 0 : index
    %c0_27 = arith.constant 0 : index
    %34 = vector.load %arg7[%c0_25, %c0_26, %c0_27] : memref<5x22x8xf32, #tpu.memory_space<vmem>>, vector<1x22x8xf32>
    %35 = vector.shape_cast %34 : vector<1x22x8xf32> to vector<22x8xf32>
    %c0_28 = arith.constant 0 : index
    %c0_29 = arith.constant 0 : index
    %c0_30 = arith.constant 0 : index
    %36 = vector.load %arg6[%c0_28, %c0_29, %c0_30] : memref<5x128x176xf32, #tpu.memory_space<vmem>>, vector<1x128x176xf32>
    %37 = vector.shape_cast %36 : vector<1x128x176xf32> to vector<128x176xf32>
    %cst_31 = arith.constant dense<0.000000e+00> : vector<8x176xf32>
    %38 = tpu.matmul %33, %37, %cst_31 {dimension_numbers = #tpu.dot_dimension_numbers<[1], [0], [0], [1], [0, 0, 1, 1], [], []>} : vector<8x128xf32>, vector<128x176xf32>, vector<8x176xf32> -> vector<8x176xf32>
    %cst_32 = arith.constant dense<0.000000e+00> : vector<22x176xf32>
    %39 = tpu.matmul %35, %38, %cst_32 {dimension_numbers = #tpu.dot_dimension_numbers<[1], [0], [0], [1], [0, 0, 1, 1], [], []>} : vector<22x8xf32>, vector<8x176xf32>, vector<22x176xf32> -> vector<22x176xf32>
    %c1_33 = arith.constant 1 : index
    %c0_34 = arith.constant 0 : index
    %c0_35 = arith.constant 0 : index
    %40 = vector.load %arg7[%c1_33, %c0_34, %c0_35] : memref<5x22x8xf32, #tpu.memory_space<vmem>>, vector<1x22x8xf32>
    %41 = vector.shape_cast %40 : vector<1x22x8xf32> to vector<22x8xf32>
    %c1_36 = arith.constant 1 : index
    %c0_37 = arith.constant 0 : index
    %c0_38 = arith.constant 0 : index
    %42 = vector.load %arg6[%c1_36, %c0_37, %c0_38] : memref<5x128x176xf32, #tpu.memory_space<vmem>>, vector<1x128x176xf32>
    %43 = vector.shape_cast %42 : vector<1x128x176xf32> to vector<128x176xf32>
    %cst_39 = arith.constant dense<0.000000e+00> : vector<8x176xf32>
    %44 = tpu.matmul %33, %43, %cst_39 {dimension_numbers = #tpu.dot_dimension_numbers<[1], [0], [0], [1], [0, 0, 1, 1], [], []>} : vector<8x128xf32>, vector<128x176xf32>, vector<8x176xf32> -> vector<8x176xf32>
    %cst_40 = arith.constant dense<0.000000e+00> : vector<22x176xf32>
    %45 = tpu.matmul %41, %44, %cst_40 {dimension_numbers = #tpu.dot_dimension_numbers<[1], [0], [0], [1], [0, 0, 1, 1], [], []>} : vector<22x8xf32>, vector<8x176xf32>, vector<22x176xf32> -> vector<22x176xf32>
    %46 = arith.addf %39, %45 : vector<22x176xf32>
    %c2_41 = arith.constant 2 : index
    %c0_42 = arith.constant 0 : index
    %c0_43 = arith.constant 0 : index
    %47 = vector.load %arg7[%c2_41, %c0_42, %c0_43] : memref<5x22x8xf32, #tpu.memory_space<vmem>>, vector<1x22x8xf32>
    %48 = vector.shape_cast %47 : vector<1x22x8xf32> to vector<22x8xf32>
    %c2_44 = arith.constant 2 : index
    %c0_45 = arith.constant 0 : index
    %c0_46 = arith.constant 0 : index
    %49 = vector.load %arg6[%c2_44, %c0_45, %c0_46] : memref<5x128x176xf32, #tpu.memory_space<vmem>>, vector<1x128x176xf32>
    %50 = vector.shape_cast %49 : vector<1x128x176xf32> to vector<128x176xf32>
    %cst_47 = arith.constant dense<0.000000e+00> : vector<8x176xf32>
    %51 = tpu.matmul %33, %50, %cst_47 {dimension_numbers = #tpu.dot_dimension_numbers<[1], [0], [0], [1], [0, 0, 1, 1], [], []>} : vector<8x128xf32>, vector<128x176xf32>, vector<8x176xf32> -> vector<8x176xf32>
    %cst_48 = arith.constant dense<0.000000e+00> : vector<22x176xf32>
    %52 = tpu.matmul %48, %51, %cst_48 {dimension_numbers = #tpu.dot_dimension_numbers<[1], [0], [0], [1], [0, 0, 1, 1], [], []>} : vector<22x8xf32>, vector<8x176xf32>, vector<22x176xf32> -> vector<22x176xf32>
    %53 = arith.addf %46, %52 : vector<22x176xf32>
    %c3_49 = arith.constant 3 : index
    %c0_50 = arith.constant 0 : index
    %c0_51 = arith.constant 0 : index
    %54 = vector.load %arg7[%c3_49, %c0_50, %c0_51] : memref<5x22x8xf32, #tpu.memory_space<vmem>>, vector<1x22x8xf32>
    %55 = vector.shape_cast %54 : vector<1x22x8xf32> to vector<22x8xf32>
    %c3_52 = arith.constant 3 : index
    %c0_53 = arith.constant 0 : index
    %c0_54 = arith.constant 0 : index
    %56 = vector.load %arg6[%c3_52, %c0_53, %c0_54] : memref<5x128x176xf32, #tpu.memory_space<vmem>>, vector<1x128x176xf32>
    %57 = vector.shape_cast %56 : vector<1x128x176xf32> to vector<128x176xf32>
    %cst_55 = arith.constant dense<0.000000e+00> : vector<8x176xf32>
    %58 = tpu.matmul %33, %57, %cst_55 {dimension_numbers = #tpu.dot_dimension_numbers<[1], [0], [0], [1], [0, 0, 1, 1], [], []>} : vector<8x128xf32>, vector<128x176xf32>, vector<8x176xf32> -> vector<8x176xf32>
    %cst_56 = arith.constant dense<0.000000e+00> : vector<22x176xf32>
    %59 = tpu.matmul %55, %58, %cst_56 {dimension_numbers = #tpu.dot_dimension_numbers<[1], [0], [0], [1], [0, 0, 1, 1], [], []>} : vector<22x8xf32>, vector<8x176xf32>, vector<22x176xf32> -> vector<22x176xf32>
    %60 = arith.addf %53, %59 : vector<22x176xf32>
    %c4 = arith.constant 4 : index
    %c0_57 = arith.constant 0 : index
    %c0_58 = arith.constant 0 : index
    %61 = vector.load %arg7[%c4, %c0_57, %c0_58] : memref<5x22x8xf32, #tpu.memory_space<vmem>>, vector<1x22x8xf32>
    %62 = vector.shape_cast %61 : vector<1x22x8xf32> to vector<22x8xf32>
    %c4_59 = arith.constant 4 : index
    %c0_60 = arith.constant 0 : index
    %c0_61 = arith.constant 0 : index
    %63 = vector.load %arg6[%c4_59, %c0_60, %c0_61] : memref<5x128x176xf32, #tpu.memory_space<vmem>>, vector<1x128x176xf32>
    %64 = vector.shape_cast %63 : vector<1x128x176xf32> to vector<128x176xf32>
    %cst_62 = arith.constant dense<0.000000e+00> : vector<8x176xf32>
    %65 = tpu.matmul %33, %64, %cst_62 {dimension_numbers = #tpu.dot_dimension_numbers<[1], [0], [0], [1], [0, 0, 1, 1], [], []>} : vector<8x128xf32>, vector<128x176xf32>, vector<8x176xf32> -> vector<8x176xf32>
    %cst_63 = arith.constant dense<0.000000e+00> : vector<22x176xf32>
    %66 = tpu.matmul %62, %65, %cst_63 {dimension_numbers = #tpu.dot_dimension_numbers<[1], [0], [0], [1], [0, 0, 1, 1], [], []>} : vector<22x8xf32>, vector<8x176xf32>, vector<22x176xf32> -> vector<22x176xf32>
    %67 = arith.addf %60, %66 : vector<22x176xf32>
    %c0_64 = arith.constant 0 : index
    %c0_65 = arith.constant 0 : index
    %68 = vector.load %arg8[%c0_64, %c0_65] : memref<1x176xf32, #tpu.memory_space<vmem>>, vector<1x176xf32>
    %69 = vector.broadcast %68 : vector<1x176xf32> to vector<22x176xf32>
    %70 = arith.addf %67, %69 : vector<22x176xf32>
    %cst_66 = arith.constant dense<0.000000e+00> : vector<176xf32>
    %71 = vector.multi_reduction <add>, %70, %cst_66 [0] : vector<22x176xf32> to vector<176xf32>
    %72 = vector.shape_cast %71 : vector<176xf32> to vector<1x176xf32>
    %c0_67 = arith.constant 0 : index
    %c0_68 = arith.constant 0 : index
    %73 = vector.load %arg11[%c0_67, %c0_68] : memref<176x16xf32, #tpu.memory_space<vmem>>, vector<176x16xf32>
    %cst_69 = arith.constant dense<0.000000e+00> : vector<1x16xf32>
    %74 = tpu.matmul %72, %73, %cst_69 {dimension_numbers = #tpu.dot_dimension_numbers<[1], [0], [0], [1], [0, 0, 1, 1], [], []>} : vector<1x176xf32>, vector<176x16xf32>, vector<1x16xf32> -> vector<1x16xf32>
    %75 = arith.mulf %70, %70 : vector<22x176xf32>
    %cst_70 = arith.constant dense<0.000000e+00> : vector<176xf32>
    %76 = vector.multi_reduction <add>, %75, %cst_70 [0] : vector<22x176xf32> to vector<176xf32>
    %77 = vector.shape_cast %76 : vector<176xf32> to vector<1x176xf32>
    %c0_71 = arith.constant 0 : index
    %c0_72 = arith.constant 0 : index
    %78 = vector.load %arg11[%c0_71, %c0_72] : memref<176x16xf32, #tpu.memory_space<vmem>>, vector<176x16xf32>
    %cst_73 = arith.constant dense<0.000000e+00> : vector<1x16xf32>
    %79 = tpu.matmul %77, %78, %cst_73 {dimension_numbers = #tpu.dot_dimension_numbers<[1], [0], [0], [1], [0, 0, 1, 1], [], []>} : vector<1x176xf32>, vector<176x16xf32>, vector<1x16xf32> -> vector<1x16xf32>
    %cst_74 = arith.constant 0.00413223123 : f32
    %80 = vector.broadcast %cst_74 : f32 to vector<1x16xf32>
    %81 = arith.mulf %74, %80 : vector<1x16xf32>
    %cst_75 = arith.constant 0.00413223123 : f32
    %82 = vector.broadcast %cst_75 : f32 to vector<1x16xf32>
    %83 = arith.mulf %79, %82 : vector<1x16xf32>
    %84 = arith.mulf %81, %81 : vector<1x16xf32>
    %85 = arith.subf %83, %84 : vector<1x16xf32>
    %c0_76 = arith.constant 0 : index
    %c0_77 = arith.constant 0 : index
    %86 = vector.load %arg9[%c0_76, %c0_77] : memref<1x16xf32, #tpu.memory_space<vmem>>, vector<1x16xf32>
    %cst_78 = arith.constant 9.99999974E-6 : f32
    %87 = vector.broadcast %cst_78 : f32 to vector<1x16xf32>
    %88 = arith.addf %85, %87 : vector<1x16xf32>
    %89 = math.rsqrt %88 : vector<1x16xf32>
    %90 = arith.mulf %86, %89 : vector<1x16xf32>
    %c0_79 = arith.constant 0 : index
    %c0_80 = arith.constant 0 : index
    %91 = vector.load %arg10[%c0_79, %c0_80] : memref<1x16xf32, #tpu.memory_space<vmem>>, vector<1x16xf32>
    %92 = arith.mulf %81, %90 : vector<1x16xf32>
    %93 = arith.subf %91, %92 : vector<1x16xf32>
    %c0_81 = arith.constant 0 : index
    %c0_82 = arith.constant 0 : index
    %94 = vector.load %arg12[%c0_81, %c0_82] : memref<16x176xf32, #tpu.memory_space<vmem>>, vector<16x176xf32>
    %cst_83 = arith.constant dense<0.000000e+00> : vector<1x176xf32>
    %95 = tpu.matmul %90, %94, %cst_83 {dimension_numbers = #tpu.dot_dimension_numbers<[1], [0], [0], [1], [0, 0, 1, 1], [], []>} : vector<1x16xf32>, vector<16x176xf32>, vector<1x176xf32> -> vector<1x176xf32>
    %96 = vector.broadcast %95 : vector<1x176xf32> to vector<22x176xf32>
    %97 = arith.mulf %70, %96 : vector<22x176xf32>
    %c0_84 = arith.constant 0 : index
    %c0_85 = arith.constant 0 : index
    %98 = vector.load %arg12[%c0_84, %c0_85] : memref<16x176xf32, #tpu.memory_space<vmem>>, vector<16x176xf32>
    %cst_86 = arith.constant dense<0.000000e+00> : vector<1x176xf32>
    %99 = tpu.matmul %93, %98, %cst_86 {dimension_numbers = #tpu.dot_dimension_numbers<[1], [0], [0], [1], [0, 0, 1, 1], [], []>} : vector<1x16xf32>, vector<16x176xf32>, vector<1x176xf32> -> vector<1x176xf32>
    %100 = vector.broadcast %99 : vector<1x176xf32> to vector<22x176xf32>
    %101 = arith.addf %97, %100 : vector<22x176xf32>
    %cst_87 = arith.constant -1.000000e+00 : f32
    %cst_88 = arith.constant 1.000000e+00 : f32
    %102 = vector.broadcast %cst_87 : f32 to vector<22x176xf32>
    %103 = arith.maximumf %102, %101 : vector<22x176xf32>
    %104 = vector.broadcast %cst_88 : f32 to vector<22x176xf32>
    %105 = arith.minimumf %104, %103 : vector<22x176xf32>
    %c0_89 = arith.constant 0 : index
    %c0_90 = arith.constant 0 : index
    %c0_91 = arith.constant 0 : index
    %106 = vector.load %arg14[%c0_89, %c0_90, %c0_91] : memref<4x48x22xf32, #tpu.memory_space<vmem>>, vector<1x48x22xf32>
    %107 = vector.shape_cast %106 : vector<1x48x22xf32> to vector<48x22xf32>
    %c0_92 = arith.constant 0 : index
    %c0_93 = arith.constant 0 : index
    %c0_94 = arith.constant 0 : index
    %108 = vector.load %arg13[%c0_92, %c0_93, %c0_94] : memref<4x176x192xf32, #tpu.memory_space<vmem>>, vector<1x176x192xf32>
    %109 = vector.shape_cast %108 : vector<1x176x192xf32> to vector<176x192xf32>
    %cst_95 = arith.constant dense<0.000000e+00> : vector<22x192xf32>
    %110 = tpu.matmul %105, %109, %cst_95 {dimension_numbers = #tpu.dot_dimension_numbers<[1], [0], [0], [1], [0, 0, 1, 1], [], []>} : vector<22x176xf32>, vector<176x192xf32>, vector<22x192xf32> -> vector<22x192xf32>
    %cst_96 = arith.constant dense<0.000000e+00> : vector<48x192xf32>
    %111 = tpu.matmul %107, %110, %cst_96 {dimension_numbers = #tpu.dot_dimension_numbers<[1], [0], [0], [1], [0, 0, 1, 1], [], []>} : vector<48x22xf32>, vector<22x192xf32>, vector<48x192xf32> -> vector<48x192xf32>
    %c1_97 = arith.constant 1 : index
    %c0_98 = arith.constant 0 : index
    %c0_99 = arith.constant 0 : index
    %112 = vector.load %arg14[%c1_97, %c0_98, %c0_99] : memref<4x48x22xf32, #tpu.memory_space<vmem>>, vector<1x48x22xf32>
    %113 = vector.shape_cast %112 : vector<1x48x22xf32> to vector<48x22xf32>
    %c1_100 = arith.constant 1 : index
    %c0_101 = arith.constant 0 : index
    %c0_102 = arith.constant 0 : index
    %114 = vector.load %arg13[%c1_100, %c0_101, %c0_102] : memref<4x176x192xf32, #tpu.memory_space<vmem>>, vector<1x176x192xf32>
    %115 = vector.shape_cast %114 : vector<1x176x192xf32> to vector<176x192xf32>
    %cst_103 = arith.constant dense<0.000000e+00> : vector<22x192xf32>
    %116 = tpu.matmul %105, %115, %cst_103 {dimension_numbers = #tpu.dot_dimension_numbers<[1], [0], [0], [1], [0, 0, 1, 1], [], []>} : vector<22x176xf32>, vector<176x192xf32>, vector<22x192xf32> -> vector<22x192xf32>
    %cst_104 = arith.constant dense<0.000000e+00> : vector<48x192xf32>
    %117 = tpu.matmul %113, %116, %cst_104 {dimension_numbers = #tpu.dot_dimension_numbers<[1], [0], [0], [1], [0, 0, 1, 1], [], []>} : vector<48x22xf32>, vector<22x192xf32>, vector<48x192xf32> -> vector<48x192xf32>
    %118 = arith.addf %111, %117 : vector<48x192xf32>
    %c2_105 = arith.constant 2 : index
    %c0_106 = arith.constant 0 : index
    %c0_107 = arith.constant 0 : index
    %119 = vector.load %arg14[%c2_105, %c0_106, %c0_107] : memref<4x48x22xf32, #tpu.memory_space<vmem>>, vector<1x48x22xf32>
    %120 = vector.shape_cast %119 : vector<1x48x22xf32> to vector<48x22xf32>
    %c2_108 = arith.constant 2 : index
    %c0_109 = arith.constant 0 : index
    %c0_110 = arith.constant 0 : index
    %121 = vector.load %arg13[%c2_108, %c0_109, %c0_110] : memref<4x176x192xf32, #tpu.memory_space<vmem>>, vector<1x176x192xf32>
    %122 = vector.shape_cast %121 : vector<1x176x192xf32> to vector<176x192xf32>
    %cst_111 = arith.constant dense<0.000000e+00> : vector<22x192xf32>
    %123 = tpu.matmul %105, %122, %cst_111 {dimension_numbers = #tpu.dot_dimension_numbers<[1], [0], [0], [1], [0, 0, 1, 1], [], []>} : vector<22x176xf32>, vector<176x192xf32>, vector<22x192xf32> -> vector<22x192xf32>
    %cst_112 = arith.constant dense<0.000000e+00> : vector<48x192xf32>
    %124 = tpu.matmul %120, %123, %cst_112 {dimension_numbers = #tpu.dot_dimension_numbers<[1], [0], [0], [1], [0, 0, 1, 1], [], []>} : vector<48x22xf32>, vector<22x192xf32>, vector<48x192xf32> -> vector<48x192xf32>
    %125 = arith.addf %118, %124 : vector<48x192xf32>
    %c3_113 = arith.constant 3 : index
    %c0_114 = arith.constant 0 : index
    %c0_115 = arith.constant 0 : index
    %126 = vector.load %arg14[%c3_113, %c0_114, %c0_115] : memref<4x48x22xf32, #tpu.memory_space<vmem>>, vector<1x48x22xf32>
    %127 = vector.shape_cast %126 : vector<1x48x22xf32> to vector<48x22xf32>
    %c3_116 = arith.constant 3 : index
    %c0_117 = arith.constant 0 : index
    %c0_118 = arith.constant 0 : index
    %128 = vector.load %arg13[%c3_116, %c0_117, %c0_118] : memref<4x176x192xf32, #tpu.memory_space<vmem>>, vector<1x176x192xf32>
    %129 = vector.shape_cast %128 : vector<1x176x192xf32> to vector<176x192xf32>
    %cst_119 = arith.constant dense<0.000000e+00> : vector<22x192xf32>
    %130 = tpu.matmul %105, %129, %cst_119 {dimension_numbers = #tpu.dot_dimension_numbers<[1], [0], [0], [1], [0, 0, 1, 1], [], []>} : vector<22x176xf32>, vector<176x192xf32>, vector<22x192xf32> -> vector<22x192xf32>
    %cst_120 = arith.constant dense<0.000000e+00> : vector<48x192xf32>
    %131 = tpu.matmul %127, %130, %cst_120 {dimension_numbers = #tpu.dot_dimension_numbers<[1], [0], [0], [1], [0, 0, 1, 1], [], []>} : vector<48x22xf32>, vector<22x192xf32>, vector<48x192xf32> -> vector<48x192xf32>
    %132 = arith.addf %125, %131 : vector<48x192xf32>
    %c0_121 = arith.constant 0 : index
    %c0_122 = arith.constant 0 : index
    %133 = vector.load %arg15[%c0_121, %c0_122] : memref<1x192xf32, #tpu.memory_space<vmem>>, vector<1x192xf32>
    %134 = vector.broadcast %133 : vector<1x192xf32> to vector<48x192xf32>
    %135 = arith.addf %132, %134 : vector<48x192xf32>
    %cst_123 = arith.constant -1.000000e+00 : f32
    %cst_124 = arith.constant 1.000000e+00 : f32
    %136 = vector.broadcast %cst_123 : f32 to vector<48x192xf32>
    %137 = arith.maximumf %136, %135 : vector<48x192xf32>
    %138 = vector.broadcast %cst_124 : f32 to vector<48x192xf32>
    %139 = arith.minimumf %138, %137 : vector<48x192xf32>
    %c0_125 = arith.constant 0 : index
    %c0_126 = arith.constant 0 : index
    %c0_127 = arith.constant 0 : index
    %140 = vector.load %arg17[%c0_125, %c0_126, %c0_127] : memref<2x96x48xf32, #tpu.memory_space<vmem>>, vector<1x96x48xf32>
    %141 = vector.shape_cast %140 : vector<1x96x48xf32> to vector<96x48xf32>
    %c0_128 = arith.constant 0 : index
    %c0_129 = arith.constant 0 : index
    %c0_130 = arith.constant 0 : index
    %142 = vector.load %arg16[%c0_128, %c0_129, %c0_130] : memref<2x192x192xf32, #tpu.memory_space<vmem>>, vector<1x192x192xf32>
    %143 = vector.shape_cast %142 : vector<1x192x192xf32> to vector<192x192xf32>
    %cst_131 = arith.constant dense<0.000000e+00> : vector<48x192xf32>
    %144 = tpu.matmul %139, %143, %cst_131 {dimension_numbers = #tpu.dot_dimension_numbers<[1], [0], [0], [1], [0, 0, 1, 1], [], []>} : vector<48x192xf32>, vector<192x192xf32>, vector<48x192xf32> -> vector<48x192xf32>
    %cst_132 = arith.constant dense<0.000000e+00> : vector<96x192xf32>
    %145 = tpu.matmul %141, %144, %cst_132 {dimension_numbers = #tpu.dot_dimension_numbers<[1], [0], [0], [1], [0, 0, 1, 1], [], []>} : vector<96x48xf32>, vector<48x192xf32>, vector<96x192xf32> -> vector<96x192xf32>
    %c1_133 = arith.constant 1 : index
    %c0_134 = arith.constant 0 : index
    %c0_135 = arith.constant 0 : index
    %146 = vector.load %arg17[%c1_133, %c0_134, %c0_135] : memref<2x96x48xf32, #tpu.memory_space<vmem>>, vector<1x96x48xf32>
    %147 = vector.shape_cast %146 : vector<1x96x48xf32> to vector<96x48xf32>
    %c1_136 = arith.constant 1 : index
    %c0_137 = arith.constant 0 : index
    %c0_138 = arith.constant 0 : index
    %148 = vector.load %arg16[%c1_136, %c0_137, %c0_138] : memref<2x192x192xf32, #tpu.memory_space<vmem>>, vector<1x192x192xf32>
    %149 = vector.shape_cast %148 : vector<1x192x192xf32> to vector<192x192xf32>
    %cst_139 = arith.constant dense<0.000000e+00> : vector<48x192xf32>
    %150 = tpu.matmul %139, %149, %cst_139 {dimension_numbers = #tpu.dot_dimension_numbers<[1], [0], [0], [1], [0, 0, 1, 1], [], []>} : vector<48x192xf32>, vector<192x192xf32>, vector<48x192xf32> -> vector<48x192xf32>
    %cst_140 = arith.constant dense<0.000000e+00> : vector<96x192xf32>
    %151 = tpu.matmul %147, %150, %cst_140 {dimension_numbers = #tpu.dot_dimension_numbers<[1], [0], [0], [1], [0, 0, 1, 1], [], []>} : vector<96x48xf32>, vector<48x192xf32>, vector<96x192xf32> -> vector<96x192xf32>
    %152 = arith.addf %145, %151 : vector<96x192xf32>
    %c0_141 = arith.constant 0 : index
    %c0_142 = arith.constant 0 : index
    %153 = vector.load %arg18[%c0_141, %c0_142] : memref<1x192xf32, #tpu.memory_space<vmem>>, vector<1x192xf32>
    %154 = vector.broadcast %153 : vector<1x192xf32> to vector<96x192xf32>
    %155 = arith.addf %152, %154 : vector<96x192xf32>
    %c0_143 = arith.constant 0 : index
    %c0_144 = arith.constant 0 : index
    %c0_145 = arith.constant 0 : index
    %156 = vector.load %arg20[%c0_143, %c0_144, %c0_145] : memref<3x96x96xf32, #tpu.memory_space<vmem>>, vector<1x96x96xf32>
    %157 = vector.shape_cast %156 : vector<1x96x96xf32> to vector<96x96xf32>
    %c0_146 = arith.constant 0 : index
    %c0_147 = arith.constant 0 : index
    %c0_148 = arith.constant 0 : index
    %158 = vector.load %arg19[%c0_146, %c0_147, %c0_148] : memref<3x192x128xf32, #tpu.memory_space<vmem>>, vector<1x192x128xf32>
    %159 = vector.shape_cast %158 : vector<1x192x128xf32> to vector<192x128xf32>
    %cst_149 = arith.constant dense<0.000000e+00> : vector<96x128xf32>
    %160 = tpu.matmul %155, %159, %cst_149 {dimension_numbers = #tpu.dot_dimension_numbers<[1], [0], [0], [1], [0, 0, 1, 1], [], []>} : vector<96x192xf32>, vector<192x128xf32>, vector<96x128xf32> -> vector<96x128xf32>
    %cst_150 = arith.constant dense<0.000000e+00> : vector<96x128xf32>
    %161 = tpu.matmul %157, %160, %cst_150 {dimension_numbers = #tpu.dot_dimension_numbers<[1], [0], [0], [1], [0, 0, 1, 1], [], []>} : vector<96x96xf32>, vector<96x128xf32>, vector<96x128xf32> -> vector<96x128xf32>
    %c1_151 = arith.constant 1 : index
    %c0_152 = arith.constant 0 : index
    %c0_153 = arith.constant 0 : index
    %162 = vector.load %arg20[%c1_151, %c0_152, %c0_153] : memref<3x96x96xf32, #tpu.memory_space<vmem>>, vector<1x96x96xf32>
    %163 = vector.shape_cast %162 : vector<1x96x96xf32> to vector<96x96xf32>
    %c1_154 = arith.constant 1 : index
    %c0_155 = arith.constant 0 : index
    %c0_156 = arith.constant 0 : index
    %164 = vector.load %arg19[%c1_154, %c0_155, %c0_156] : memref<3x192x128xf32, #tpu.memory_space<vmem>>, vector<1x192x128xf32>
    %165 = vector.shape_cast %164 : vector<1x192x128xf32> to vector<192x128xf32>
    %cst_157 = arith.constant dense<0.000000e+00> : vector<96x128xf32>
    %166 = tpu.matmul %155, %165, %cst_157 {dimension_numbers = #tpu.dot_dimension_numbers<[1], [0], [0], [1], [0, 0, 1, 1], [], []>} : vector<96x192xf32>, vector<192x128xf32>, vector<96x128xf32> -> vector<96x128xf32>
    %cst_158 = arith.constant dense<0.000000e+00> : vector<96x128xf32>
    %167 = tpu.matmul %163, %166, %cst_158 {dimension_numbers = #tpu.dot_dimension_numbers<[1], [0], [0], [1], [0, 0, 1, 1], [], []>} : vector<96x96xf32>, vector<96x128xf32>, vector<96x128xf32> -> vector<96x128xf32>
    %168 = arith.addf %161, %167 : vector<96x128xf32>
    %c2_159 = arith.constant 2 : index
    %c0_160 = arith.constant 0 : index
    %c0_161 = arith.constant 0 : index
    %169 = vector.load %arg20[%c2_159, %c0_160, %c0_161] : memref<3x96x96xf32, #tpu.memory_space<vmem>>, vector<1x96x96xf32>
    %170 = vector.shape_cast %169 : vector<1x96x96xf32> to vector<96x96xf32>
    %c2_162 = arith.constant 2 : index
    %c0_163 = arith.constant 0 : index
    %c0_164 = arith.constant 0 : index
    %171 = vector.load %arg19[%c2_162, %c0_163, %c0_164] : memref<3x192x128xf32, #tpu.memory_space<vmem>>, vector<1x192x128xf32>
    %172 = vector.shape_cast %171 : vector<1x192x128xf32> to vector<192x128xf32>
    %cst_165 = arith.constant dense<0.000000e+00> : vector<96x128xf32>
    %173 = tpu.matmul %155, %172, %cst_165 {dimension_numbers = #tpu.dot_dimension_numbers<[1], [0], [0], [1], [0, 0, 1, 1], [], []>} : vector<96x192xf32>, vector<192x128xf32>, vector<96x128xf32> -> vector<96x128xf32>
    %cst_166 = arith.constant dense<0.000000e+00> : vector<96x128xf32>
    %174 = tpu.matmul %170, %173, %cst_166 {dimension_numbers = #tpu.dot_dimension_numbers<[1], [0], [0], [1], [0, 0, 1, 1], [], []>} : vector<96x96xf32>, vector<96x128xf32>, vector<96x128xf32> -> vector<96x128xf32>
    %175 = arith.addf %168, %174 : vector<96x128xf32>
    %c0_167 = arith.constant 0 : index
    %c0_168 = arith.constant 0 : index
    %176 = vector.load %arg21[%c0_167, %c0_168] : memref<1x128xf32, #tpu.memory_space<vmem>>, vector<1x128xf32>
    %177 = vector.broadcast %176 : vector<1x128xf32> to vector<96x128xf32>
    %178 = arith.addf %175, %177 : vector<96x128xf32>
    %179 = math.tanh %178 : vector<96x128xf32>
    %c0_169 = arith.constant 0 : index
    %c0_170 = arith.constant 0 : index
    %180 = vector.load %arg22[%c0_169, %c0_170] : memref<96x128xf32, #tpu.memory_space<vmem>>, vector<96x128xf32>
    tpu.vector_store %arg22[%c0_169, %c0_170], %179 {strides = array<i32>} : memref<96x128xf32, #tpu.memory_space<vmem>>, vector<96x128xf32>,
    return
  }
}

</mosaic_0001>

<bundles_post_ra>
// kernel: decoder_forward.1
= control target key start
LH: loop header
LB: loop body
LE: loop exit
PB: predicated region body
PF: predicated region fallthrough
CT: control target
= control target key end

     0   :  { %s8419_s0 = inlined_call_operand.hbm [shape: f32[2,16], index: 0, kind: input, shape index: {}]   ;;  %s8420_s1 = inlined_call_operand.hbm [shape: f32[16,128], index: 1, kind: input, shape index: {}]   ;;  %s8421_s2 = inlined_call_operand.hbm [shape: f32[1,128], index: 2, kind: input, shape index: {}]   ;;  %s8422_s3 = inlined_call_operand.hbm [shape: f32[128,512], index: 3, kind: input, shape index: {}]   ;;  %s8423_s4 = inlined_call_operand.hbm [shape: f32[1,512], index: 4, kind: input, shape index: {}]   ;;  %s8424_s5 = inlined_call_operand.hbm [shape: f32[4,8,2], index: 5, kind: input, shape index: {}]   ;;  %s8425_s6 = inlined_call_operand.hbm [shape: f32[5,128,176], index: 6, kind: input, shape index: {}]   ;;  %s8426_s7 = inlined_call_operand.hbm [shape: f32[5,22,8], index: 7, kind: input, shape index: {}]   ;;  %s8427_s8 = inlined_call_operand.hbm [shape: f32[1,176], index: 8, kind: input, shape index: {}]   ;;  %s8428_s9 = inlined_call_operand.hbm [shape: f32[1,16], index: 9, kind: input, shape index: {}]   ;;  %s8429_s10 = inlined_call_operand.hbm [shape: f32[1,16], index: 10, kind: input, shape index: {}]   ;;  %s8430_s11 = inlined_call_operand.hbm [shape: f32[176,16], index: 11, kind: input, shape index: {}]   ;;  %s8431_s12 = inlined_call_operand.hbm [shape: f32[16,176], index: 12, kind: input, shape index: {}]   ;;  %s8432_s13 = inlined_call_operand.hbm [shape: f32[4,176,192], index: 13, kind: input, shape index: {}]   ;;  %s8433_s14 = inlined_call_operand.hbm [shape: f32[4,48,22], index: 14, kind: input, shape index: {}]   ;;  %s8434_s15 = inlined_call_operand.hbm [shape: f32[1,192], index: 15, kind: input, shape index: {}]   ;;  %s8435_s16 = inlined_call_operand.hbm [shape: f32[2,192,192], index: 16, kind: input, shape index: {}]   ;;  %s8436_s17 = inlined_call_operand.hbm [shape: f32[2,96,48], index: 17, kind: input, shape index: {}]   ;;  %s8437_s18 = inlined_call_operand.hbm [shape: f32[1,192], index: 18, kind: input, shape index: {}]   ;;  %s8438_s19 = inlined_call_operand.hbm [shape: f32[3,192,128], index: 19, kind: input, shape index: {}]   ;;  %s8439_s20 = inlined_call_operand.hbm [shape: f32[3,96,96], index: 20, kind: input, shape index: {}]   ;;  %s8440_s21 = inlined_call_operand.hbm [shape: f32[1,128], index: 21, kind: input, shape index: {}]   ;;  %s8441_s22 = inlined_call_operand.hbm [shape: f32[96,128], index: 22, kind: output, shape index: {}]  }
   0x1   :  { %8456 = sst [smem:[#allocation51_spill]] %s8419_s0 }
   0x2   :  { %8457 = sst [smem:[#allocation52_spill]] %s8420_s1 }
   0x3   :  { %8458 = sst [smem:[#allocation53_spill]] %s8421_s2 }
   0x4   :  { %8459 = sst [smem:[#allocation54_spill]] %s8422_s3 }
   0x5   :  { %8460 = sst [smem:[#allocation55_spill]] %s8423_s4 }
   0x6   :  { %8461 = sst [smem:[#allocation56_spill]] %s8424_s5 }
   0x7   :  { %8462 = sst [smem:[#allocation57_spill]] %s8425_s6 }
   0x8   :  { %8463 = sst [smem:[#allocation58_spill]] %s8439_s20 }
   0x9   :  { %8464 = sst [smem:[#allocation59_spill]] %s8440_s21 }
   0xa   :  { %8465 = sst [smem:[#allocation60_spill]] %s8441_s22 }
   0xb   :  { %27 = vsyncpa [#allocation3], 0 }
   0xc   :  { %28 = vsyncpa [#allocation6], 0 }
   0xd   :  { %29 = vsyncpa [#allocation9], 0 }
   0xe   :  { %30 = vsyncpa [#allocation12], 0 }
   0xf   :  { %31 = vsyncpa [#allocation15], 0 }
  0x10   :  { %32 = vsyncpa [#allocation18], 0 }
  0x11   :  { %33 = vsyncpa [#allocation21], 0 }
  0x12   :  { %34 = vsyncpa [#allocation24], 0 }
  0x13   :  { %35 = vsyncpa [#allocation27], 0 }
  0x14   :  { %36 = vsyncpa [#allocation30], 0 }
  0x15   :  { %37 = vsyncpa [#allocation33], 0 }
  0x16   :  { %38 = vsyncpa [#allocation36], 0 }
  0x17   :  { %39 = vsyncpa [#allocation4], 0  ;;  %s7307_s3 = smov [#allocation5]   ;;  %s8466_s4 = sld [smem:[#allocation52_spill]] }
  0x18   :  { %s55_s28 = sshll.u32 %s7307_s3, 4  ;;  %s56_s28 = int_to_ptr.vmem [resolvable:$true] %s55_s28 }
  0x1d   :  { %s6775_s0 = scalar_lea.hbm %s8466_s4, 256 }
  0x1e   :  { %p6776_p0 = scmp.ne.s32.totalorder %s8466_s4, %s6775_s0  ;;  %p6779_p1 = scmp.lt.u32.totalorder %s6775_s0, %s8466_s4 }
  0x20   :  { %p6781_p2 = pnand %p6779_p1, %p6776_p0 }
  0x22   :  { %6784 = shalt.err (!%p6781_p2)
}
  0x23   :  { %s6785_s6 = scalar_lea.vmem %s56_s28, 256  ;;  %p6790_p4 = scmp.lt.s32.totalorder %s56_s28, %s56_s28 }
  0x24   :  { %p6786_p3 = scmp.ne.s32.totalorder %s56_s28, %s6785_s6  ;;  %p6791_p5 = scmp.lt.s32.totalorder %s6785_s6, %s6785_s6 }
  0x26   :  { %p6792_p6 = por %p6791_p5, %p6790_p4 }
  0x28   :  { %p6793_p7 = pnand %p6792_p6, %p6786_p3 }
  0x2a   :  { %6796 = shalt.err (!%p6793_p7)
}
  0x2b   :  { %s8451_s25 = smov 128   ;;  %s8453_s26 = smov 8  }
  0x2c   :  { %61 = dma.hbm_to_vmem [thread:$0]  %s8466_s4, 256, %s56_s28, [#allocation6], %s8451_s25, %s8451_s25, %s8453_s26  }
  0x2d   :  { %s7310_s3 = smov [#allocation8]   ;;  %s8467_s23 = sld [smem:[#allocation54_spill]] }
  0x2e   :  { %s77_s29 = sshll.u32 %s7310_s3, 4  ;;  %s78_s29 = int_to_ptr.vmem [resolvable:$true] %s77_s29 }
  0x33   :  { %s6797_s1 = scalar_lea.hbm %s8467_s23, 8192 }
  0x34   :  { %p6798_p8 = scmp.ne.s32.totalorder %s8467_s23, %s6797_s1  ;;  %p6801_p9 = scmp.lt.u32.totalorder %s6797_s1, %s8467_s23 }
  0x36   :  { %p6803_p10 = pnand %p6801_p9, %p6798_p8 }
  0x38   :  { %6806 = shalt.err (!%p6803_p10)
}
  0x39   :  { %s6807_s21 = scalar_lea.vmem %s78_s29, 8192  ;;  %p6812_p12 = scmp.lt.s32.totalorder %s78_s29, %s78_s29 }
  0x3a   :  { %p6808_p11 = scmp.ne.s32.totalorder %s78_s29, %s6807_s21  ;;  %p6813_p13 = scmp.lt.s32.totalorder %s6807_s21, %s6807_s21 }
  0x3c   :  { %p6814_p0 = por %p6813_p13, %p6812_p12 }
  0x3e   :  { %p6815_p1 = pnand %p6814_p0, %p6808_p11 }
  0x40   :  { %6818 = shalt.err (!%p6815_p1)
}
  0x41   :  { %s7311_s28 = smov 512   ;;  %s7312_s4 = smov 32  }
  0x42   :  { %83 = dma.hbm_to_vmem [thread:$0]  %s8467_s23, 8192, %s78_s29, [#allocation9], %s7311_s28, %s7311_s28, %s7312_s4  }
  0x43   :  { %s7313_s3 = smov [#allocation11]   ;;  %s7314_s0 = smov [#allocation14]  }
  0x44   :  { %s99_s30 = sshll.u32 %s7313_s3, 4  ;;  %s123_s22 = sshll.u32 %s7314_s0, 4  ;;  %s100_s30 = int_to_ptr.vmem [resolvable:$true] %s99_s30  ;;  %s7481_s22 = int_to_ptr.vmem [resolvable:$true] %s123_s22 }
  0x45   :  { %s8468_s24 = sld [smem:[#allocation56_spill]] }
  0x4b   :  { %s6819_s21 = scalar_lea.hbm %s8468_s24, 512 }
  0x4c   :  { %p6820_p2 = scmp.ne.s32.totalorder %s8468_s24, %s6819_s21  ;;  %p6823_p3 = scmp.lt.u32.totalorder %s6819_s21, %s8468_s24 }
  0x4e   :  { %p6825_p4 = pnand %p6823_p3, %p6820_p2 }
  0x50   :  { %6828 = shalt.err (!%p6825_p4)
}
  0x51   :  { %s6829_s29 = scalar_lea.vmem %s100_s30, 512  ;;  %p6834_p6 = scmp.lt.s32.totalorder %s100_s30, %s100_s30 }
  0x52   :  { %p6830_p5 = scmp.ne.s32.totalorder %s100_s30, %s6829_s29  ;;  %p6835_p7 = scmp.lt.s32.totalorder %s6829_s29, %s6829_s29 }
  0x54   :  { %p6836_p8 = por %p6835_p7, %p6834_p6 }
  0x56   :  { %p6837_p9 = pnand %p6836_p8, %p6830_p5 }
  0x58   :  { %6840 = shalt.err (!%p6837_p9)
}
  0x59   :  { %s8469_s23 = smov 8   ;;  %s8470_s28 = smov 128  }
  0x5a   :  { %105 = dma.hbm_to_vmem [thread:$0]  %s8468_s24, 512, %s100_s30, [#allocation12], %s8470_s28, %s8470_s28, %s8469_s23  }
  0x5b   :  { %s6841_s20 = scalar_lea.hbm %s8426_s7, 1920 }
  0x5c   :  { %p6842_p10 = scmp.ne.s32.totalorder %s8426_s7, %s6841_s20  ;;  %p6845_p11 = scmp.lt.u32.totalorder %s6841_s20, %s8426_s7 }
  0x5e   :  { %p6847_p12 = pnand %p6845_p11, %p6842_p10 }
  0x60   :  { %6850 = shalt.err (!%p6847_p12)
}
  0x61   :  { %s6851_s5 = scalar_lea.vmem %s7481_s22, 1920  ;;  %p6856_p0 = scmp.lt.s32.totalorder %s7481_s22, %s7481_s22 }
  0x62   :  { %p6852_p13 = scmp.ne.s32.totalorder %s7481_s22, %s6851_s5  ;;  %p6857_p1 = scmp.lt.s32.totalorder %s6851_s5, %s6851_s5 }
  0x64   :  { %p6858_p2 = por %p6857_p1, %p6856_p0 }
  0x66   :  { %p6859_p3 = pnand %p6858_p2, %p6852_p13 }
  0x68   :  { %6862 = shalt.err (!%p6859_p3)
}
  0x69   :  { %129 = dma.hbm_to_vmem [thread:$0]  %s8426_s7, 1920, %s7481_s22, [#allocation15], %s8470_s28, %s8470_s28, %s8469_s23  }
  0x6a   :  { %s7315_s21 = smov [#allocation17]   ;;  %s7316_s29 = smov [#allocation20]  }
  0x6b   :  { %s146_s6 = sshll.u32 %s7315_s21, 4  ;;  %s165_s4 = sshll.u32 %s7316_s29, 4  ;;  %s147_s6 = int_to_ptr.vmem [resolvable:$true] %s146_s6  ;;  %s7518_s4 = int_to_ptr.vmem [resolvable:$true] %s165_s4 }
  0x6c   :  { %s6863_s27 = scalar_lea.hbm %s8428_s9, 16 }
  0x6d   :  { %p6864_p4 = scmp.ne.s32.totalorder %s8428_s9, %s6863_s27  ;;  %p6867_p5 = scmp.lt.u32.totalorder %s6863_s27, %s8428_s9 }
  0x6f   :  { %p6869_p6 = pnand %p6867_p5, %p6864_p4 }
  0x71   :  { %6872 = shalt.err (!%p6869_p6)
}
  0x72   :  { %s6873_s7 = scalar_lea.vmem %s147_s6, 16  ;;  %s6877_s22 = scalar_lea.vmem %s147_s6, 32 }
  0x73   :  { %p6874_p7 = scmp.ne.s32.totalorder %s147_s6, %s6873_s7  ;;  %p6878_p8 = scmp.lt.s32.totalorder %s147_s6, %s147_s6 }
  0x74   :  { %p6879_p9 = scmp.lt.s32.totalorder %s6877_s22, %s6873_s7 }
  0x76   :  { %p6880_p10 = por %p6879_p9, %p6878_p8 }
  0x78   :  { %p6881_p11 = pnand %p6880_p10, %p6874_p7 }
  0x7a   :  { %6884 = shalt.err (!%p6881_p11)
}
  0x7b   :  { %149 = dma.hbm_to_vmem [thread:$0]  %s8428_s9, 16, %s147_s6, [#allocation18]  }
  0x7c   :  { %s6885_s21 = scalar_lea.hbm %s8430_s11, 2816 }
  0x7d   :  { %p6886_p12 = scmp.ne.s32.totalorder %s8430_s11, %s6885_s21  ;;  %p6889_p13 = scmp.lt.u32.totalorder %s6885_s21, %s8430_s11 }
  0x7f   :  { %p6891_p0 = pnand %p6889_p13, %p6886_p12 }
  0x81   :  { %6894 = shalt.err (!%p6891_p0)
}
  0x82   :  { %s6895_s20 = scalar_lea.vmem %s7518_s4, 2816  ;;  %p6900_p2 = scmp.lt.s32.totalorder %s7518_s4, %s7518_s4 }
  0x83   :  { %p6896_p1 = scmp.ne.s32.totalorder %s7518_s4, %s6895_s20  ;;  %p6901_p3 = scmp.lt.s32.totalorder %s6895_s20, %s6895_s20 }
  0x85   :  { %p6902_p4 = por %p6901_p3, %p6900_p2 }
  0x87   :  { %p6903_p5 = pnand %p6902_p4, %p6896_p1 }
  0x89   :  { %6906 = shalt.err (!%p6903_p5)
}
  0x8a   :  { %171 = dma.hbm_to_vmem [thread:$0]  %s8430_s11, 2816, %s7518_s4, [#allocation21], %s8470_s28, %s8470_s28, %s8469_s23  }
  0x8b   :  { %s7317_s26 = smov [#allocation23]   ;;  %s7318_s0 = smov [#allocation26]  }
  0x8c   :  { %s189_s3 = sshll.u32 %s7317_s26, 4  ;;  %s214_s7 = sshll.u32 %s7318_s0, 4  ;;  %s190_s3 = int_to_ptr.vmem [resolvable:$true] %s189_s3  ;;  %s215_s7 = int_to_ptr.vmem [resolvable:$true] %s214_s7 }
  0x8d   :  { %s6907_s5 = scalar_lea.hbm %s8432_s13, 22528 }
  0x8e   :  { %p6908_p6 = scmp.ne.s32.totalorder %s8432_s13, %s6907_s5  ;;  %p6911_p7 = scmp.lt.u32.totalorder %s6907_s5, %s8432_s13 }
  0x90   :  { %p6913_p8 = pnand %p6911_p7, %p6908_p6 }
  0x92   :  { %6916 = shalt.err (!%p6913_p8)
}
  0x93   :  { %s6917_s11 = scalar_lea.vmem %s190_s3, 22528  ;;  %p6922_p10 = scmp.lt.s32.totalorder %s190_s3, %s190_s3 }
  0x94   :  { %p6918_p9 = scmp.ne.s32.totalorder %s190_s3, %s6917_s11  ;;  %p6923_p11 = scmp.lt.s32.totalorder %s6917_s11, %s6917_s11 }
  0x96   :  { %p6924_p12 = por %p6923_p11, %p6922_p10 }
  0x98   :  { %p6925_p13 = pnand %p6924_p12, %p6918_p9 }
  0x9a   :  { %6928 = shalt.err (!%p6925_p13)
}
  0x9b   :  { %s7319_s4 = smov 256   ;;  %s7320_s2 = smov 16  }
  0x9c   :  { %195 = dma.hbm_to_vmem [thread:$0]  %s8432_s13, 22528, %s190_s3, [#allocation24], %s7319_s4, %s7319_s4, %s7320_s2  }
  0x9d   :  { %s6929_s6 = scalar_lea.hbm %s8434_s15, 32 }
  0x9e   :  { %p6930_p0 = scmp.ne.s32.totalorder %s8434_s15, %s6929_s6  ;;  %p6933_p1 = scmp.lt.u32.totalorder %s6929_s6, %s8434_s15 }
  0xa0   :  { %p6935_p2 = pnand %p6933_p1, %p6930_p0 }
  0xa2   :  { %6938 = shalt.err (!%p6935_p2)
}
  0xa3   :  { %s6939_s5 = scalar_lea.vmem %s215_s7, 32  ;;  %p6944_p4 = scmp.lt.s32.totalorder %s215_s7, %s215_s7 }
  0xa4   :  { %p6940_p3 = scmp.ne.s32.totalorder %s215_s7, %s6939_s5  ;;  %p6945_p5 = scmp.lt.s32.totalorder %s6939_s5, %s6939_s5 }
  0xa6   :  { %p6946_p6 = por %p6945_p5, %p6944_p4 }
  0xa8   :  { %p6947_p7 = pnand %p6946_p6, %p6940_p3 }
  0xaa   :  { %6950 = shalt.err (!%p6947_p7)
}
  0xab   :  { %217 = dma.hbm_to_vmem [thread:$0]  %s8434_s15, 32, %s215_s7, [#allocation27]  }
  0xac   :  { %s7321_s30 = smov [#allocation29]   ;;  %s7322_s21 = smov [#allocation32]  }
  0xad   :  { %s235_s24 = sshll.u32 %s7321_s30, 4  ;;  %s257_s29 = sshll.u32 %s7322_s21, 4  ;;  %s236_s24 = int_to_ptr.vmem [resolvable:$true] %s235_s24  ;;  %s7579_s29 = int_to_ptr.vmem [resolvable:$true] %s257_s29 }
  0xae   :  { %s6951_s27 = scalar_lea.hbm %s8436_s17, 3072 }
  0xaf   :  { %p6952_p8 = scmp.ne.s32.totalorder %s8436_s17, %s6951_s27  ;;  %p6955_p9 = scmp.lt.u32.totalorder %s6951_s27, %s8436_s17 }
  0xb1   :  { %p6957_p10 = pnand %p6955_p9, %p6952_p8 }
  0xb3   :  { %6960 = shalt.err (!%p6957_p10)
}
  0xb4   :  { %s6961_s15 = scalar_lea.vmem %s236_s24, 3072  ;;  %p6966_p12 = scmp.lt.s32.totalorder %s236_s24, %s236_s24 }
  0xb5   :  { %p6962_p11 = scmp.ne.s32.totalorder %s236_s24, %s6961_s15  ;;  %p6967_p13 = scmp.lt.s32.totalorder %s6961_s15, %s6961_s15 }
  0xb7   :  { %p6968_p0 = por %p6967_p13, %p6966_p12 }
  0xb9   :  { %p6969_p1 = pnand %p6968_p0, %p6962_p11 }
  0xbb   :  { %6972 = shalt.err (!%p6969_p1)
}
  0xbc   :  { %241 = dma.hbm_to_vmem [thread:$0]  %s8436_s17, 3072, %s236_s24, [#allocation30], %s8470_s28, %s8470_s28, %s8469_s23  }
  0xbd   :  { %s6973_s5 = scalar_lea.hbm %s8438_s19, 9216 }
  0xbe   :  { %p6974_p2 = scmp.ne.s32.totalorder %s8438_s19, %s6973_s5  ;;  %p6977_p3 = scmp.lt.u32.totalorder %s6973_s5, %s8438_s19 }
  0xc0   :  { %p6979_p4 = pnand %p6977_p3, %p6974_p2 }
  0xc2   :  { %6982 = shalt.err (!%p6979_p4)
}
  0xc3   :  { %s6983_s11 = scalar_lea.vmem %s7579_s29, 9216  ;;  %p6988_p6 = scmp.lt.s32.totalorder %s7579_s29, %s7579_s29 }
  0xc4   :  { %p6984_p5 = scmp.ne.s32.totalorder %s7579_s29, %s6983_s11  ;;  %p6989_p7 = scmp.lt.s32.totalorder %s6983_s11, %s6983_s11 }
  0xc6   :  { %p6990_p8 = por %p6989_p7, %p6988_p6 }
  0xc8   :  { %p6991_p9 = pnand %p6990_p8, %p6984_p5 }
  0xca   :  { %6994 = shalt.err (!%p6991_p9)
}
  0xcb   :  { %263 = dma.hbm_to_vmem [thread:$0]  %s8438_s19, 9216, %s7579_s29, [#allocation33], %s8470_s28, %s8470_s28, %s8469_s23  }
  0xcc   :  { %s7323_s25 = smov [#allocation2]   ;;  %s7324_s20 = smov [#allocation7]  }
  0xcd   :  { %s46_s27 = sshll.u32 %s7323_s25, 4  ;;  %s68_s9 = sshll.u32 %s7324_s20, 4  ;;  %s47_s27 = int_to_ptr.vmem [resolvable:$true] %s46_s27  ;;  %s69_s9 = int_to_ptr.vmem [resolvable:$true] %s68_s9 }
  0xce   :  { %s8471_s15 = sld [smem:[#allocation51_spill]] }
  0xd4   :  { %s6995_s7 = scalar_lea.hbm %s8471_s15, 32 }
  0xd5   :  { %p6996_p10 = scmp.ne.s32.totalorder %s8471_s15, %s6995_s7  ;;  %p6999_p11 = scmp.lt.u32.totalorder %s6995_s7, %s8471_s15 }
  0xd7   :  { %p7001_p12 = pnand %p6999_p11, %p6996_p10 }
  0xd9   :  { %7004 = shalt.err (!%p7001_p12)
}
  0xda   :  { %s7005_s19 = scalar_lea.vmem %s47_s27, 32  ;;  %p7010_p0 = scmp.lt.s32.totalorder %s47_s27, %s47_s27 }
  0xdb   :  { %p7006_p13 = scmp.ne.s32.totalorder %s47_s27, %s7005_s19  ;;  %p7011_p1 = scmp.lt.s32.totalorder %s7005_s19, %s7005_s19 }
  0xdd   :  { %p7012_p2 = por %p7011_p1, %p7010_p0 }
  0xdf   :  { %p7013_p3 = pnand %p7012_p2, %p7006_p13 }
  0xe1   :  { %7016 = shalt.err (!%p7013_p3)
}
  0xe2   :  { %49 = dma.hbm_to_vmem [thread:$0]  %s8471_s15, 32, %s47_s27, [#allocation3]  }
  0xe3   :  { %s8472_s21 = sld [smem:[#allocation53_spill]] }
  0xe9   :  { %s7017_s11 = scalar_lea.hbm %s8472_s21, 16 }
  0xea   :  { %p7018_p4 = scmp.ne.s32.totalorder %s8472_s21, %s7017_s11  ;;  %p7021_p5 = scmp.lt.u32.totalorder %s7017_s11, %s8472_s21 }
  0xec   :  { %p7023_p6 = pnand %p7021_p5, %p7018_p4 }
  0xee   :  { %7026 = shalt.err (!%p7023_p6)
}
  0xef   :  { %s7027_s6 = scalar_lea.vmem %s69_s9, 16  ;;  %s7031_s26 = scalar_lea.vmem %s69_s9, 32 }
  0xf0   :  { %p7028_p7 = scmp.ne.s32.totalorder %s69_s9, %s7027_s6  ;;  %p7032_p8 = scmp.lt.s32.totalorder %s69_s9, %s69_s9 }
  0xf1   :  { %p7033_p9 = scmp.lt.s32.totalorder %s7031_s26, %s7027_s6 }
  0xf3   :  { %p7034_p10 = por %p7033_p9, %p7032_p8 }
  0xf5   :  { %p7035_p11 = pnand %p7034_p10, %p7028_p7 }
  0xf7   :  { %7038 = shalt.err (!%p7035_p11)
}
  0xf8   :  { %71 = dma.hbm_to_vmem [thread:$0]  %s8472_s21, 16, %s69_s9, [#allocation6]  }
  0xf9   :  { %s7325_s7 = smov [#allocation10]   ;;  %s7326_s22 = smov [#allocation13]  }
  0xfa   :  { %s90_s0 = sshll.u32 %s7325_s7, 4  ;;  %s111_s1 = sshll.u32 %s7326_s22, 4  ;;  %s91_s0 = int_to_ptr.vmem [resolvable:$true] %s90_s0  ;;  %s7640_s1 = int_to_ptr.vmem [resolvable:$true] %s111_s1 }
  0xfb   :  { %s8473_s29 = sld [smem:[#allocation55_spill]] }
 0x101   :  { %s7039_s13 = scalar_lea.hbm %s8473_s29, 64 }
 0x102   :  { %p7040_p12 = scmp.ne.s32.totalorder %s8473_s29, %s7039_s13  ;;  %p7043_p13 = scmp.lt.u32.totalorder %s7039_s13, %s8473_s29 }
 0x104   :  { %p7045_p0 = pnand %p7043_p13, %p7040_p12 }
 0x106   :  { %7048 = shalt.err (!%p7045_p0)
}
 0x107   :  { %s7049_s9 = scalar_lea.vmem %s91_s0, 64  ;;  %p7054_p2 = scmp.lt.s32.totalorder %s91_s0, %s91_s0 }
 0x108   :  { %p7050_p1 = scmp.ne.s32.totalorder %s91_s0, %s7049_s9  ;;  %p7055_p3 = scmp.lt.s32.totalorder %s7049_s9, %s7049_s9 }
 0x10a   :  { %p7056_p4 = por %p7055_p3, %p7054_p2 }
 0x10c   :  { %p7057_p5 = pnand %p7056_p4, %p7050_p1 }
 0x10e   :  { %7060 = shalt.err (!%p7057_p5)
}
 0x10f   :  { %93 = dma.hbm_to_vmem [thread:$0]  %s8473_s29, 64, %s91_s0, [#allocation9]  }
 0x110   :  { %s8474_s6 = sld [smem:[#allocation57_spill]] }
 0x116   :  { %s7061_s26 = scalar_lea.hbm %s8474_s6, 20480 }
 0x117   :  { %p7062_p6 = scmp.ne.s32.totalorder %s8474_s6, %s7061_s26  ;;  %p7065_p7 = scmp.lt.u32.totalorder %s7061_s26, %s8474_s6 }
 0x119   :  { %p7067_p8 = pnand %p7065_p7, %p7062_p6 }
 0x11b   :  { %7070 = shalt.err (!%p7067_p8)
}
 0x11c   :  { %s7071_s5 = scalar_lea.vmem %s7640_s1, 20480  ;;  %p7076_p10 = scmp.lt.s32.totalorder %s7640_s1, %s7640_s1 }
 0x11d   :  { %p7072_p9 = scmp.ne.s32.totalorder %s7640_s1, %s7071_s5  ;;  %p7077_p11 = scmp.lt.s32.totalorder %s7071_s5, %s7071_s5 }
 0x11f   :  { %p7078_p12 = por %p7077_p11, %p7076_p10 }
 0x121   :  { %p7079_p13 = pnand %p7078_p12, %p7072_p9 }
 0x123   :  { %7082 = shalt.err (!%p7079_p13)
}
 0x124   :  { %117 = dma.hbm_to_vmem [thread:$0]  %s8474_s6, 20480, %s7640_s1, [#allocation12], %s7319_s4, %s7319_s4, %s7320_s2  }
 0x125   :  { %s7327_s29 = smov [#allocation16]   ;;  %s7328_s3 = smov [#allocation19]  }
 0x126   :  { %s136_s13 = sshll.u32 %s7327_s29, 4  ;;  %s156_s30 = sshll.u32 %s7328_s3, 4  ;;  %s137_s13 = int_to_ptr.vmem [resolvable:$true] %s136_s13  ;;  %s157_s30 = int_to_ptr.vmem [resolvable:$true] %s156_s30 }
 0x127   :  { %s7083_s9 = scalar_lea.hbm %s8427_s8, 32 }
 0x128   :  { %p7084_p0 = scmp.ne.s32.totalorder %s8427_s8, %s7083_s9  ;;  %p7087_p1 = scmp.lt.u32.totalorder %s7083_s9, %s8427_s8 }
 0x12a   :  { %p7089_p2 = pnand %p7087_p1, %p7084_p0 }
 0x12c   :  { %7092 = shalt.err (!%p7089_p2)
}
 0x12d   :  { %s7093_s1 = scalar_lea.vmem %s137_s13, 32  ;;  %p7098_p4 = scmp.lt.s32.totalorder %s137_s13, %s137_s13 }
 0x12e   :  { %p7094_p3 = scmp.ne.s32.totalorder %s137_s13, %s7093_s1  ;;  %p7099_p5 = scmp.lt.s32.totalorder %s7093_s1, %s7093_s1 }
 0x130   :  { %p7100_p6 = por %p7099_p5, %p7098_p4 }
 0x132   :  { %p7101_p7 = pnand %p7100_p6, %p7094_p3 }
 0x134   :  { %7104 = shalt.err (!%p7101_p7)
}
 0x135   :  { %139 = dma.hbm_to_vmem [thread:$0]  %s8427_s8, 32, %s137_s13, [#allocation15]  }
 0x136   :  { %s7105_s7 = scalar_lea.hbm %s8429_s10, 16 }
 0x137   :  { %p7106_p8 = scmp.ne.s32.totalorder %s8429_s10, %s7105_s7  ;;  %p7109_p9 = scmp.lt.u32.totalorder %s7105_s7, %s8429_s10 }
 0x139   :  { %p7111_p10 = pnand %p7109_p9, %p7106_p8 }
 0x13b   :  { %7114 = shalt.err (!%p7111_p10)
}
 0x13c   :  { %s7115_s29 = scalar_lea.vmem %s157_s30, 16  ;;  %s7119_s3 = scalar_lea.vmem %s157_s30, 32 }
 0x13d   :  { %p7116_p11 = scmp.ne.s32.totalorder %s157_s30, %s7115_s29  ;;  %p7120_p12 = scmp.lt.s32.totalorder %s157_s30, %s157_s30 }
 0x13e   :  { %p7121_p13 = scmp.lt.s32.totalorder %s7119_s3, %s7115_s29 }
 0x140   :  { %p7122_p0 = por %p7121_p13, %p7120_p12 }
 0x142   :  { %p7123_p1 = pnand %p7122_p0, %p7116_p11 }
 0x144   :  { %7126 = shalt.err (!%p7123_p1)
}
 0x145   :  { %159 = dma.hbm_to_vmem [thread:$0]  %s8429_s10, 16, %s157_s30, [#allocation18]  }
 0x146   :  { %s7329_s11 = smov [#allocation22]   ;;  %s7330_s9 = smov [#allocation25]  }
 0x147   :  { %s177_s17 = sshll.u32 %s7329_s11, 4  ;;  %s201_s21 = sshll.u32 %s7330_s9, 4  ;;  %s178_s17 = int_to_ptr.vmem [resolvable:$true] %s177_s17  ;;  %s7698_s21 = int_to_ptr.vmem [resolvable:$true] %s201_s21 }
 0x148   :  { %s7127_s20 = scalar_lea.hbm %s8431_s12, 512 }
 0x149   :  { %p7128_p2 = scmp.ne.s32.totalorder %s8431_s12, %s7127_s20  ;;  %p7131_p3 = scmp.lt.u32.totalorder %s7127_s20, %s8431_s12 }
 0x14b   :  { %p7133_p4 = pnand %p7131_p3, %p7128_p2 }
 0x14d   :  { %7136 = shalt.err (!%p7133_p4)
}
 0x14e   :  { %s7137_s10 = scalar_lea.vmem %s178_s17, 512  ;;  %p7142_p6 = scmp.lt.s32.totalorder %s178_s17, %s178_s17 }
 0x14f   :  { %p7138_p5 = scmp.ne.s32.totalorder %s178_s17, %s7137_s10  ;;  %p7143_p7 = scmp.lt.s32.totalorder %s7137_s10, %s7137_s10 }
 0x151   :  { %p7144_p8 = por %p7143_p7, %p7142_p6 }
 0x153   :  { %p7145_p9 = pnand %p7144_p8, %p7138_p5 }
 0x155   :  { %7148 = shalt.err (!%p7145_p9)
}
 0x156   :  { %183 = dma.hbm_to_vmem [thread:$0]  %s8431_s12, 512, %s178_s17, [#allocation21], %s7319_s4, %s7319_s4, %s7320_s2  }
 0x157   :  { %s7149_s5 = scalar_lea.hbm %s8433_s14, 3072 }
 0x158   :  { %p7150_p10 = scmp.ne.s32.totalorder %s8433_s14, %s7149_s5  ;;  %p7153_p11 = scmp.lt.u32.totalorder %s7149_s5, %s8433_s14 }
 0x15a   :  { %p7155_p12 = pnand %p7153_p11, %p7150_p10 }
 0x15c   :  { %7158 = shalt.err (!%p7155_p12)
}
 0x15d   :  { %s7159_s8 = scalar_lea.vmem %s7698_s21, 3072  ;;  %p7164_p0 = scmp.lt.s32.totalorder %s7698_s21, %s7698_s21 }
 0x15e   :  { %p7160_p13 = scmp.ne.s32.totalorder %s7698_s21, %s7159_s8  ;;  %p7165_p1 = scmp.lt.s32.totalorder %s7159_s8, %s7159_s8 }
 0x160   :  { %p7166_p2 = por %p7165_p1, %p7164_p0 }
 0x162   :  { %p7167_p3 = pnand %p7166_p2, %p7160_p13 }
 0x164   :  { %7170 = shalt.err (!%p7167_p3)
}
 0x165   :  { %207 = dma.hbm_to_vmem [thread:$0]  %s8433_s14, 3072, %s7698_s21, [#allocation24], %s8470_s28, %s8470_s28, %s8469_s23  }
 0x166   :  { %s7331_s11 = smov [#allocation28]   ;;  %s7332_s9 = smov [#allocation31]  }
 0x167   :  { %s223_s17 = sshll.u32 %s7331_s11, 4  ;;  %s248_s24 = sshll.u32 %s7332_s9, 4  ;;  %s224_s17 = int_to_ptr.vmem [resolvable:$true] %s223_s17  ;;  %s249_s24 = int_to_ptr.vmem [resolvable:$true] %s248_s24 }
 0x168   :  { %s7171_s1 = scalar_lea.hbm %s8435_s16, 12288 }
 0x169   :  { %p7172_p4 = scmp.ne.s32.totalorder %s8435_s16, %s7171_s1  ;;  %p7175_p5 = scmp.lt.u32.totalorder %s7171_s1, %s8435_s16 }
 0x16b   :  { %p7177_p6 = pnand %p7175_p5, %p7172_p4 }
 0x16d   :  { %7180 = shalt.err (!%p7177_p6)
}
 0x16e   :  { %s7181_s14 = scalar_lea.vmem %s224_s17, 12288  ;;  %p7186_p8 = scmp.lt.s32.totalorder %s224_s17, %s224_s17 }
 0x16f   :  { %p7182_p7 = scmp.ne.s32.totalorder %s224_s17, %s7181_s14  ;;  %p7187_p9 = scmp.lt.s32.totalorder %s7181_s14, %s7181_s14 }
 0x171   :  { %p7188_p10 = por %p7187_p9, %p7186_p8 }
 0x173   :  { %p7189_p11 = pnand %p7188_p10, %p7182_p7 }
 0x175   :  { %7192 = shalt.err (!%p7189_p11)
}
 0x176   :  { %229 = dma.hbm_to_vmem [thread:$0]  %s8435_s16, 12288, %s224_s17, [#allocation27], %s7319_s4, %s7319_s4, %s7320_s2  }
 0x177   :  { %s7193_s22 = scalar_lea.hbm %s8437_s18, 32 }
 0x178   :  { %p7194_p12 = scmp.ne.s32.totalorder %s8437_s18, %s7193_s22  ;;  %p7197_p13 = scmp.lt.u32.totalorder %s7193_s22, %s8437_s18 }
 0x17a   :  { %p7199_p0 = pnand %p7197_p13, %p7194_p12 }
 0x17c   :  { %7202 = shalt.err (!%p7199_p0)
}
 0x17d   :  { %s7203_s3 = scalar_lea.vmem %s249_s24, 32  ;;  %p7208_p2 = scmp.lt.s32.totalorder %s249_s24, %s249_s24 }
 0x17e   :  { %p7204_p1 = scmp.ne.s32.totalorder %s249_s24, %s7203_s3  ;;  %p7209_p3 = scmp.lt.s32.totalorder %s7203_s3, %s7203_s3 }
 0x180   :  { %p7210_p4 = por %p7209_p3, %p7208_p2 }
 0x182   :  { %p7211_p5 = pnand %p7210_p4, %p7204_p1 }
 0x184   :  { %7214 = shalt.err (!%p7211_p5)
}
 0x185   :  { %251 = dma.hbm_to_vmem [thread:$0]  %s8437_s18, 32, %s249_s24, [#allocation30]  }
 0x186   :  { %s7333_s2 = smov [#allocation34]   ;;  %s7334_s12 = smov [#allocation35]  }
 0x187   :  { %s269_s8 = sshll.u32 %s7333_s2, 4  ;;  %s282_s13 = sshll.u32 %s7334_s12, 4  ;;  %s270_s8 = int_to_ptr.vmem [resolvable:$true] %s269_s8  ;;  %s283_s13 = int_to_ptr.vmem [resolvable:$true] %s282_s13 }
 0x188   :  { %s8475_s9 = sld [smem:[#allocation58_spill]] }
 0x18e   :  { %s7215_s25 = scalar_lea.hbm %s8475_s9, 4608 }
 0x18f   :  { %p7216_p6 = scmp.ne.s32.totalorder %s8475_s9, %s7215_s25  ;;  %p7219_p7 = scmp.lt.u32.totalorder %s7215_s25, %s8475_s9 }
 0x191   :  { %p7221_p8 = pnand %p7219_p7, %p7216_p6 }
 0x193   :  { %7224 = shalt.err (!%p7221_p8)
}
 0x194   :  { %s7225_s18 = scalar_lea.vmem %s270_s8, 4608  ;;  %p7230_p10 = scmp.lt.s32.totalorder %s270_s8, %s270_s8 }
 0x195   :  { %p7226_p9 = scmp.ne.s32.totalorder %s270_s8, %s7225_s18  ;;  %p7231_p11 = scmp.lt.s32.totalorder %s7225_s18, %s7225_s18 }
 0x197   :  { %p7232_p12 = por %p7231_p11, %p7230_p10 }
 0x199   :  { %p7233_p13 = pnand %p7232_p12, %p7226_p9 }
 0x19b   :  { %7236 = shalt.err (!%p7233_p13)
}
 0x19c   :  { %275 = dma.hbm_to_vmem [thread:$0]  %s8475_s9, 4608, %s270_s8, [#allocation33], %s8470_s28, %s8470_s28, %s8469_s23  }
 0x19d   :  { %s8476_s21 = sld [smem:[#allocation59_spill]] }
 0x1a3   :  { %s7237_s30 = scalar_lea.hbm %s8476_s21, 16 }
 0x1a4   :  { %p7238_p0 = scmp.ne.s32.totalorder %s8476_s21, %s7237_s30  ;;  %p7241_p1 = scmp.lt.u32.totalorder %s7237_s30, %s8476_s21 }
 0x1a6   :  { %p7243_p2 = pnand %p7241_p1, %p7238_p0 }
 0x1a8   :  { %7246 = shalt.err (!%p7243_p2)
}
 0x1a9   :  { %s7247_s0 = scalar_lea.vmem %s283_s13, 16  ;;  %s7251_s19 = scalar_lea.vmem %s283_s13, 32 }
 0x1aa   :  { %p7248_p3 = scmp.ne.s32.totalorder %s283_s13, %s7247_s0  ;;  %p7252_p4 = scmp.lt.s32.totalorder %s283_s13, %s283_s13 }
 0x1ab   :  { %p7253_p5 = scmp.lt.s32.totalorder %s7251_s19, %s7247_s0 }
 0x1ad   :  { %p7254_p6 = por %p7253_p5, %p7252_p4 }
 0x1af   :  { %p7255_p7 = pnand %p7254_p6, %p7248_p3 }
 0x1b1   :  { %7258 = shalt.err (!%p7255_p7)
}
 0x1b2   :  { %285 = dma.hbm_to_vmem [thread:$0]  %s8476_s21, 16, %s283_s13, [#allocation36]  }
 0x1b3   :  { %7281 = dma.done.wait [#allocation3], 32  }
 0x1b4   :  { %7282 = vsyncadd [#allocation3], 4294967264 }
 0x1b5   :  { %7283 = dma.done.wait [#allocation6], 272  }
 0x1b6   :  { %7284 = vsyncadd [#allocation6], 4294967024 }
 0x1b7   :  { %7285 = dma.done.wait [#allocation9], 8256  }
 0x1b8   :  { %7286 = vsyncadd [#allocation9], 4294959040 }
 0x1b9   :  { %7287 = dma.done.wait [#allocation12], 20992  }
 0x1ba   :  { %7288 = vsyncadd [#allocation12], 4294946304 }
 0x1bb   :  { %7289 = dma.done.wait [#allocation15], 1952  }
 0x1bc   :  { %7290 = vsyncadd [#allocation15], 4294965344 }
 0x1bd   :  { %7291 = dma.done.wait [#allocation18], 32  }
 0x1be   :  { %7292 = vsyncadd [#allocation18], 4294967264 }
 0x1bf   :  { %7293 = dma.done.wait [#allocation21], 3328  }
 0x1c0   :  { %7294 = vsyncadd [#allocation21], 4294963968 }
 0x1c1   :  { %7295 = dma.done.wait [#allocation24], 25600  }
 0x1c2   :  { %7296 = vsyncadd [#allocation24], 4294941696 }
 0x1c3   :  { %7297 = dma.done.wait [#allocation27], 12320  }
 0x1c4   :  { %7298 = vsyncadd [#allocation27], 4294954976 }
 0x1c5   :  { %7299 = dma.done.wait [#allocation30], 3104  }
 0x1c6   :  { %7300 = vsyncadd [#allocation30], 4294964192 }
 0x1c7   :  { %7301 = dma.done.wait [#allocation33], 13824  }
 0x1c8   :  { %7302 = vsyncadd [#allocation33], 4294953472 }
 0x1c9   :  { %7303 = dma.done.wait [#allocation36], 16  }
 0x1ca   :  { %7304 = vsyncadd [#allocation36], 4294967280  ;;  %v7335_v0 = vmov 0.0|0.0   ;;  %vm7336_vm0 = vmmov 0   ;;  %v7337_v1 = vmov 0.0   ;;  %v353_v2 = vld [vmem:[#allocation5] sm:$0xff] }
 0x1cb   :  { %5810 = vmatprep.subr.bf16.mxu0 %v7335_v0  ;;  %5661 = vmatprep.mubr.msk.f32.mxu0 %vm7336_vm0, %v7337_v1  ;;  %v354_v3 = vld [vmem:[#allocation5 + $0x8] sm:$0xff]  ;;  %v352_v5 = vld [vmem:[#allocation2] sm:$0x3]  ;;  %v437_v11 = vld [vmem:[#allocation8] sm:$0xff]  ;;  %vm362_vm1 = vcmask 130048   ;;  %vm676_vm2 = vcmask 1041408  }
 0x1cc   :  { %587 = vmatprep.mubr.f32.mxu1 %v7337_v1  ;;  %v5811_v4 = vpack.c.bf16 %v354_v3, %v353_v2  ;;  %v438_v6 = vld [vmem:[#allocation8 + $0x8] sm:$0xff]  ;;  %v440_v8 = vld [vmem:[#allocation8 + $0x18] sm:$0xff]  ;;  %v441_v12 = vld [vmem:[#allocation8 + $0x20] sm:$0xff]  ;;  %vm672_vm3 = vcmask 15360   ;;  %vm1198_vm4 = vcmask 64512   ;;  %vm2029_vm5 = vcmask 392192  }
 0x1cd   :  { %v442_v7 = vld [vmem:[#allocation8 + $0x28] sm:$0xff]  ;;  %v444_v10 = vld [vmem:[#allocation8 + $0x38] sm:$0xff]  ;;  %v5815_v14 = vpack.c.bf16 %v441_v12, %v437_v11  ;;  %v439_v15 = vld [vmem:[#allocation8 + $0x10] sm:$0xff]  ;;  %vm2020_vm6 = vcmask 1045504   ;;  %vm2033_vm7 = vcmask 390144   ;;  %vm2716_vm8 = vcmask 179200  }
 0x1ce   :  { %v5813_v9 = vpack.c.bf16 %v442_v7, %v438_v6  ;;  %5812 = vmatpush3.bf16.msra.mxu0 %v5811_v4  ;;  %v5845_v13 = vpack.c.bf16 %v444_v10, %v440_v8  ;;  %v443_v16 = vld [vmem:[#allocation8 + $0x30] sm:$0xff]  ;;  %v446_v17 = vld [vmem:[#allocation8 + $0x48] sm:$0xff]  ;;  %v448_v20 = vld [vmem:[#allocation8 + $0x58] sm:$0xff]  ;;  %vm3619_vm9 = vcmask 523264   ;;  %vm4644_vm10 = vcmask 785408   ;;  %s7338_s16 = smov [#allocation37]  }
 0x1cf   :  { %v5847_v18 = vpack.c.bf16 %v443_v16, %v439_v15  ;;  %v450_v19 = vld [vmem:[#allocation8 + $0x68] sm:$0xff]  ;;  %v452_v21 = vld [vmem:[#allocation8 + $0x78] sm:$0xff]  ;;  %v445_v24 = vld [vmem:[#allocation8 + $0x40] sm:$0xff]  ;;  %s5351_s4 = sshll.u32 %s7338_s16, 4  ;;  %s5352_s4 = int_to_ptr.vmem [resolvable:$true] %s5351_s4 }
 0x1d0   :  { %5814 = vmatprep.subr.bf16.mxu1 %v5813_v9  ;;  %5846 = vmatprep.subr.bf16.mxu0 %v5845_v13  ;;  %v5817_v22 = vpack.c.bf16 %v450_v19, %v446_v17  ;;  %v5849_v23 = vpack.c.bf16 %v452_v21, %v448_v20  ;;  %v449_v25 = vld [vmem:[#allocation8 + $0x60] sm:$0xff]  ;;  %v447_v26 = vld [vmem:[#allocation8 + $0x50] sm:$0xff]  ;;  %v454_v29 = vld [vmem:[#allocation8 + $0x88] sm:$0xff]  ;;  %s7259_s2 = scalar_lea.vmem %s5352_s4, 1536  ;;  %p7264_p9 = scmp.lt.s32.totalorder %s5352_s4, %s5352_s4 }
 0x1d1   :  { %5816 = vmatpush1.bf16.msra.mxu1 %v5815_v14  ;;  %5662 = vmatmul.mubr.msk.f32.vlgmr.msra.gmra.mrb[0].mxu0 %vm362_vm1, %v352_v5  ;;  %v5819_v27 = vpack.c.bf16 %v449_v25, %v445_v24  ;;  %v451_v28 = vld [vmem:[#allocation8 + $0x70] sm:$0xff]  ;;  %v458_v30 = vld [vmem:[#allocation8 + $0xa8] sm:$0xff]  ;;  %v456_v33 = vld [vmem:[#allocation8 + $0x98] sm:$0xff]  ;;  %p7260_p8 = scmp.ne.s32.totalorder %s5352_s4, %s7259_s2  ;;  %p7265_p10 = scmp.lt.s32.totalorder %s7259_s2, %s7259_s2 }
 0x1d2   :  { %5848 = vmatpush1.bf16.msra.mxu0 %v5847_v18  ;;  %5818 = vmatprep.subr.bf16.mxu1 %v5817_v22  ;;  %v5851_v31 = vpack.c.bf16 %v451_v28, %v447_v26  ;;  %v5821_v32 = vpack.c.bf16 %v458_v30, %v454_v29  ;;  %v460_v34 = vld [vmem:[#allocation8 + $0xb8] sm:$0xff]  ;;  %v453_v35 = vld [vmem:[#allocation8 + $0x80] sm:$0xff]  ;;  %v455_v38 = vld [vmem:[#allocation8 + $0x90] sm:$0xff] }
 0x1d3   :  { %5850 = vmatprep.subr.bf16.mxu0 %v5849_v23  ;;  %v5853_v36 = vpack.c.bf16 %v460_v34, %v456_v33  ;;  %v457_v37 = vld [vmem:[#allocation8 + $0xa0] sm:$0xff]  ;;  %v459_v39 = vld [vmem:[#allocation8 + $0xb0] sm:$0xff]  ;;  %658 = vmatprep.mubr.f32.mxu0 %v7337_v1  ;;  %v462_v41 = vld [vmem:[#allocation8 + $0xc8] sm:$0xff]  ;;  %p7266_p11 = por %p7265_p10, %p7264_p9 }
 0x1d4   :  { %v5823_v40 = vpack.c.bf16 %v457_v37, %v453_v35  ;;  %v466_v42 = vld [vmem:[#allocation8 + $0xe8] sm:$0xff]  ;;  %v464_v43 = vld [vmem:[#allocation8 + $0xd8] sm:$0xff]  ;;  %v461_v46 = vld [vmem:[#allocation8 + $0xc0] sm:$0xff]  ;;  %v5855_v48 = vpack.c.bf16 %v459_v39, %v455_v38 }
 0x1d5   :  { %5820 = vmatpush1.bf16.msra.mxu1 %v5819_v27  ;;  %v5825_v44 = vpack.c.bf16 %v466_v42, %v462_v41  ;;  %v468_v45 = vld [vmem:[#allocation8 + $0xf8] sm:$0xff]  ;;  %v465_v47 = vld [vmem:[#allocation8 + $0xe0] sm:$0xff]  ;;  %v470_v49 = vld [vmem:[#allocation8 + $0x108] sm:$0xff]  ;;  %p7267_p12 = pnand %p7266_p11, %p7260_p8 }
 0x1d6   :  { %5822 = vmatprep.subr.bf16.mxu1 %v5821_v32  ;;  %5852 = vmatpush1.bf16.msra.mxu0 %v5851_v31  ;;  %v5857_v50 = vpack.c.bf16 %v468_v45, %v464_v43  ;;  %v463_v51 = vld [vmem:[#allocation8 + $0xd0] sm:$0xff]  ;;  %v474_v53 = vld [vmem:[#allocation8 + $0x128] sm:$0xff]  ;;  %v5827_v54 = vpack.c.bf16 %v465_v47, %v461_v46  ;;  %v472_v55 = vld [vmem:[#allocation8 + $0x118] sm:$0xff] }
 0x1d7   :  { %5854 = vmatprep.subr.bf16.mxu0 %v5853_v36  ;;  %v467_v52 = vld [vmem:[#allocation8 + $0xf0] sm:$0xff]  ;;  %v476_v56 = vld [vmem:[#allocation8 + $0x138] sm:$0xff]  ;;  %v5829_v57 = vpack.c.bf16 %v474_v53, %v470_v49  ;;  %v469_v58 = vld [vmem:[#allocation8 + $0x100] sm:$0xff] }
 0x1d8   :  { %v473_v59 = vld [vmem:[#allocation8 + $0x120] sm:$0xff]  ;;  %v5859_v60 = vpack.c.bf16 %v467_v52, %v463_v51  ;;  %v478_v61 = vld [vmem:[#allocation8 + $0x148] sm:$0xff]  ;;  %v5861_v63 = vpack.c.bf16 %v476_v56, %v472_v55  ;;  %v471_v2 = vld [vmem:[#allocation8 + $0x110] sm:$0xff] }
 0x1d9   :  { %5824 = vmatpush1.bf16.msra.mxu1 %v5823_v40  ;;  %v482_v62 = vld [vmem:[#allocation8 + $0x168] sm:$0xff]  ;;  %v475_v3 = vld [vmem:[#allocation8 + $0x130] sm:$0xff]  ;;  %v5831_v4 = vpack.c.bf16 %v473_v59, %v469_v58  ;;  %v480_v5 = vld [vmem:[#allocation8 + $0x158] sm:$0xff] }
 0x1da   :  { %5826 = vmatprep.subr.bf16.mxu1 %v5825_v44  ;;  %5856 = vmatpush1.bf16.msra.mxu0 %v5855_v48  ;;  %v484_v6 = vld [vmem:[#allocation8 + $0x178] sm:$0xff]  ;;  %v5833_v7 = vpack.c.bf16 %v482_v62, %v478_v61  ;;  %v477_v8 = vld [vmem:[#allocation8 + $0x140] sm:$0xff]  ;;  %v5863_v10 = vpack.c.bf16 %v475_v3, %v471_v2  ;;  %v486_v11 = vld [vmem:[#allocation8 + $0x188] sm:$0xff] }
 0x1db   :  { %5858 = vmatprep.subr.bf16.mxu0 %v5857_v50  ;;  %v481_v9 = vld [vmem:[#allocation8 + $0x160] sm:$0xff]  ;;  %v490_v12 = vld [vmem:[#allocation8 + $0x1a8] sm:$0xff]  ;;  %v5865_v13 = vpack.c.bf16 %v484_v6, %v480_v5  ;;  %v479_v14 = vld [vmem:[#allocation8 + $0x150] sm:$0xff] }
 0x1dc   :  { %v483_v15 = vld [vmem:[#allocation8 + $0x170] sm:$0xff]  ;;  %v5835_v16 = vpack.c.bf16 %v481_v9, %v477_v8  ;;  %v488_v17 = vld [vmem:[#allocation8 + $0x198] sm:$0xff]  ;;  %v5837_v19 = vpack.c.bf16 %v490_v12, %v486_v11  ;;  %v485_v20 = vld [vmem:[#allocation8 + $0x180] sm:$0xff] }
 0x1dd   :  { %5828 = vmatpush1.bf16.msra.mxu1 %v5827_v54  ;;  %v492_v18 = vld [vmem:[#allocation8 + $0x1b8] sm:$0xff]  ;;  %v489_v21 = vld [vmem:[#allocation8 + $0x1a0] sm:$0xff]  ;;  %v5867_v22 = vpack.c.bf16 %v483_v15, %v479_v14  ;;  %v487_v24 = vld [vmem:[#allocation8 + $0x190] sm:$0xff] }
 0x1de   :  { %5830 = vmatprep.subr.bf16.mxu1 %v5829_v57  ;;  %5860 = vmatpush1.bf16.msra.mxu0 %v5859_v60  ;;  %v5869_v23 = vpack.c.bf16 %v492_v18, %v488_v17  ;;  %v491_v25 = vld [vmem:[#allocation8 + $0x1b0] sm:$0xff]  ;;  %v5839_v26 = vpack.c.bf16 %v489_v21, %v485_v20  ;;  %v494_v28 = vld [vmem:[#allocation8 + $0x1c8] sm:$0xff]  ;;  %v496_v30 = vld [vmem:[#allocation8 + $0x1d8] sm:$0xff] }
 0x1df   :  { %5862 = vmatprep.subr.bf16.mxu0 %v5861_v63  ;;  %v5871_v27 = vpack.c.bf16 %v491_v25, %v487_v24  ;;  %v498_v29 = vld [vmem:[#allocation8 + $0x1e8] sm:$0xff]  ;;  %v500_v32 = vld [vmem:[#allocation8 + $0x1f8] sm:$0xff]  ;;  %v493_v33 = vld [vmem:[#allocation8 + $0x1c0] sm:$0xff] }
 0x1e0   :  { %v5841_v31 = vpack.c.bf16 %v498_v29, %v494_v28  ;;  %v497_v34 = vld [vmem:[#allocation8 + $0x1e0] sm:$0xff]  ;;  %v5873_v35 = vpack.c.bf16 %v500_v32, %v496_v30  ;;  %v495_v37 = vld [vmem:[#allocation8 + $0x1d0] sm:$0xff]  ;;  %v5374_v40 = vld [vmem:[#allocation7] ss:$0 sm:$0xff] }
 0x1e1   :  { %5832 = vmatpush1.bf16.msra.mxu1 %v5831_v4  ;;  %v5843_v36 = vpack.c.bf16 %v497_v34, %v493_v33  ;;  %v499_v38 = vld [vmem:[#allocation8 + $0x1f0] sm:$0xff]  ;;  %v990_v46 = vld [vmem:[#allocation13 + $0x18] sm:$0xff]  ;;  %v987_v48 = vld [vmem:[#allocation13] sm:$0xff] }
 0x1e2   :  { %5834 = vmatprep.subr.bf16.mxu1 %v5833_v7  ;;  %5864 = vmatpush1.bf16.msra.mxu0 %v5863_v10  ;;  %v5875_v39 = vpack.c.bf16 %v499_v38, %v495_v37  ;;  %v988_v45 = vld [vmem:[#allocation13 + $0x8] sm:$0xff]  ;;  %v989_v49 = vld [vmem:[#allocation13 + $0x10] sm:$0xff]  ;;  %v994_v52 = vld [vmem:[#allocation13 + $0x38] sm:$0xff] }
 0x1e3   :  { %5866 = vmatprep.subr.bf16.mxu0 %v5865_v13  ;;  %v5877_v47 = vpack.c.bf16 %v990_v46, %v988_v45  ;;  %v5879_v50 = vpack.c.bf16 %v989_v49, %v987_v48  ;;  %v992_v51 = vld [vmem:[#allocation13 + $0x28] sm:$0xff]  ;;  %v991_v54 = vld [vmem:[#allocation13 + $0x20] sm:$0xff]  ;;  %v993_v55 = vld [vmem:[#allocation13 + $0x30] sm:$0xff] }
 0x1e4   :  { %v5881_v53 = vpack.c.bf16 %v994_v52, %v992_v51  ;;  %v5883_v56 = vpack.c.bf16 %v993_v55, %v991_v54  ;;  %v996_v57 = vld [vmem:[#allocation13 + $0x48] sm:$0xff]  ;;  %v998_v58 = vld [vmem:[#allocation13 + $0x58] sm:$0xff]  ;;  %v995_v60 = vld [vmem:[#allocation13 + $0x40] sm:$0xff] }
 0x1e5   :  { %5836 = vmatpush1.bf16.msra.mxu1 %v5835_v16  ;;  %v5885_v59 = vpack.c.bf16 %v998_v58, %v996_v57  ;;  %v997_v61 = vld [vmem:[#allocation13 + $0x50] sm:$0xff]  ;;  %v1000_v63 = vld [vmem:[#allocation13 + $0x68] sm:$0xff]  ;;  %v1002_v2 = vld [vmem:[#allocation13 + $0x78] sm:$0xff] }
 0x1e6   :  { %5838 = vmatprep.subr.bf16.mxu1 %v5837_v19  ;;  %5868 = vmatpush1.bf16.msra.mxu0 %v5867_v22  ;;  %v5887_v62 = vpack.c.bf16 %v997_v61, %v995_v60  ;;  %v5889_v3 = vpack.c.bf16 %v1002_v2, %v1000_v63  ;;  %v999_v4 = vld [vmem:[#allocation13 + $0x60] sm:$0xff]  ;;  %v1001_v5 = vld [vmem:[#allocation13 + $0x70] sm:$0xff]  ;;  %v1004_v7 = vld [vmem:[#allocation13 + $0x88] sm:$0xff] }
 0x1e7   :  { %5870 = vmatprep.subr.bf16.mxu0 %v5869_v23  ;;  %v5891_v6 = vpack.c.bf16 %v1001_v5, %v999_v4  ;;  %v1006_v8 = vld [vmem:[#allocation13 + $0x98] sm:$0xff]  ;;  %v1003_v10 = vld [vmem:[#allocation13 + $0x80] sm:$0xff]  ;;  %v1005_v11 = vld [vmem:[#allocation13 + $0x90] sm:$0xff] }
 0x1e8   :  { %v5893_v9 = vpack.c.bf16 %v1006_v8, %v1004_v7  ;;  %v5895_v12 = vpack.c.bf16 %v1005_v11, %v1003_v10  ;;  %v1008_v13 = vld [vmem:[#allocation13 + $0xa8] sm:$0xff]  ;;  %v1010_v14 = vld [vmem:[#allocation13 + $0xb8] sm:$0xff]  ;;  %v1007_v16 = vld [vmem:[#allocation13 + $0xa0] sm:$0xff] }
 0x1e9   :  { %5840 = vmatpush1.bf16.msra.mxu1 %v5839_v26  ;;  %v5897_v15 = vpack.c.bf16 %v1010_v14, %v1008_v13  ;;  %v1009_v17 = vld [vmem:[#allocation13 + $0xb0] sm:$0xff]  ;;  %v1012_v19 = vld [vmem:[#allocation13 + $0xc8] sm:$0xff]  ;;  %v1014_v20 = vld [vmem:[#allocation13 + $0xd8] sm:$0xff] }
 0x1ea   :  { %5872 = vmatpush1.bf16.msra.mxu0 %v5871_v27  ;;  %5842 = vmatprep.subr.bf16.mxu1 %v5841_v31  ;;  %v5899_v18 = vpack.c.bf16 %v1009_v17, %v1007_v16  ;;  %v5901_v21 = vpack.c.bf16 %v1014_v20, %v1012_v19  ;;  %v1011_v22 = vld [vmem:[#allocation13 + $0xc0] sm:$0xff]  ;;  %v1013_v23 = vld [vmem:[#allocation13 + $0xd0] sm:$0xff]  ;;  %v1016_v25 = vld [vmem:[#allocation13 + $0xe8] sm:$0xff]  ;;  %v503_v31 = vlaneseq }
 0x1eb   :  { %5874 = vmatprep.subr.bf16.mxu0 %v5873_v35  ;;  %v5903_v24 = vpack.c.bf16 %v1013_v23, %v1011_v22  ;;  %v1018_v26 = vld [vmem:[#allocation13 + $0xf8] sm:$0xff]  ;;  %v1015_v28 = vld [vmem:[#allocation13 + $0xe0] sm:$0xff]  ;;  %v1017_v29 = vld [vmem:[#allocation13 + $0xf0] sm:$0xff] }
 0x1ec   :  { %v5905_v27 = vpack.c.bf16 %v1018_v26, %v1016_v25  ;;  %v5907_v30 = vpack.c.bf16 %v1017_v29, %v1015_v28  ;;  %v504_v32 = vshrl.u32 %v503_v31, 7  ;;  %v501_v35 = vld [vmem:[#allocation10] sm:$0xf]  ;;  %v671_v46 = vld [vmem:[#allocation11 + $0x8] sm:$0xff]  ;;  %v669_v51 = vld [vmem:[#allocation11] sm:$0xff] }
 0x1ed   :  { %5844 = vmatpush1.bf16.msra.mxu1 %v5843_v36  ;;  %v1096_v55 = vld [vmem:[#allocation13 + $0x108] sm:$0xff]  ;;  %v827_v57 = vld [vmem:[#allocation11 + $0x10] sm:$0xff]  ;;  %v1095_v60 = vld [vmem:[#allocation13 + $0x100] sm:$0xff] }
 0x1ee   :  { %5876 = vmatpush1.bf16.msra.mxu0 %v5875_v39  ;;  %5664 = vmatprep.subr.mxu1 %v7337_v1  ;;  %v7799_v33 = vsub.s32 0, %v504_v32  ;;  %v7801_v34 = vsub.s32 1, %v504_v32  ;;  %v1097_v61 = vld [vmem:[#allocation13 + $0x110] sm:$0xff]  ;;  %v1102_v63 = vld [vmem:[#allocation13 + $0x138] sm:$0xff]  ;;  %v1099_v5 = vld [vmem:[#allocation13 + $0x120] sm:$0xff] }
 0x1ef   :  { %5878 = vmatprep.subr.bf16.mxu0 %v5877_v47  ;;  %v906_v2 = vld [vmem:[#allocation11 + $0x18] sm:$0xff]  ;;  %v1104_v7 = vld [vmem:[#allocation13 + $0x148] sm:$0xff]  ;;  %v1103_v11 = vld [vmem:[#allocation13 + $0x140] sm:$0xff] }
 0x1f0   :  { %v506_v36 = vrot.slane %v501_v35, %v7799_v33  ;;  %v510_v37 = vrot.slane %v501_v35, %v7801_v34  ;;  %v1106_v8 = vld [vmem:[#allocation13 + $0x158] sm:$0xff]  ;;  %v1108_v13 = vld [vmem:[#allocation13 + $0x168] sm:$0xff]  ;;  %v1107_v17 = vld [vmem:[#allocation13 + $0x160] sm:$0xff] }
 0x1f1   :  { %v5917_v10 = vpack.c.bf16 %v1106_v8, %v1104_v7  ;;  %v1110_v14 = vld [vmem:[#allocation13 + $0x178] sm:$0xff]  ;;  %v1112_v19 = vld [vmem:[#allocation13 + $0x188] sm:$0xff]  ;;  %v1111_v23 = vld [vmem:[#allocation13 + $0x180] sm:$0xff] }
 0x1f2   :  { %v5921_v16 = vpack.c.bf16 %v1110_v14, %v1108_v13  ;;  %v1114_v20 = vld [vmem:[#allocation13 + $0x198] sm:$0xff]  ;;  %v1116_v25 = vld [vmem:[#allocation13 + $0x1a8] sm:$0xff]  ;;  %v1115_v29 = vld [vmem:[#allocation13 + $0x1a0] sm:$0xff] }
 0x1f3   :  { %v5925_v22 = vpack.c.bf16 %v1114_v20, %v1112_v19  ;;  %v1118_v26 = vld [vmem:[#allocation13 + $0x1b8] sm:$0xff]  ;;  %v1120_v31 = vld [vmem:[#allocation13 + $0x1c8] sm:$0xff]  ;;  %v1400_v7 = vld [vmem:[#allocation13 + $0x260] sm:$0xff] }
 0x1f4   :  { %v5929_v28 = vpack.c.bf16 %v1118_v26, %v1116_v25  ;;  %v1402_v8 = vld [vmem:[#allocation13 + $0x270] sm:$0xff]  ;;  %v1404_v13 = vld [vmem:[#allocation13 + $0x280] sm:$0xff] }
 0x1f5   :  { %v1406_v14 = vld [vmem:[#allocation13 + $0x290] sm:$0xff]  ;;  %v1408_v19 = vld [vmem:[#allocation13 + $0x2a0] sm:$0xff] }
 0x1f6   :  { %v1410_v20 = vld [vmem:[#allocation13 + $0x2b0] sm:$0xff]  ;;  %v1412_v25 = vld [vmem:[#allocation13 + $0x2c0] sm:$0xff] }
 0x1f7   :  { %v1414_v26 = vld [vmem:[#allocation13 + $0x2d0] sm:$0xff] }
 0x2a4   :  { %v432_v41 = vpop.f32.mrb[0].mxu0 }
 0x2a5   :  { %v433_v42 = vadd.f32 %v5374_v40, %v432_v41  ;;  %v5663_v43 = vpop.f32.mrb[1].mxu0 }
 0x2a6   :  { %v513_v43 = vsub.s32 2, %v504_v32 }
 0x2a7   :  { %v436_v44 = vmax.f32 %v433_v42, 0.0 }
 0x2a8   :  { %v514_v48 = vrot.slane %v501_v35, %v513_v43  ;;  %v1123_v43 = vld [vmem:[#allocation13 + $0x1e0] sm:$0xff] }
 0x2a9   :  { %588 = vmatmul.mubr.f32.vlgmr.msra.gmra.mrb[0].mxu1 %v436_v44  ;;  %659 = vmatmul.mubr.f32.vlgmr.msra.gmra.mrb[2].mxu0 %v436_v44 }
 0x2aa   :  { %5666 = vmatprep.mubr.msk.f32.mxu1 %vm7336_vm0, %v7337_v1  ;;  %1083 = vmatprep.mubr.f32.mxu0 %v7337_v1 }
 0x2ab   :  { %5880 = vmatpush1.bf16.msra.mxu0 %v5879_v50  ;;  %v517_v50 = vsub.s32 3, %v504_v32  ;;  %v1122_v32 = vld [vmem:[#allocation13 + $0x1d8] sm:$0xff] }
 0x2ac   :  { %5882 = vmatprep.subr.bf16.mxu0 %v5881_v53 }
 0x2ad   :  { %v518_v53 = vrot.slane %v501_v35, %v517_v50  ;;  %v1390_v50 = vld [vmem:[#allocation13 + $0x210] sm:$0xff] }
 0x2af   :  { %5884 = vmatpush1.bf16.msra.mxu0 %v5883_v56  ;;  %v1098_v56 = vld [vmem:[#allocation13 + $0x118] sm:$0xff] }
 0x2b0   :  { %5886 = vmatprep.subr.bf16.mxu0 %v5885_v59  ;;  %v5909_v58 = vpack.c.bf16 %v1098_v56, %v1096_v55  ;;  %v1392_v55 = vld [vmem:[#allocation13 + $0x220] sm:$0xff]  ;;  %v1394_v56 = vld [vmem:[#allocation13 + $0x230] sm:$0xff] }
 0x2b3   :  { %5888 = vmatpush1.bf16.msra.mxu0 %v5887_v62  ;;  %v1100_v62 = vld [vmem:[#allocation13 + $0x128] sm:$0xff] }
 0x2b4   :  { %5890 = vmatprep.subr.bf16.mxu0 %v5889_v3  ;;  %v5911_v3 = vpack.c.bf16 %v1097_v61, %v1095_v60  ;;  %v5913_v4 = vpack.c.bf16 %v1102_v63, %v1100_v62  ;;  %v5947_v61 = vpack.c.bf16 %v1394_v56, %v1392_v55  ;;  %v1396_v63 = vld [vmem:[#allocation13 + $0x240] sm:$0xff] }
 0x2b7   :  { %5892 = vmatpush1.bf16.msra.mxu0 %v5891_v6  ;;  %v1101_v6 = vld [vmem:[#allocation13 + $0x130] sm:$0xff] }
 0x2b8   :  { %5894 = vmatprep.subr.bf16.mxu0 %v5893_v9  ;;  %v5915_v9 = vpack.c.bf16 %v1101_v6, %v1099_v5 }
 0x2bb   :  { %5896 = vmatpush1.bf16.msra.mxu0 %v5895_v12  ;;  %v1105_v12 = vld [vmem:[#allocation13 + $0x150] sm:$0xff] }
 0x2bc   :  { %5898 = vmatprep.subr.bf16.mxu0 %v5897_v15  ;;  %v5919_v15 = vpack.c.bf16 %v1105_v12, %v1103_v11  ;;  %v5955_v11 = vpack.c.bf16 %v1402_v8, %v1400_v7  ;;  %v1820_v8 = vld [vmem:[#allocation13 + $0x4a0] sm:$0xff] }
 0x2bf   :  { %5900 = vmatpush1.bf16.msra.mxu0 %v5899_v18  ;;  %v1109_v18 = vld [vmem:[#allocation13 + $0x170] sm:$0xff] }
 0x2c0   :  { %5902 = vmatprep.subr.bf16.mxu0 %v5901_v21  ;;  %v5923_v21 = vpack.c.bf16 %v1109_v18, %v1107_v17  ;;  %v5959_v17 = vpack.c.bf16 %v1406_v14, %v1404_v13  ;;  %v1824_v14 = vld [vmem:[#allocation13 + $0x4c0] sm:$0xff] }
 0x2c3   :  { %5904 = vmatpush1.bf16.msra.mxu0 %v5903_v24  ;;  %v1113_v24 = vld [vmem:[#allocation13 + $0x190] sm:$0xff] }
 0x2c4   :  { %5906 = vmatprep.subr.bf16.mxu0 %v5905_v27  ;;  %v5927_v27 = vpack.c.bf16 %v1113_v24, %v1111_v23  ;;  %v5963_v23 = vpack.c.bf16 %v1410_v20, %v1408_v19  ;;  %v1828_v20 = vld [vmem:[#allocation13 + $0x4e0] sm:$0xff] }
 0x2c7   :  { %5908 = vmatpush1.bf16.msra.mxu0 %v5907_v30  ;;  %v1117_v30 = vld [vmem:[#allocation13 + $0x1b0] sm:$0xff] }
 0x2c8   :  { %v5931_v35 = vpack.c.bf16 %v1117_v30, %v1115_v29  ;;  %v5967_v29 = vpack.c.bf16 %v1414_v26, %v1412_v25 }
 0x37c   :  { %v589_v38 = vpop.f32.mrb[0].mxu1  ;;  %v660_v39 = vpop.f32.mrb[2].mxu0 }
 0x37d   :  { %v591_v40 = vpop.f32.mrb[1].mxu1  ;;  %v662_v41 = vpop.f32.mrb[3].mxu0  ;;  %v590_v42 = vadd.f32 %v589_v38, %v506_v36  ;;  %v661_v49 = vadd.f32 %v660_v39, %v514_v48  ;;  %v5933_v36 = vpack.c.bf16 %v1122_v32, %v1120_v31  ;;  %v1121_v38 = vld [vmem:[#allocation13 + $0x1d0] sm:$0xff]  ;;  %v1124_v39 = vld [vmem:[#allocation13 + $0x1e8] sm:$0xff]  ;;  %v1416_v31 = vld [vmem:[#allocation13 + $0x2e0] sm:$0xff] }
 0x37e   :  { %v592_v44 = vadd.f32 %v591_v40, %v510_v37  ;;  %v663_v54 = vadd.f32 %v662_v41, %v518_v53  ;;  %v1119_v37 = vld [vmem:[#allocation13 + $0x1c0] sm:$0xff]  ;;  %v1126_v40 = vld [vmem:[#allocation13 + $0x1f8] sm:$0xff]  ;;  %v1418_v32 = vld [vmem:[#allocation13 + $0x2f0] sm:$0xff] }
 0x37f   :  { %v665_v47 = vmax.f32 %v590_v42, 0.0  ;;  %v667_v52 = vmax.f32 %v661_v49, 0.0  ;;  %v5935_v41 = vpack.c.bf16 %v1121_v38, %v1119_v37  ;;  %v5937_v42 = vpack.c.bf16 %v1126_v40, %v1124_v39  ;;  %v1388_v49 = vld [vmem:[#allocation13 + $0x200] sm:$0xff]  ;;  %v1802_v40 = vld [vmem:[#allocation13 + $0x410] sm:$0xff] }
 0x380   :  { %v666_v45 = vmax.f32 %v592_v44, 0.0  ;;  %v668_v59 = vmax.f32 %v663_v54, 0.0  ;;  %v1125_v44 = vld [vmem:[#allocation13 + $0x1f0] sm:$0xff]  ;;  %v5943_v53 = vpack.c.bf16 %v1390_v50, %v1388_v49  ;;  %v5971_v37 = vpack.c.bf16 %v1418_v32, %v1416_v31  ;;  %v1800_v39 = vld [vmem:[#allocation13 + $0x400] sm:$0xff]  ;;  %v985_v31 = vld [vmem:[#allocation14 + $0x8] sm:$0xff] }
 0x381   :  { %v986_v32 = vld [vmem:[#allocation14 + $0x10] sm:$0x3f] }
 0x382   :  { %5665 = vmatpush3.msk.msra.mxu1 %vm676_vm2, %v666_v45  ;;  %v5939_v45 = vpack.c.bf16 %v1125_v44, %v1123_v43  ;;  %v6007_v43 = vpack.c.bf16 %v1802_v40, %v1800_v39  ;;  %v1599_v39 = vld [vmem:[#allocation13 + $0x328] sm:$0xff]  ;;  %v1601_v40 = vld [vmem:[#allocation13 + $0x338] sm:$0xff] }
 0x383   :  { %5667 = vmatmul.mubr.msk.f32.vlgmr.msra.gmra.mrb[2].mxu1 %vm672_vm3, %v671_v46  ;;  %5669 = vmatprep.subr.mxu1 %v7337_v1  ;;  %v1389_v46 = vld [vmem:[#allocation13 + $0x208] sm:$0xff] }
 0x384   :  { %5670 = vmatpush3.msk.msra.mxu1 %vm676_vm2, %v665_v47  ;;  %5671 = vmatprep.mubr.msk.f32.mxu1 %vm7336_vm0, %v7337_v1  ;;  %v1391_v47 = vld [vmem:[#allocation13 + $0x218] sm:$0xff] }
 0x385   :  { %5674 = vmatprep.subr.mxu1 %v7337_v1  ;;  %v5941_v48 = vpack.c.bf16 %v1391_v47, %v1389_v46  ;;  %v1806_v46 = vld [vmem:[#allocation13 + $0x430] sm:$0xff]  ;;  %v1809_v47 = vld [vmem:[#allocation13 + $0x448] sm:$0xff] }
 0x38b   :  { %5672 = vmatmul.mubr.msk.f32.vlgmr.msra.gmra.mrb[2].mxu1 %vm672_vm3, %v669_v51  ;;  %v1393_v51 = vld [vmem:[#allocation13 + $0x228] sm:$0xff] }
 0x38c   :  { %5675 = vmatpush3.msk.msra.mxu1 %vm676_vm2, %v667_v52  ;;  %5676 = vmatprep.mubr.msk.f32.mxu1 %vm7336_vm0, %v7337_v1  ;;  %v1395_v52 = vld [vmem:[#allocation13 + $0x238] sm:$0xff] }
 0x38d   :  { %5679 = vmatprep.subr.mxu1 %v7337_v1  ;;  %v5945_v54 = vpack.c.bf16 %v1395_v52, %v1393_v51  ;;  %v1808_v51 = vld [vmem:[#allocation13 + $0x440] sm:$0xff]  ;;  %v1810_v52 = vld [vmem:[#allocation13 + $0x450] sm:$0xff] }
 0x38e   :  { %v6015_v55 = vpack.c.bf16 %v1810_v52, %v1808_v51  ;;  %v1385_v52 = vld [vmem:[#allocation14 + $0x38] sm:$0xff] }
 0x393   :  { %5677 = vmatmul.mubr.msk.f32.vlgmr.msra.gmra.mrb[2].mxu1 %vm672_vm3, %v827_v57 }
 0x394   :  { %5680 = vmatpush3.msk.msra.mxu1 %vm676_vm2, %v668_v59  ;;  %5681 = vmatprep.mubr.msk.f32.mxu1 %vm7336_vm0, %v7337_v1  ;;  %v1399_v59 = vld [vmem:[#allocation13 + $0x258] sm:$0xff] }
 0x395   :  { %5910 = vmatprep.subr.bf16.mxu1 %v5909_v58  ;;  %v1397_v58 = vld [vmem:[#allocation13 + $0x248] sm:$0xff] }
 0x396   :  { %v5949_v62 = vpack.c.bf16 %v1399_v59, %v1397_v58  ;;  %v1812_v58 = vld [vmem:[#allocation13 + $0x460] sm:$0xff]  ;;  %v1814_v59 = vld [vmem:[#allocation13 + $0x470] sm:$0xff] }
 0x39b   :  { %5682 = vmatmul.mubr.msk.f32.vlgmr.msra.gmra.mrb[2].mxu1 %vm672_vm3, %v906_v2  ;;  %v1398_v2 = vld [vmem:[#allocation13 + $0x250] sm:$0xff] }
 0x39c   :  { %5912 = vmatpush1.bf16.msra.mxu1 %v5911_v3  ;;  %1191 = vmatprep.mubr.f32.mxu1 %v7337_v1  ;;  %v1401_v3 = vld [vmem:[#allocation13 + $0x268] sm:$0xff]  ;;  %v5951_v5 = vpack.c.bf16 %v1398_v2, %v1396_v63  ;;  %v1816_v2 = vld [vmem:[#allocation13 + $0x480] sm:$0xff] }
 0x39d   :  { %5914 = vmatprep.subr.bf16.mxu1 %v5913_v4  ;;  %v1403_v4 = vld [vmem:[#allocation13 + $0x278] sm:$0xff] }
 0x39e   :  { %v5953_v6 = vpack.c.bf16 %v1403_v4, %v1401_v3  ;;  %v1818_v3 = vld [vmem:[#allocation13 + $0x490] sm:$0xff]  ;;  %v1821_v4 = vld [vmem:[#allocation13 + $0x4a8] sm:$0xff] }
 0x3a0   :  { %5916 = vmatpush1.bf16.msra.mxu1 %v5915_v9  ;;  %v1405_v9 = vld [vmem:[#allocation13 + $0x288] sm:$0xff] }
 0x3a1   :  { %5918 = vmatprep.subr.bf16.mxu1 %v5917_v10  ;;  %v1407_v10 = vld [vmem:[#allocation13 + $0x298] sm:$0xff] }
 0x3a2   :  { %v5957_v12 = vpack.c.bf16 %v1407_v10, %v1405_v9  ;;  %v1822_v9 = vld [vmem:[#allocation13 + $0x4b0] sm:$0xff]  ;;  %v1825_v10 = vld [vmem:[#allocation13 + $0x4c8] sm:$0xff] }
 0x3a4   :  { %5920 = vmatpush1.bf16.msra.mxu1 %v5919_v15  ;;  %v1409_v15 = vld [vmem:[#allocation13 + $0x2a8] sm:$0xff] }
 0x3a5   :  { %5922 = vmatprep.subr.bf16.mxu1 %v5921_v16  ;;  %v1411_v16 = vld [vmem:[#allocation13 + $0x2b8] sm:$0xff] }
 0x3a6   :  { %v5961_v18 = vpack.c.bf16 %v1411_v16, %v1409_v15  ;;  %v1826_v15 = vld [vmem:[#allocation13 + $0x4d0] sm:$0xff]  ;;  %v1829_v16 = vld [vmem:[#allocation13 + $0x4e8] sm:$0xff] }
 0x3a8   :  { %5924 = vmatpush1.bf16.msra.mxu1 %v5923_v21  ;;  %v1413_v21 = vld [vmem:[#allocation13 + $0x2c8] sm:$0xff] }
 0x3a9   :  { %5926 = vmatprep.subr.bf16.mxu1 %v5925_v22  ;;  %v1415_v22 = vld [vmem:[#allocation13 + $0x2d8] sm:$0xff] }
 0x3aa   :  { %v5965_v24 = vpack.c.bf16 %v1415_v22, %v1413_v21  ;;  %v1830_v21 = vld [vmem:[#allocation13 + $0x4f0] sm:$0xff] }
 0x3ab   :  { %v6035_v22 = vpack.c.bf16 %v1830_v21, %v1828_v20  ;;  %v1623_v20 = vld [vmem:[#allocation13 + $0x3e8] sm:$0xff]  ;;  %v1625_v21 = vld [vmem:[#allocation13 + $0x3f8] sm:$0xff] }
 0x3ac   :  { %5928 = vmatpush1.bf16.msra.mxu1 %v5927_v27  ;;  %v1417_v27 = vld [vmem:[#allocation13 + $0x2e8] sm:$0xff] }
 0x3ad   :  { %5930 = vmatprep.subr.bf16.mxu1 %v5929_v28  ;;  %v1419_v28 = vld [vmem:[#allocation13 + $0x2f8] sm:$0xff] }
 0x3ae   :  { %v5969_v30 = vpack.c.bf16 %v1419_v28, %v1417_v27  ;;  %v1091_v27 = vld [vmem:[#allocation14 + $0x18] sm:$0xff]  ;;  %v1092_v28 = vld [vmem:[#allocation14 + $0x20] sm:$0xff] }
 0x3b0   :  { %5932 = vmatpush1.bf16.msra.mxu1 %v5931_v35  ;;  %v1801_v35 = vld [vmem:[#allocation13 + $0x408] sm:$0xff] }
 0x3b1   :  { %5934 = vmatprep.subr.bf16.mxu1 %v5933_v36  ;;  %v1803_v36 = vld [vmem:[#allocation13 + $0x418] sm:$0xff] }
 0x3b2   :  { %v6005_v38 = vpack.c.bf16 %v1803_v36, %v1801_v35  ;;  %v1595_v35 = vld [vmem:[#allocation13 + $0x308] sm:$0xff]  ;;  %v1597_v36 = vld [vmem:[#allocation13 + $0x318] sm:$0xff] }
 0x3b4   :  { %5936 = vmatpush1.bf16.msra.mxu1 %v5935_v41  ;;  %v1805_v41 = vld [vmem:[#allocation13 + $0x428] sm:$0xff] }
 0x3b5   :  { %5938 = vmatprep.subr.bf16.mxu1 %v5937_v42  ;;  %v1807_v42 = vld [vmem:[#allocation13 + $0x438] sm:$0xff] }
 0x3b6   :  { %v6009_v44 = vpack.c.bf16 %v1807_v42, %v1805_v41  ;;  %v5973_v42 = vpack.c.bf16 %v1597_v36, %v1595_v35  ;;  %v2045_v35 = vld [vmem:[#allocation20 + $0x18] sm:$0xff] }
 0x3b8   :  { %5940 = vmatpush1.bf16.msra.mxu1 %v5939_v45  ;;  %v1804_v45 = vld [vmem:[#allocation13 + $0x420] sm:$0xff] }
 0x3b9   :  { %5942 = vmatprep.subr.bf16.mxu1 %v5941_v48  ;;  %v1811_v48 = vld [vmem:[#allocation13 + $0x458] sm:$0xff]  ;;  %v6011_v49 = vpack.c.bf16 %v1806_v46, %v1804_v45  ;;  %v5977_v46 = vpack.c.bf16 %v1601_v40, %v1599_v39  ;;  %v2048_v40 = vld [vmem:[#allocation20 + $0x30] sm:$0xff] }
 0x3ba   :  { %v6013_v50 = vpack.c.bf16 %v1811_v48, %v1809_v47  ;;  %v1598_v47 = vld [vmem:[#allocation13 + $0x320] sm:$0xff]  ;;  %v1600_v48 = vld [vmem:[#allocation13 + $0x330] sm:$0xff] }
 0x3bb   :  { %v5979_v51 = vpack.c.bf16 %v1600_v48, %v1598_v47  ;;  %v1796_v47 = vld [vmem:[#allocation14 + $0x60] sm:$0xff]  ;;  %v1797_v48 = vld [vmem:[#allocation14 + $0x68] sm:$0xff] }
 0x46e   :  { %v7823_v57 = vpop.f32.mrb[2].mxu1 }
 0x46f   :  { %v5683_v60 = vpop.f32.mrb[3].mxu1  ;;  %1084 = vmatmul.mubr.f32.vlgmr.msra.gmra.mrb[4].mxu0 %v7823_v57  ;;  %1192 = vmatmul.mubr.f32.vlgmr.msra.gmra.mrb[4].mxu1 %v7823_v57 }
 0x470   :  { %5944 = vmatpush1.bf16.msra.mxu1 %v5943_v53  ;;  %1484 = vmatprep.mubr.f32.mxu1 %v7337_v1  ;;  %v1813_v53 = vld [vmem:[#allocation13 + $0x468] sm:$0xff] }
 0x471   :  { %5946 = vmatprep.subr.bf16.mxu1 %v5945_v54  ;;  %1272 = vmatprep.mubr.f32.mxu0 %v7337_v1  ;;  %v1815_v54 = vld [vmem:[#allocation13 + $0x478] sm:$0xff]  ;;  %v1817_v60 = vld [vmem:[#allocation13 + $0x488] sm:$0xff] }
 0x472   :  { %v6017_v56 = vpack.c.bf16 %v1815_v54, %v1813_v53  ;;  %v1602_v54 = vld [vmem:[#allocation13 + $0x340] sm:$0xff] }
 0x474   :  { %5948 = vmatpush1.bf16.msra.mxu1 %v5947_v61  ;;  %v1819_v61 = vld [vmem:[#allocation13 + $0x498] sm:$0xff] }
 0x475   :  { %5950 = vmatprep.subr.bf16.mxu1 %v5949_v62  ;;  %v6019_v62 = vpack.c.bf16 %v1814_v59, %v1812_v58  ;;  %v6021_v63 = vpack.c.bf16 %v1819_v61, %v1817_v60  ;;  %v1609_v58 = vld [vmem:[#allocation13 + $0x378] sm:$0xff]  ;;  %v1386_v60 = vld [vmem:[#allocation14 + $0x40] sm:$0x3f] }
 0x478   :  { %5952 = vmatpush1.bf16.msra.mxu1 %v5951_v5  ;;  %v1823_v5 = vld [vmem:[#allocation13 + $0x4b8] sm:$0xff] }
 0x479   :  { %5954 = vmatprep.subr.bf16.mxu1 %v5953_v6  ;;  %v6023_v6 = vpack.c.bf16 %v1818_v3, %v1816_v2  ;;  %v6025_v7 = vpack.c.bf16 %v1823_v5, %v1821_v4  ;;  %v1611_v2 = vld [vmem:[#allocation13 + $0x388] sm:$0xff]  ;;  %v1613_v3 = vld [vmem:[#allocation13 + $0x398] sm:$0xff] }
 0x47a   :  { %v5989_v5 = vpack.c.bf16 %v1613_v3, %v1611_v2  ;;  %v2059_v2 = vld [vmem:[#allocation20 + $0x88] sm:$0xff] }
 0x47c   :  { %5956 = vmatpush1.bf16.msra.mxu1 %v5955_v11  ;;  %v1827_v11 = vld [vmem:[#allocation13 + $0x4d8] sm:$0xff] }
 0x47d   :  { %5958 = vmatprep.subr.bf16.mxu1 %v5957_v12  ;;  %v6027_v12 = vpack.c.bf16 %v1822_v9, %v1820_v8  ;;  %v6029_v13 = vpack.c.bf16 %v1827_v11, %v1825_v10  ;;  %v1615_v8 = vld [vmem:[#allocation13 + $0x3a8] sm:$0xff]  ;;  %v1617_v9 = vld [vmem:[#allocation13 + $0x3b8] sm:$0xff] }
 0x47e   :  { %v5993_v11 = vpack.c.bf16 %v1617_v9, %v1615_v8  ;;  %v2063_v8 = vld [vmem:[#allocation20 + $0xa8] sm:$0xff] }
 0x480   :  { %5960 = vmatpush1.bf16.msra.mxu1 %v5959_v17  ;;  %v1831_v17 = vld [vmem:[#allocation13 + $0x4f8] sm:$0xff] }
 0x481   :  { %5962 = vmatprep.subr.bf16.mxu1 %v5961_v18  ;;  %v6031_v18 = vpack.c.bf16 %v1826_v15, %v1824_v14  ;;  %v6033_v19 = vpack.c.bf16 %v1831_v17, %v1829_v16  ;;  %v1619_v14 = vld [vmem:[#allocation13 + $0x3c8] sm:$0xff]  ;;  %v1621_v15 = vld [vmem:[#allocation13 + $0x3d8] sm:$0xff] }
 0x482   :  { %v5997_v17 = vpack.c.bf16 %v1621_v15, %v1619_v14 }
 0x484   :  { %5964 = vmatpush1.bf16.msra.mxu1 %v5963_v23 }
 0x485   :  { %5966 = vmatprep.subr.bf16.mxu1 %v5965_v24 }
 0x488   :  { %5968 = vmatpush1.bf16.msra.mxu1 %v5967_v29  ;;  %v1093_v29 = vld [vmem:[#allocation14 + $0x28] sm:$0x3f] }
 0x489   :  { %5970 = vmatprep.subr.bf16.mxu1 %v5969_v30  ;;  %v984_v30 = vld [vmem:[#allocation14] sm:$0xff] }
 0x48c   :  { %5972 = vmatpush1.bf16.msra.mxu1 %v5971_v37  ;;  %v1594_v37 = vld [vmem:[#allocation13 + $0x300] sm:$0xff] }
 0x48d   :  { %6006 = vmatprep.subr.bf16.mxu1 %v6005_v38  ;;  %v1596_v38 = vld [vmem:[#allocation13 + $0x310] sm:$0xff] }
 0x48e   :  { %v5975_v45 = vpack.c.bf16 %v1596_v38, %v1594_v37  ;;  %v2046_v37 = vld [vmem:[#allocation20 + $0x20] sm:$0xff]  ;;  %v2047_v38 = vld [vmem:[#allocation20 + $0x28] sm:$0xff] }
 0x48f   :  { %1485 = vmatmul.mubr.f32.vlgmr.msra.gmra.mrb[6].mxu1 %v7823_v57  ;;  %v6044_v39 = vpack.c.bf16 %v2047_v38, %v2046_v37 }
 0x490   :  { %6008 = vmatpush1.bf16.msra.mxu1 %v6007_v43  ;;  %1896 = vmatprep.mubr.f32.mxu1 %v7337_v1 }
 0x491   :  { %6010 = vmatprep.subr.bf16.mxu1 %v6009_v44  ;;  %v1384_v44 = vld [vmem:[#allocation14 + $0x30] sm:$0xff] }
 0x494   :  { %6012 = vmatpush1.bf16.msra.mxu1 %v6011_v49  ;;  %v1603_v49 = vld [vmem:[#allocation13 + $0x348] sm:$0xff] }
 0x495   :  { %6014 = vmatprep.subr.bf16.mxu1 %v6013_v50  ;;  %v1605_v50 = vld [vmem:[#allocation13 + $0x358] sm:$0xff] }
 0x496   :  { %v5981_v53 = vpack.c.bf16 %v1605_v50, %v1603_v49  ;;  %v1798_v49 = vld [vmem:[#allocation14 + $0x70] sm:$0x3f]  ;;  %v2050_v50 = vld [vmem:[#allocation20 + $0x40] sm:$0xff] }
 0x498   :  { %6016 = vmatpush1.bf16.msra.mxu1 %v6015_v55  ;;  %v1604_v55 = vld [vmem:[#allocation13 + $0x350] sm:$0xff] }
 0x499   :  { %6018 = vmatprep.subr.bf16.mxu1 %v6017_v56  ;;  %v1607_v56 = vld [vmem:[#allocation13 + $0x368] sm:$0xff]  ;;  %v5983_v59 = vpack.c.bf16 %v1604_v55, %v1602_v54  ;;  %v2053_v54 = vld [vmem:[#allocation20 + $0x58] sm:$0xff] }
 0x49a   :  { %v5985_v61 = vpack.c.bf16 %v1609_v58, %v1607_v56  ;;  %v2054_v56 = vld [vmem:[#allocation20 + $0x60] sm:$0xff]  ;;  %v2055_v58 = vld [vmem:[#allocation20 + $0x68] sm:$0xff] }
 0x49c   :  { %6020 = vmatpush1.bf16.msra.mxu1 %v6019_v62  ;;  %v1606_v62 = vld [vmem:[#allocation13 + $0x360] sm:$0xff] }
 0x49d   :  { %6022 = vmatprep.subr.bf16.mxu1 %v6021_v63  ;;  %v1608_v63 = vld [vmem:[#allocation13 + $0x370] sm:$0xff] }
 0x49e   :  { %v5987_v4 = vpack.c.bf16 %v1608_v63, %v1606_v62  ;;  %v2058_v63 = vld [vmem:[#allocation20 + $0x80] sm:$0xff] }
 0x49f   :  { %v6062_v3 = vpack.c.bf16 %v2059_v2, %v2058_v63 }
 0x4a0   :  { %6024 = vmatpush1.bf16.msra.mxu1 %v6023_v6  ;;  %v1610_v6 = vld [vmem:[#allocation13 + $0x380] sm:$0xff] }
 0x4a1   :  { %6026 = vmatprep.subr.bf16.mxu1 %v6025_v7  ;;  %v1612_v7 = vld [vmem:[#allocation13 + $0x390] sm:$0xff] }
 0x4a2   :  { %v5991_v10 = vpack.c.bf16 %v1612_v7, %v1610_v6  ;;  %v2062_v7 = vld [vmem:[#allocation20 + $0xa0] sm:$0xff] }
 0x4a3   :  { %v6068_v9 = vpack.c.bf16 %v2063_v8, %v2062_v7 }
 0x4a4   :  { %6028 = vmatpush1.bf16.msra.mxu1 %v6027_v12  ;;  %v1614_v12 = vld [vmem:[#allocation13 + $0x3a0] sm:$0xff] }
 0x4a5   :  { %6030 = vmatprep.subr.bf16.mxu1 %v6029_v13  ;;  %v1616_v13 = vld [vmem:[#allocation13 + $0x3b0] sm:$0xff] }
 0x4a6   :  { %v5995_v16 = vpack.c.bf16 %v1616_v13, %v1614_v12 }
 0x4a8   :  { %6032 = vmatpush1.bf16.msra.mxu1 %v6031_v18  ;;  %v1618_v18 = vld [vmem:[#allocation13 + $0x3c0] sm:$0xff] }
 0x4a9   :  { %6034 = vmatprep.subr.bf16.mxu1 %v6033_v19  ;;  %v1620_v19 = vld [vmem:[#allocation13 + $0x3d0] sm:$0xff] }
 0x4ac   :  { %6036 = vmatpush1.bf16.msra.mxu1 %v6035_v22  ;;  %v5999_v22 = vpack.c.bf16 %v1620_v19, %v1618_v18 }
 0x4ad   :  { %6070 = vmatprep.subr.bf16.mxu1 %v7335_v0 }
 0x4af   :  { %1897 = vmatmul.mubr.f32.vlgmr.msra.gmra.mrb[8].mxu1 %v7823_v57 }
 0x542   :  { %v1085_v23 = vpop.f32.mrb[4].mxu0  ;;  %v1193_v24 = vpop.f32.mrb[4].mxu1 }
 0x543   :  { %v1087_v25 = vpop.f32.mrb[5].mxu0  ;;  %v1195_v26 = vpop.f32.mrb[5].mxu1 }
 0x544   :  { %1208 = vmatprep.subr.mxu0 %v1195_v26 }
 0x545   :  { %1209 = vmatpush1.msra.mxu0 %v1193_v24  ;;  %v1622_v24 = vld [vmem:[#allocation13 + $0x3e0] sm:$0xff] }
 0x546   :  { %1300 = vmatprep.subr.mxu0 %v1087_v25  ;;  %5384 = vmatmul.mubr.msk.f32.vlgmr.msra.gmra.mrb[6].mxu0 %vm1198_vm4, %v1091_v27  ;;  %v1624_v25 = vld [vmem:[#allocation13 + $0x3f0] sm:$0xff] }
 0x547   :  { %1301 = vmatpush1.msra.mxu0 %v1085_v23  ;;  %1278 = vmatprep.mubr.f32.mxu0 %v7337_v1  ;;  %v6001_v23 = vpack.c.bf16 %v1625_v21, %v1623_v20  ;;  %v6003_v26 = vpack.c.bf16 %v1624_v25, %v1622_v24 }
 0x54a   :  { %5385 = vmatmul.mubr.msk.f32.gmra.mrb[8].mxu0 %vm1198_vm4, %v1092_v28 }
 0x54b   :  { %1284 = vmatprep.mubr.f32.mxu0 %v7337_v1 }
 0x54e   :  { %5386 = vmatmul.mubr.msk.f32.gmra.mrb[10].mxu0 %vm1198_vm4, %v1093_v29  ;;  %v2042_v29 = vld [vmem:[#allocation20] sm:$0xff] }
 0x54f   :  { %1364 = vmatprep.mubr.f32.mxu0 %v7337_v1 }
 0x552   :  { %5387 = vmatmul.mubr.msk.f32.vlgmr.msra.gmra.mrb[6].mxu0 %vm1198_vm4, %v984_v30  ;;  %v2043_v30 = vld [vmem:[#allocation20 + $0x8] sm:$0xff] }
 0x553   :  { %1370 = vmatprep.mubr.f32.mxu0 %v7337_v1 }
 0x556   :  { %5388 = vmatmul.mubr.msk.f32.gmra.mrb[8].mxu0 %vm1198_vm4, %v985_v31  ;;  %v6038_v31 = vpack.c.bf16 %v2043_v30, %v2042_v29 }
 0x557   :  { %1376 = vmatprep.mubr.f32.mxu0 %v7337_v1 }
 0x558   :  { %6072 = vmatpush1.bf16.msra.mxu1 %v6038_v31 }
 0x559   :  { %6073 = vmatprep.subr.bf16.mxu1 %v7335_v0 }
 0x55a   :  { %5389 = vmatmul.mubr.msk.f32.gmra.mrb[10].mxu0 %vm1198_vm4, %v986_v32  ;;  %v2044_v32 = vld [vmem:[#allocation20 + $0x10] sm:$0xff] }
 0x55b   :  { %1564 = vmatprep.mubr.f32.mxu0 %v7337_v1  ;;  %v6041_v36 = vpack.c.bf16 %v2045_v35, %v2044_v32 }
 0x55d   :  { %6075 = vmatpush1.bf16.msra.mxu1 %v6041_v36 }
 0x55e   :  { %6076 = vmatprep.subr.bf16.mxu1 %v7335_v0 }
 0x561   :  { %6078 = vmatpush1.bf16.msra.mxu1 %v6044_v39 }
 0x562   :  { %v1486_v41 = vpop.f32.mrb[6].mxu1  ;;  %6079 = vmatprep.subr.bf16.mxu1 %v7335_v0 }
 0x563   :  { %v1488_v43 = vpop.f32.mrb[7].mxu1 }
 0x564   :  { %1500 = vmatprep.subr.mxu0 %v1488_v43 }
 0x565   :  { %1501 = vmatpush1.msra.mxu0 %v1486_v41  ;;  %v2049_v41 = vld [vmem:[#allocation20 + $0x38] sm:$0xff] }
 0x566   :  { %5974 = vmatprep.subr.bf16.mxu0 %v5973_v42  ;;  %5390 = vmatmul.mubr.msk.f32.vlgmr.msra.gmra.mrb[6].mxu0 %vm1198_vm4, %v1384_v44  ;;  %v1590_v44 = vld [vmem:[#allocation14 + $0x48] sm:$0xff] }
 0x567   :  { %5976 = vmatpush1.bf16.msra.mxu0 %v5975_v45  ;;  %1570 = vmatprep.mubr.f32.mxu0 %v7337_v1  ;;  %v1591_v45 = vld [vmem:[#allocation14 + $0x50] sm:$0xff] }
 0x568   :  { %5978 = vmatprep.subr.bf16.mxu0 %v5977_v46  ;;  %v1592_v46 = vld [vmem:[#allocation14 + $0x58] sm:$0x3f] }
 0x56a   :  { %5391 = vmatmul.mubr.msk.f32.gmra.mrb[8].mxu0 %vm1198_vm4, %v1385_v52 }
 0x56b   :  { %5980 = vmatpush1.bf16.msra.mxu0 %v5979_v51  ;;  %1576 = vmatprep.mubr.f32.mxu0 %v7337_v1  ;;  %v2051_v51 = vld [vmem:[#allocation20 + $0x48] sm:$0xff] }
 0x56c   :  { %5982 = vmatprep.subr.bf16.mxu0 %v5981_v53  ;;  %v6050_v52 = vpack.c.bf16 %v2051_v51, %v2050_v50  ;;  %v2052_v53 = vld [vmem:[#allocation20 + $0x50] sm:$0xff] }
 0x56d   :  { %v6053_v55 = vpack.c.bf16 %v2053_v54, %v2052_v53 }
 0x56e   :  { %5392 = vmatmul.mubr.msk.f32.gmra.mrb[10].mxu0 %vm1198_vm4, %v1386_v60  ;;  %v2056_v60 = vld [vmem:[#allocation20 + $0x70] sm:$0xff] }
 0x56f   :  { %5984 = vmatpush1.bf16.msra.mxu0 %v5983_v59  ;;  %1690 = vmatprep.mubr.f32.mxu0 %v7337_v1  ;;  %v6056_v59 = vpack.c.bf16 %v2055_v58, %v2054_v56 }
 0x570   :  { %5986 = vmatprep.subr.bf16.mxu0 %v5985_v61  ;;  %v2057_v61 = vld [vmem:[#allocation20 + $0x78] sm:$0xff] }
 0x571   :  { %v6059_v62 = vpack.c.bf16 %v2057_v61, %v2056_v60 }
 0x573   :  { %5988 = vmatpush1.bf16.msra.mxu0 %v5987_v4  ;;  %v2060_v4 = vld [vmem:[#allocation20 + $0x90] sm:$0xff] }
 0x574   :  { %5990 = vmatprep.subr.bf16.mxu0 %v5989_v5  ;;  %v2061_v5 = vld [vmem:[#allocation20 + $0x98] sm:$0xff] }
 0x575   :  { %v6065_v6 = vpack.c.bf16 %v2061_v5, %v2060_v4 }
 0x577   :  { %5992 = vmatpush1.bf16.msra.mxu0 %v5991_v10  ;;  %v2001_v10 = vld [vmem:[#allocation16] sm:$0x3] }
 0x578   :  { %5994 = vmatprep.subr.bf16.mxu0 %v5993_v11  ;;  %v2010_v11 = vrot.slane %v2001_v10, %v7801_v34  ;;  %v2006_v13 = vrot.slane %v2001_v10, %v7799_v33 }
 0x57b   :  { %5996 = vmatpush1.bf16.msra.mxu0 %v5995_v16 }
 0x57c   :  { %5998 = vmatprep.subr.bf16.mxu0 %v5997_v17 }
 0x57f   :  { %6000 = vmatpush1.bf16.msra.mxu0 %v5999_v22 }
 0x580   :  { %6002 = vmatprep.subr.bf16.mxu0 %v6001_v23 }
 0x582   :  { %v1898_v27 = vpop.f32.mrb[8].mxu1 }
 0x583   :  { %6004 = vmatpush1.bf16.msra.mxu0 %v6003_v26  ;;  %v1900_v28 = vpop.f32.mrb[9].mxu1 }
 0x586   :  { %1691 = vmatmul.mubr.f32.vlgmr.msra.gmra.mrb[12].mxu0 %v7823_v57  ;;  %v6047_v57 = vpack.c.bf16 %v2049_v41, %v2048_v40 }
 0x587   :  { %1770 = vmatprep.mubr.f32.mxu0 %v7337_v1 }
 0x588   :  { %6081 = vmatpush1.bf16.msra.mxu1 %v6047_v57 }
 0x589   :  { %6082 = vmatprep.subr.bf16.mxu1 %v7335_v0 }
 0x58c   :  { %6084 = vmatpush1.bf16.msra.mxu1 %v6050_v52 }
 0x58d   :  { %6085 = vmatprep.subr.bf16.mxu1 %v7335_v0 }
 0x590   :  { %6087 = vmatpush1.bf16.msra.mxu1 %v6053_v55 }
 0x591   :  { %6088 = vmatprep.subr.bf16.mxu1 %v7335_v0 }
 0x594   :  { %6090 = vmatpush1.bf16.msra.mxu1 %v6056_v59 }
 0x595   :  { %6091 = vmatprep.subr.bf16.mxu1 %v7335_v0 }
 0x598   :  { %6093 = vmatpush1.bf16.msra.mxu1 %v6059_v62 }
 0x599   :  { %6094 = vmatprep.subr.bf16.mxu1 %v7335_v0 }
 0x59c   :  { %6096 = vmatpush1.bf16.msra.mxu1 %v6062_v3 }
 0x59d   :  { %6097 = vmatprep.subr.bf16.mxu1 %v7335_v0 }
 0x5a0   :  { %6099 = vmatpush1.bf16.msra.mxu1 %v6065_v6 }
 0x5a1   :  { %6100 = vmatprep.subr.bf16.mxu1 %v7335_v0 }
 0x5a4   :  { %6102 = vmatpush1.bf16.msra.mxu1 %v6068_v9 }
 0x659   :  { %v1692_v42 = vpop.f32.mrb[12].mxu0 }
 0x65a   :  { %v1694_v43 = vpop.f32.mrb[13].mxu0 }
 0x65b   :  { %1706 = vmatprep.subr.mxu0 %v1694_v43 }
 0x65c   :  { %1707 = vmatpush1.msra.mxu0 %v1692_v42 }
 0x65d   :  { %5393 = vmatmul.mubr.msk.f32.vlgmr.msra.gmra.mrb[6].mxu0 %vm1198_vm4, %v1590_v44  ;;  %1912 = vmatprep.subr.mxu0 %v1900_v28 }
 0x65e   :  { %1913 = vmatpush1.msra.mxu0 %v1898_v27  ;;  %1776 = vmatprep.mubr.f32.mxu0 %v7337_v1 }
 0x65f   :  { %6037 = vmatprep.subr.bf16.mxu0 %v7335_v0 }
 0x661   :  { %5394 = vmatmul.mubr.msk.f32.gmra.mrb[8].mxu0 %vm1198_vm4, %v1591_v45 }
 0x662   :  { %1782 = vmatprep.mubr.f32.mxu0 %v7337_v1 }
 0x665   :  { %5395 = vmatmul.mubr.msk.f32.gmra.mrb[10].mxu0 %vm1198_vm4, %v1592_v46 }
 0x666   :  { %1976 = vmatprep.mubr.f32.mxu0 %v7337_v1 }
 0x669   :  { %5396 = vmatmul.mubr.msk.f32.vlgmr.msra.gmra.mrb[6].mxu0 %vm1198_vm4, %v1796_v47 }
 0x66a   :  { %1982 = vmatprep.mubr.f32.mxu0 %v7337_v1  ;;  %6039 = vmatpush1.bf16.msra.mxu0 %v6038_v31 }
 0x66b   :  { %6040 = vmatprep.subr.bf16.mxu0 %v7335_v0 }
 0x66d   :  { %5397 = vmatmul.mubr.msk.f32.gmra.mrb[8].mxu0 %vm1198_vm4, %v1797_v48 }
 0x66e   :  { %1988 = vmatprep.mubr.f32.mxu0 %v7337_v1  ;;  %6042 = vmatpush1.bf16.msra.mxu0 %v6041_v36 }
 0x66f   :  { %6043 = vmatprep.subr.bf16.mxu0 %v7335_v0 }
 0x671   :  { %5398 = vmatmul.mubr.msk.f32.gmra.mrb[10].mxu0 %vm1198_vm4, %v1798_v49 }
 0x672   :  { %6045 = vmatpush1.bf16.msra.mxu0 %v6044_v39 }
 0x673   :  { %6046 = vmatprep.subr.bf16.mxu0 %v7335_v0 }
 0x676   :  { %6048 = vmatpush1.bf16.msra.mxu0 %v6047_v57 }
 0x677   :  { %6049 = vmatprep.subr.bf16.mxu0 %v7335_v0 }
 0x67a   :  { %6051 = vmatpush1.bf16.msra.mxu0 %v6050_v52 }
 0x67b   :  { %6052 = vmatprep.subr.bf16.mxu0 %v7335_v0 }
 0x67e   :  { %6054 = vmatpush1.bf16.msra.mxu0 %v6053_v55 }
 0x67f   :  { %6055 = vmatprep.subr.bf16.mxu0 %v7335_v0 }
 0x682   :  { %6057 = vmatpush1.bf16.msra.mxu0 %v6056_v59 }
 0x683   :  { %6058 = vmatprep.subr.bf16.mxu0 %v7335_v0 }
 0x686   :  { %6060 = vmatpush1.bf16.msra.mxu0 %v6059_v62 }
 0x687   :  { %6061 = vmatprep.subr.bf16.mxu0 %v7335_v0 }
 0x68a   :  { %6063 = vmatpush1.bf16.msra.mxu0 %v6062_v3 }
 0x68b   :  { %6064 = vmatprep.subr.bf16.mxu0 %v7335_v0 }
 0x68e   :  { %6066 = vmatpush1.bf16.msra.mxu0 %v6065_v6 }
 0x68f   :  { %6067 = vmatprep.subr.bf16.mxu0 %v7335_v0 }
 0x692   :  { %6069 = vmatpush1.bf16.msra.mxu0 %v6068_v9 }
 0x73c   :  { %v1978_v12 = vpop.f32.mrb[6].mxu0 }
 0x73d   :  { %v1980_v14 = vpop.f32.mrb[7].mxu0  ;;  %v7889_v17 = vadd.f32 %v2006_v13, %v1978_v12  ;;  %v2250_v12 = vld [vmem:[#allocation22 + $0x18] sm:$0xff] }
 0x73e   :  { %v7887_v15 = vadd.f32 %v2010_v11, %v1980_v14 }
 0x73f   :  { %v2137_v26 = vmul.f32 %v7889_v17, %v7889_v17 }
 0x740   :  { %v1984_v16 = vpop.f32.mrb[8].mxu0  ;;  %v2138_v21 = vmul.f32 %v7887_v15, %v7887_v15  ;;  %v2030_v29 = vsel %vm2029_vm5, %v7887_v15, 0.0 }
 0x741   :  { %v7891_v18 = vadd.f32 %v2006_v13, %v1984_v16  ;;  %v1986_v19 = vpop.f32.mrb[9].mxu0  ;;  %v2249_v16 = vld [vmem:[#allocation22 + $0x10] sm:$0xff] }
 0x742   :  { %v7893_v20 = vadd.f32 %v2010_v11, %v1986_v19  ;;  %v2152_v35 = vsel %vm2029_vm5, %v2138_v21, 0.0  ;;  %v2590_v21 = vld [vmem:[#allocation23 + $0x168] sm:$0xff] }
 0x743   :  { %v2139_v22 = vmul.f32 %v7891_v18, %v7891_v18  ;;  %v2019_v30 = vadd.f32 %v7891_v18, %v7889_v17 }
 0x744   :  { %v2031_v23 = vsel %vm2029_vm5, %v7893_v20, 0.0  ;;  %v2140_v24 = vmul.f32 %v7893_v20, %v7893_v20  ;;  %v1990_v25 = vpop.f32.mrb[10].mxu0 }
 0x745   :  { %v7905_v27 = vadd.f32 %v2006_v13, %v1990_v25  ;;  %v1992_v28 = vpop.f32.mrb[11].mxu0  ;;  %v2032_v36 = vadd.f32 %v2031_v23, %v2030_v29  ;;  %v2143_v39 = vadd.f32 %v2139_v22, %v2137_v26  ;;  %v2247_v13 = vld [vmem:[#allocation22] sm:$0xff]  ;;  %v2592_v22 = vld [vmem:[#allocation23 + $0x178] sm:$0xff]  ;;  %v2446_v23 = vld [vmem:[#allocation23 + $0x8] sm:$0xff] }
 0x746   :  { %v2153_v31 = vsel %vm2029_vm5, %v2140_v24, 0.0  ;;  %v7912_v32 = vadd.f32 %v2010_v11, %v1992_v28  ;;  %v2248_v11 = vld [vmem:[#allocation22 + $0x8] sm:$0xff]  ;;  %v6105_v19 = vpack.c.bf16 %v2249_v16, %v2247_v13  ;;  %v6155_v24 = vpack.c.bf16 %v2592_v22, %v2590_v21  ;;  %v2448_v25 = vld [vmem:[#allocation23 + $0x18] sm:$0xff]  ;;  %v2457_v21 = vld [vmem:[#allocation23 + $0x60] sm:$0xff] }
 0x747   :  { %v2021_v37 = vsel %vm2020_vm6, %v7905_v27, 0.0  ;;  %v2141_v38 = vmul.f32 %v7905_v27, %v7905_v27  ;;  %v2154_v42 = vadd.f32 %v2153_v31, %v2152_v35  ;;  %v6103_v14 = vpack.c.bf16 %v2250_v12, %v2248_v11  ;;  %v2597_v11 = vld [vmem:[#allocation23 + $0x1a0] sm:$0xff]  ;;  %v2599_v12 = vld [vmem:[#allocation23 + $0x1b0] sm:$0xff]  ;;  %v2602_v16 = vld [vmem:[#allocation23 + $0x1c8] sm:$0xff] }
 0x748   :  { %v2022_v40 = vadd.f32 %v2021_v37, %v2019_v30  ;;  %v2034_v41 = vsel %vm2033_vm7, %v7912_v32, 0.0  ;;  %v2142_v57 = vmul.f32 %v7912_v32, %v7912_v32  ;;  %v6111_v26 = vpack.c.bf16 %v2448_v25, %v2446_v23  ;;  %v2459_v22 = vld [vmem:[#allocation23 + $0x70] sm:$0xff]  ;;  %v2604_v23 = vld [vmem:[#allocation23 + $0x1d8] sm:$0xff] }
 0x749   :  { %v2144_v43 = vsel %vm2020_vm6, %v2141_v38, 0.0  ;;  %v2035_v44 = vadd.f32 %v2034_v41, %v2032_v36  ;;  %6104 = vmatprep.subr.bf16.mxu0 %v6103_v14  ;;  %6108 = vmatprep.subr.bf16.mxu1 %v6103_v14  ;;  %v2447_v41 = vld [vmem:[#allocation23 + $0x10] sm:$0xff]  ;;  %v2464_v25 = vld [vmem:[#allocation23 + $0x98] sm:$0xff] }
 0x74a   :  { %v2023_v45 = vrot.slane %v2022_v40, 4  ;;  %v2145_v46 = vadd.f32 %v2144_v43, %v2143_v39  ;;  %v2155_v47 = vsel %vm2033_vm7, %v2142_v57, 0.0  ;;  %v2240_v57 = vld [vmem:[#allocation17] sm:$0x1]  ;;  %v2452_v43 = vld [vmem:[#allocation23 + $0x38] sm:$0xff] }
 0x74b   :  { %v2036_v48 = vrot.slane %v2035_v44, 4  ;;  %v2156_v49 = vadd.f32 %v2155_v47, %v2154_v42  ;;  %v2450_v42 = vld [vmem:[#allocation23 + $0x28] sm:$0xff]  ;;  %v2591_v47 = vld [vmem:[#allocation23 + $0x170] sm:$0xff] }
 0x74c   :  { %v2024_v50 = vadd.f32 %v2023_v45, %v2022_v40  ;;  %v2146_v51 = vrot.slane %v2145_v46, 4  ;;  %v2445_v40 = vld [vmem:[#allocation23] sm:$0xff]  ;;  %v2244_v45 = vld [vmem:[#allocation19] sm:$0x1] }
 0x74d   :  { %v2037_v52 = vadd.f32 %v2036_v48, %v2035_v44  ;;  %v2157_v53 = vrot.slane %v2156_v49, 4  ;;  %v6113_v48 = vpack.c.bf16 %v2447_v41, %v2445_v40  ;;  %v2466_v40 = vld [vmem:[#allocation23 + $0xa8] sm:$0xff]  ;;  %v2468_v41 = vld [vmem:[#allocation23 + $0xb8] sm:$0xff] }
 0x74e   :  { %v2025_v54 = vrot.slane %v2024_v50, 2  ;;  %v2147_v55 = vadd.f32 %v2146_v51, %v2145_v46  ;;  %v2589_v46 = vld [vmem:[#allocation23 + $0x160] sm:$0xff]  ;;  %v6115_v51 = vpack.c.bf16 %v2452_v43, %v2450_v42  ;;  %v2607_v43 = vld [vmem:[#allocation23 + $0x1f0] sm:$0xff] }
 0x74f   :  { %v2038_v56 = vrot.slane %v2037_v52, 2  ;;  %v2158_v58 = vadd.f32 %v2157_v53, %v2156_v49  ;;  %v2451_v53 = vld [vmem:[#allocation23 + $0x30] sm:$0xff]  ;;  %v2605_v42 = vld [vmem:[#allocation23 + $0x1e0] sm:$0xff] }
 0x750   :  { %v2026_v59 = vadd.f32 %v2025_v54, %v2024_v50  ;;  %v2148_v60 = vrot.slane %v2147_v55, 2  ;;  %v2594_v50 = vld [vmem:[#allocation23 + $0x188] sm:$0xff]  ;;  %v2596_v54 = vld [vmem:[#allocation23 + $0x198] sm:$0xff] }
 0x751   :  { %v2039_v61 = vadd.f32 %v2038_v56, %v2037_v52  ;;  %v2159_v62 = vrot.slane %v2158_v58, 2  ;;  %v2449_v52 = vld [vmem:[#allocation23 + $0x20] sm:$0xff]  ;;  %v2456_v56 = vld [vmem:[#allocation23 + $0x58] sm:$0xff] }
 0x752   :  { %v2027_v63 = vrot.slane %v2026_v59, 1  ;;  %v2149_v2 = vadd.f32 %v2148_v60, %v2147_v55  ;;  %v2454_v55 = vld [vmem:[#allocation23 + $0x48] sm:$0xff]  ;;  %v2593_v60 = vld [vmem:[#allocation23 + $0x180] sm:$0xff] }
 0x753   :  { %v2040_v3 = vrot.slane %v2039_v61, 1  ;;  %v2160_v4 = vadd.f32 %v2159_v62, %v2158_v58  ;;  %v6117_v62 = vpack.c.bf16 %v2451_v53, %v2449_v52  ;;  %v2472_v52 = vld [vmem:[#allocation23 + $0xd8] sm:$0xff]  ;;  %v6173_v53 = vpack.c.bf16 %v2607_v43, %v2605_v42  ;;  %v2482_v42 = vld [vmem:[#allocation23 + $0x128] sm:$0xff] }
 0x754   :  { %v2150_v5 = vrot.slane %v2149_v2, 1  ;;  %v2028_v8 = vadd.f32 %v2027_v63, %v2026_v59  ;;  %v6157_v59 = vpack.c.bf16 %v2591_v47, %v2589_v46  ;;  %v2610_v46 = vld [vmem:[#allocation23 + $0x208] sm:$0xff]  ;;  %v6131_v47 = vpack.c.bf16 %v2468_v41, %v2466_v40  ;;  %v2628_v41 = vld [vmem:[#allocation23 + $0x298] sm:$0xff] }
 0x755   :  { %v2041_v6 = vadd.f32 %v2040_v3, %v2039_v61  ;;  %v2161_v7 = vrot.slane %v2160_v4, 1  ;;  %v2595_v61 = vld [vmem:[#allocation23 + $0x190] sm:$0xff]  ;;  %v2598_v3 = vld [vmem:[#allocation23 + $0x1a8] sm:$0xff]  ;;  %v2484_v43 = vld [vmem:[#allocation23 + $0x138] sm:$0xff] }
 0x756   :  { %v2151_v10 = vadd.f32 %v2150_v5, %v2149_v2  ;;  %v6159_v2 = vpack.c.bf16 %v2596_v54, %v2594_v50  ;;  %v2453_v5 = vld [vmem:[#allocation23 + $0x40] sm:$0xff]  ;;  %v2612_v50 = vld [vmem:[#allocation23 + $0x218] sm:$0xff]  ;;  %v2626_v40 = vld [vmem:[#allocation23 + $0x288] sm:$0xff] }
 0x757   :  { %5399 = vmatprep.mubr.msk.f32.mxu0 %vm2029_vm5, %v2041_v6  ;;  %v2162_v9 = vadd.f32 %v2161_v7, %v2160_v4  ;;  %v6119_v4 = vpack.c.bf16 %v2456_v56, %v2454_v55  ;;  %v2455_v6 = vld [vmem:[#allocation23 + $0x50] sm:$0xff]  ;;  %v2600_v7 = vld [vmem:[#allocation23 + $0x1b8] sm:$0xff]  ;;  %v2609_v54 = vld [vmem:[#allocation23 + $0x200] sm:$0xff] }
 0x758   :  { %2132 = vmatmul.mubr.f32.vlgmr.msra.gmra.mrb[14].mxu0 %v2028_v8  ;;  %v2458_v8 = vld [vmem:[#allocation23 + $0x68] sm:$0xff]  ;;  %v6121_v13 = vpack.c.bf16 %v2455_v6, %v2453_v5  ;;  %v6163_v14 = vpack.c.bf16 %v2600_v7, %v2598_v3  ;;  %v2611_v55 = vld [vmem:[#allocation23 + $0x210] sm:$0xff]  ;;  %v2476_v3 = vld [vmem:[#allocation23 + $0xf8] sm:$0xff] }
 0x759   :  { %5400 = vmatprep.mubr.msk.f32.mxu1 %vm2029_vm5, %v2162_v9  ;;  %2318 = vmatprep.mubr.f32.mxu0 %v7337_v1  ;;  %v2460_v9 = vld [vmem:[#allocation23 + $0x78] sm:$0xff]  ;;  %v2613_v5 = vld [vmem:[#allocation23 + $0x220] sm:$0xff] }
 0x75a   :  { %2231 = vmatmul.mubr.f32.vlgmr.msra.gmra.mrb[10].mxu1 %v2151_v10  ;;  %6106 = vmatpush1.bf16.msra.mxu0 %v6105_v19  ;;  %v6161_v10 = vpack.c.bf16 %v2595_v61, %v2593_v60  ;;  %v2469_v61 = vld [vmem:[#allocation23 + $0xc0] sm:$0xff] }
 0x75b   :  { %2406 = vmatprep.mubr.f32.mxu1 %v7337_v1  ;;  %6110 = vmatpush1.bf16.msra.mxu1 %v6105_v19  ;;  %v6123_v19 = vpack.c.bf16 %v2460_v9, %v2458_v8  ;;  %v2615_v8 = vld [vmem:[#allocation23 + $0x230] sm:$0xff] }
 0x75c   :  { %6156 = vmatprep.subr.bf16.mxu1 %v6155_v24  ;;  %6112 = vmatprep.subr.bf16.mxu0 %v6111_v26  ;;  %v2462_v24 = vld [vmem:[#allocation23 + $0x88] sm:$0xff]  ;;  %v6165_v26 = vpack.c.bf16 %v2599_v12, %v2597_v11  ;;  %v2475_v11 = vld [vmem:[#allocation23 + $0xf0] sm:$0xff] }
 0x75d   :  { %v2618_v12 = vld [vmem:[#allocation23 + $0x248] sm:$0xff] }
 0x82b   :  { %v2133_v28 = vpop.f32.mrb[14].mxu0 }
 0x82c   :  { %v2236_v29 = vmul.f32 0.004132231, %v2133_v28  ;;  %v2135_v30 = vpop.f32.mrb[15].mxu0  ;;  %v2601_v28 = vld [vmem:[#allocation23 + $0x1c0] sm:$0xff] }
 0x82d   :  { %v2232_v31 = vpop.f32.mrb[10].mxu1  ;;  %v6125_v30 = vpack.c.bf16 %v2459_v22, %v2457_v21  ;;  %v2617_v21 = vld [vmem:[#allocation23 + $0x240] sm:$0xff]  ;;  %v2619_v22 = vld [vmem:[#allocation23 + $0x250] sm:$0xff] }
 0x82e   :  { %v2238_v35 = vmul.f32 %v2236_v29, %v2236_v29  ;;  %v2237_v36 = vmul.f32 0.004132231, %v2232_v31  ;;  %v2234_v37 = vpop.f32.mrb[11].mxu1  ;;  %v6167_v31 = vpack.c.bf16 %v2604_v23, %v2602_v16  ;;  %v6185_v23 = vpack.c.bf16 %v2619_v22, %v2617_v21 }
 0x82f   :  { %v2461_v37 = vld [vmem:[#allocation23 + $0x80] sm:$0xff] }
 0x830   :  { %v2239_v38 = vsub.f32 %v2237_v36, %v2238_v35  ;;  %v2606_v35 = vld [vmem:[#allocation23 + $0x1e8] sm:$0xff]  ;;  %v6127_v36 = vpack.c.bf16 %v2464_v25, %v2462_v24  ;;  %v2624_v25 = vld [vmem:[#allocation23 + $0x278] sm:$0xff] }
 0x831   :  { %v2622_v24 = vld [vmem:[#allocation23 + $0x268] sm:$0xff] }
 0x832   :  { %v2241_v39 = vadd.f32 1e-05, %v2239_v38  ;;  %v2463_v38 = vld [vmem:[#allocation23 + $0x90] sm:$0xff] }
 0x834   :  { %6749 = vrsqrt.f32 %v2241_v39  ;;  %v2608_v39 = vld [vmem:[#allocation23 + $0x1f8] sm:$0xff] }
 0x83e   :  { %v6750_v44 = vpop.eup %6749 }
 0x83f   :  { %v2243_v49 = vmul.f32 %v6750_v44, %v2240_v57  ;;  %v6129_v44 = vpack.c.bf16 %v2463_v38, %v2461_v37  ;;  %v2479_v37 = vld [vmem:[#allocation23 + $0x110] sm:$0xff] }
 0x841   :  { %5401 = vmatmul.mubr.msk.f32.vlgmr.msra.gmra.mrb[16].mxu0 %vm362_vm1, %v2243_v49  ;;  %v2245_v58 = vmul.f32 %v2243_v49, %v2236_v29  ;;  %v2603_v29 = vld [vmem:[#allocation23 + $0x1d0] sm:$0xff] }
 0x842   :  { %6114 = vmatpush1.bf16.msra.mxu0 %v6113_v48  ;;  %v6169_v57 = vpack.c.bf16 %v2603_v29, %v2601_v28  ;;  %v2465_v48 = vld [vmem:[#allocation23 + $0xa0] sm:$0xff]  ;;  %v2467_v49 = vld [vmem:[#allocation23 + $0xb0] sm:$0xff]  ;;  %v2478_v28 = vld [vmem:[#allocation23 + $0x108] sm:$0xff] }
 0x843   :  { %v2246_v63 = vsub.f32 %v2244_v45, %v2245_v58  ;;  %6116 = vmatprep.subr.bf16.mxu0 %v6115_v51  ;;  %v6171_v45 = vpack.c.bf16 %v2608_v39, %v2606_v35  ;;  %v2470_v51 = vld [vmem:[#allocation23 + $0xc8] sm:$0xff]  ;;  %v6133_v56 = vpack.c.bf16 %v2467_v49, %v2465_v48  ;;  %v6175_v58 = vpack.c.bf16 %v2612_v50, %v2610_v46  ;;  %v2480_v29 = vld [vmem:[#allocation23 + $0x118] sm:$0xff]  ;;  %v2623_v35 = vld [vmem:[#allocation23 + $0x270] sm:$0xff] }
 0x844   :  { %v6135_v60 = vpack.c.bf16 %v2472_v52, %v2470_v51  ;;  %v2627_v46 = vld [vmem:[#allocation23 + $0x290] sm:$0xff]  ;;  %v2630_v51 = vld [vmem:[#allocation23 + $0x2a8] sm:$0xff]  ;;  %v2632_v52 = vld [vmem:[#allocation23 + $0x2b8] sm:$0xff] }
 0x845   :  { %5402 = vmatmul.mubr.msk.f32.vlgmr.msra.gmra.mrb[12].mxu1 %vm362_vm1, %v2246_v63  ;;  %v2616_v63 = vld [vmem:[#allocation23 + $0x238] sm:$0xff]  ;;  %v2483_v48 = vld [vmem:[#allocation23 + $0x130] sm:$0xff] }
 0x846   :  { %6158 = vmatpush1.bf16.msra.mxu1 %v6157_v59  ;;  %6118 = vmatpush1.bf16.msra.mxu0 %v6117_v62  ;;  %v2614_v59 = vld [vmem:[#allocation23 + $0x228] sm:$0xff]  ;;  %v2471_v62 = vld [vmem:[#allocation23 + $0xd0] sm:$0xff] }
 0x847   :  { %6160 = vmatprep.subr.bf16.mxu1 %v6159_v2  ;;  %6120 = vmatprep.subr.bf16.mxu0 %v6119_v4  ;;  %v2474_v2 = vld [vmem:[#allocation23 + $0xe8] sm:$0xff]  ;;  %v6177_v4 = vpack.c.bf16 %v2611_v55, %v2609_v54  ;;  %v6137_v6 = vpack.c.bf16 %v2471_v62, %v2469_v61  ;;  %v6179_v7 = vpack.c.bf16 %v2616_v63, %v2614_v59  ;;  %v2488_v55 = vld [vmem:[#allocation23 + $0x158] sm:$0xff]  ;;  %v2631_v59 = vld [vmem:[#allocation23 + $0x2b0] sm:$0xff] }
 0x848   :  { %v6139_v9 = vpack.c.bf16 %v2476_v3, %v2474_v2  ;;  %v2486_v54 = vld [vmem:[#allocation23 + $0x148] sm:$0xff]  ;;  %v2487_v61 = vld [vmem:[#allocation23 + $0x150] sm:$0xff]  ;;  %v2978_v3 = vld [vmem:[#allocation23 + $0x2d8] sm:$0xff] }
 0x849   :  { %v2976_v2 = vld [vmem:[#allocation23 + $0x2c8] sm:$0xff] }
 0x84a   :  { %6162 = vmatpush1.bf16.msra.mxu1 %v6161_v10  ;;  %6122 = vmatpush1.bf16.msra.mxu0 %v6121_v13  ;;  %v2473_v10 = vld [vmem:[#allocation23 + $0xe0] sm:$0xff]  ;;  %v2620_v13 = vld [vmem:[#allocation23 + $0x258] sm:$0xff] }
 0x84b   :  { %6164 = vmatprep.subr.bf16.mxu1 %v6163_v14  ;;  %6124 = vmatprep.subr.bf16.mxu0 %v6123_v19  ;;  %v6181_v14 = vpack.c.bf16 %v2615_v8, %v2613_v5  ;;  %v6141_v16 = vpack.c.bf16 %v2475_v11, %v2473_v10  ;;  %v6183_v19 = vpack.c.bf16 %v2620_v13, %v2618_v12 }
 0x84e   :  { %6166 = vmatpush1.bf16.msra.mxu1 %v6165_v26  ;;  %6126 = vmatpush1.bf16.msra.mxu0 %v6125_v30  ;;  %v6187_v26 = vpack.c.bf16 %v2624_v25, %v2622_v24  ;;  %v2621_v30 = vld [vmem:[#allocation23 + $0x260] sm:$0xff] }
 0x84f   :  { %6168 = vmatprep.subr.bf16.mxu1 %v6167_v31  ;;  %6128 = vmatprep.subr.bf16.mxu0 %v6127_v36  ;;  %v6143_v31 = vpack.c.bf16 %v2480_v29, %v2478_v28  ;;  %v2477_v36 = vld [vmem:[#allocation23 + $0x100] sm:$0xff]  ;;  %v6189_v38 = vpack.c.bf16 %v2623_v35, %v2621_v30  ;;  %v2982_v30 = vld [vmem:[#allocation23 + $0x2f8] sm:$0xff] }
 0x850   :  { %v6145_v39 = vpack.c.bf16 %v2479_v37, %v2477_v36  ;;  %v2979_v36 = vld [vmem:[#allocation23 + $0x2e0] sm:$0xff] }
 0x852   :  { %6170 = vmatpush1.bf16.msra.mxu1 %v6169_v57  ;;  %6130 = vmatpush1.bf16.msra.mxu0 %v6129_v44  ;;  %v6191_v57 = vpack.c.bf16 %v2628_v41, %v2626_v40  ;;  %v2625_v44 = vld [vmem:[#allocation23 + $0x280] sm:$0xff] }
 0x853   :  { %6172 = vmatprep.subr.bf16.mxu1 %v6171_v45  ;;  %6132 = vmatprep.subr.bf16.mxu0 %v6131_v47  ;;  %v6147_v45 = vpack.c.bf16 %v2484_v43, %v2482_v42  ;;  %v2481_v47 = vld [vmem:[#allocation23 + $0x120] sm:$0xff]  ;;  %v6193_v49 = vpack.c.bf16 %v2627_v46, %v2625_v44  ;;  %v2985_v43 = vld [vmem:[#allocation23 + $0x310] sm:$0xff]  ;;  %v2990_v46 = vld [vmem:[#allocation23 + $0x338] sm:$0xff] }
 0x854   :  { %v6149_v50 = vpack.c.bf16 %v2483_v48, %v2481_v47  ;;  %v2983_v42 = vld [vmem:[#allocation23 + $0x300] sm:$0xff] }
 0x855   :  { %v6217_v47 = vpack.c.bf16 %v2985_v43, %v2983_v42  ;;  %v3247_v42 = vld [vmem:[#allocation23 + $0x420] sm:$0xff]  ;;  %v3249_v43 = vld [vmem:[#allocation23 + $0x430] sm:$0xff] }
 0x856   :  { %6174 = vmatpush1.bf16.msra.mxu1 %v6173_v53  ;;  %6134 = vmatpush1.bf16.msra.mxu0 %v6133_v56  ;;  %v6195_v53 = vpack.c.bf16 %v2632_v52, %v2630_v51  ;;  %v2629_v56 = vld [vmem:[#allocation23 + $0x2a0] sm:$0xff]  ;;  %v2989_v51 = vld [vmem:[#allocation23 + $0x330] sm:$0xff]  ;;  %v2992_v52 = vld [vmem:[#allocation23 + $0x348] sm:$0xff] }
 0x857   :  { %6176 = vmatprep.subr.bf16.mxu1 %v6175_v58  ;;  %6136 = vmatprep.subr.bf16.mxu0 %v6135_v60  ;;  %v6151_v58 = vpack.c.bf16 %v2488_v55, %v2486_v54  ;;  %v2485_v60 = vld [vmem:[#allocation23 + $0x140] sm:$0xff]  ;;  %v6197_v62 = vpack.c.bf16 %v2631_v59, %v2629_v56  ;;  %v2996_v59 = vld [vmem:[#allocation23 + $0x368] sm:$0xff] }
 0x858   :  { %v6153_v63 = vpack.c.bf16 %v2487_v61, %v2485_v60  ;;  %v2991_v56 = vld [vmem:[#allocation23 + $0x340] sm:$0xff]  ;;  %v2998_v60 = vld [vmem:[#allocation23 + $0x378] sm:$0xff] }
 0x85a   :  { %6178 = vmatpush1.bf16.msra.mxu1 %v6177_v4  ;;  %6138 = vmatpush1.bf16.msra.mxu0 %v6137_v6  ;;  %v6207_v4 = vpack.c.bf16 %v2978_v3, %v2976_v2  ;;  %v2997_v2 = vld [vmem:[#allocation23 + $0x370] sm:$0xff]  ;;  %v3000_v3 = vld [vmem:[#allocation23 + $0x388] sm:$0xff] }
 0x85b   :  { %6180 = vmatprep.subr.bf16.mxu1 %v6179_v7  ;;  %6140 = vmatprep.subr.bf16.mxu0 %v6139_v9 }
 0x85e   :  { %6182 = vmatpush1.bf16.msra.mxu1 %v6181_v14  ;;  %6142 = vmatpush1.bf16.msra.mxu0 %v6141_v16 }
 0x85f   :  { %6184 = vmatprep.subr.bf16.mxu1 %v6183_v19  ;;  %6144 = vmatprep.subr.bf16.mxu0 %v6143_v31 }
 0x862   :  { %6186 = vmatpush1.bf16.msra.mxu1 %v6185_v23  ;;  %6146 = vmatpush1.bf16.msra.mxu0 %v6145_v39  ;;  %v2986_v39 = vld [vmem:[#allocation23 + $0x318] sm:$0xff] }
 0x863   :  { %6188 = vmatprep.subr.bf16.mxu1 %v6187_v26  ;;  %6148 = vmatprep.subr.bf16.mxu0 %v6147_v45  ;;  %v2975_v26 = vld [vmem:[#allocation23 + $0x2c0] sm:$0xff]  ;;  %v2988_v45 = vld [vmem:[#allocation23 + $0x328] sm:$0xff] }
 0x866   :  { %6190 = vmatpush1.bf16.msra.mxu1 %v6189_v38  ;;  %6150 = vmatpush1.bf16.msra.mxu0 %v6149_v50  ;;  %v2984_v38 = vld [vmem:[#allocation23 + $0x308] sm:$0xff]  ;;  %v2987_v50 = vld [vmem:[#allocation23 + $0x320] sm:$0xff] }
 0x867   :  { %6192 = vmatprep.subr.bf16.mxu1 %v6191_v57  ;;  %6152 = vmatprep.subr.bf16.mxu0 %v6151_v58  ;;  %v6215_v57 = vpack.c.bf16 %v2986_v39, %v2984_v38  ;;  %v6221_v54 = vpack.c.bf16 %v2989_v51, %v2987_v50  ;;  %v2993_v58 = vld [vmem:[#allocation23 + $0x350] sm:$0xff]  ;;  %v3248_v38 = vld [vmem:[#allocation23 + $0x428] sm:$0xff]  ;;  %v3250_v39 = vld [vmem:[#allocation23 + $0x438] sm:$0xff] }
 0x868   :  { %v6225_v61 = vpack.c.bf16 %v2993_v58, %v2991_v56  ;;  %v3251_v50 = vld [vmem:[#allocation23 + $0x440] sm:$0xff]  ;;  %v3253_v51 = vld [vmem:[#allocation23 + $0x450] sm:$0xff] }
 0x869   :  { %v3255_v56 = vld [vmem:[#allocation23 + $0x460] sm:$0xff]  ;;  %v3257_v58 = vld [vmem:[#allocation23 + $0x470] sm:$0xff] }
 0x86a   :  { %6194 = vmatpush1.bf16.msra.mxu1 %v6193_v49  ;;  %6154 = vmatpush1.bf16.msra.mxu0 %v6153_v63  ;;  %v6219_v49 = vpack.c.bf16 %v2990_v46, %v2988_v45  ;;  %v2995_v63 = vld [vmem:[#allocation23 + $0x360] sm:$0xff]  ;;  %v3252_v45 = vld [vmem:[#allocation23 + $0x448] sm:$0xff]  ;;  %v3254_v46 = vld [vmem:[#allocation23 + $0x458] sm:$0xff] }
 0x86b   :  { %6196 = vmatprep.subr.bf16.mxu1 %v6195_v53  ;;  %v2994_v53 = vld [vmem:[#allocation23 + $0x358] sm:$0xff] }
 0x86c   :  { %v6223_v55 = vpack.c.bf16 %v2994_v53, %v2992_v52  ;;  %v3256_v52 = vld [vmem:[#allocation23 + $0x468] sm:$0xff]  ;;  %v3258_v53 = vld [vmem:[#allocation23 + $0x478] sm:$0xff] }
 0x86e   :  { %6198 = vmatpush1.bf16.msra.mxu1 %v6197_v62  ;;  %v6227_v62 = vpack.c.bf16 %v2998_v60, %v2996_v59  ;;  %v3260_v59 = vld [vmem:[#allocation23 + $0x488] sm:$0xff]  ;;  %v3262_v60 = vld [vmem:[#allocation23 + $0x498] sm:$0xff] }
 0x86f   :  { %6208 = vmatprep.subr.bf16.mxu1 %v6207_v4  ;;  %v3002_v4 = vld [vmem:[#allocation23 + $0x398] sm:$0xff] }
 0x914   :  { %v2320_v5 = vpop.f32.mrb[16].mxu0 }
 0x915   :  { %v2328_v6 = vrot.slane %v2320_v5, %v7799_v33  ;;  %v2322_v7 = vpop.f32.mrb[17].mxu0  ;;  %v6229_v5 = vpack.c.bf16 %v2997_v2, %v2995_v63  ;;  %v3259_v63 = vld [vmem:[#allocation23 + $0x480] sm:$0xff]  ;;  %v3261_v2 = vld [vmem:[#allocation23 + $0x490] sm:$0xff] }
 0x916   :  { %v2332_v8 = vrot.slane %v2322_v7, %v7799_v33  ;;  %v2999_v7 = vld [vmem:[#allocation23 + $0x380] sm:$0xff] }
 0x917   :  { %v2333_v10 = vmul.f32 %v2328_v6, %v7889_v17  ;;  %v2335_v11 = vmul.f32 %v2328_v6, %v7891_v18  ;;  %v2337_v12 = vmul.f32 %v2328_v6, %v7905_v27  ;;  %v2977_v17 = vld [vmem:[#allocation23 + $0x2d0] sm:$0xff]  ;;  %v2980_v27 = vld [vmem:[#allocation23 + $0x2e8] sm:$0xff]  ;;  %v6231_v6 = vpack.c.bf16 %v3002_v4, %v3000_v3  ;;  %v3266_v4 = vld [vmem:[#allocation23 + $0x4b8] sm:$0xff] }
 0x918   :  { %v2408_v9 = vpop.f32.mrb[12].mxu1  ;;  %v2334_v16 = vmul.f32 %v2332_v8, %v7887_v15  ;;  %v2336_v19 = vmul.f32 %v2332_v8, %v7893_v20  ;;  %v2338_v21 = vmul.f32 %v2332_v8, %v7912_v32  ;;  %v6209_v35 = vpack.c.bf16 %v2977_v17, %v2975_v26  ;;  %v2981_v32 = vld [vmem:[#allocation23 + $0x2f0] sm:$0xff]  ;;  %v3014_v26 = vld [vmem:[#allocation23 + $0x3f8] sm:$0xff]  ;;  %v3264_v3 = vld [vmem:[#allocation23 + $0x4a8] sm:$0xff] }
 0x919   :  { %v2416_v13 = vrot.slane %v2408_v9, %v7799_v33  ;;  %v2410_v14 = vpop.f32.mrb[13].mxu1  ;;  %v6211_v20 = vpack.c.bf16 %v2982_v30, %v2980_v27  ;;  %v6213_v40 = vpack.c.bf16 %v2981_v32, %v2979_v36  ;;  %v3001_v8 = vld [vmem:[#allocation23 + $0x390] sm:$0xff]  ;;  %v3004_v9 = vld [vmem:[#allocation23 + $0x3a8] sm:$0xff]  ;;  %v3018_v30 = vld [vmem:[#allocation23 + $0x418] sm:$0xff] }
 0x91a   :  { %v2420_v22 = vrot.slane %v2410_v14, %v7799_v33  ;;  %v3005_v14 = vld [vmem:[#allocation23 + $0x3b0] sm:$0xff]  ;;  %v3016_v27 = vld [vmem:[#allocation23 + $0x408] sm:$0xff]  ;;  %v3015_v36 = vld [vmem:[#allocation23 + $0x400] sm:$0xff] }
 0x91b   :  { %v2421_v23 = vadd.f32 %v2416_v13, %v2333_v10  ;;  %v2423_v24 = vadd.f32 %v2416_v13, %v2335_v11  ;;  %v2425_v25 = vadd.f32 %v2416_v13, %v2337_v12  ;;  %v3006_v10 = vld [vmem:[#allocation23 + $0x3b8] sm:$0xff]  ;;  %v6233_v11 = vpack.c.bf16 %v3001_v8, %v2999_v7  ;;  %v3003_v13 = vld [vmem:[#allocation23 + $0x3a0] sm:$0xff]  ;;  %v3017_v32 = vld [vmem:[#allocation23 + $0x410] sm:$0xff] }
 0x91c   :  { %v2422_v28 = vadd.f32 %v2420_v22, %v2334_v16  ;;  %v2424_v18 = vadd.f32 %v2420_v22, %v2336_v19  ;;  %v2426_v29 = vadd.f32 %v2420_v22, %v2338_v21  ;;  %v6235_v12 = vpack.c.bf16 %v3006_v10, %v3004_v9  ;;  %v3008_v16 = vld [vmem:[#allocation23 + $0x3c8] sm:$0xff]  ;;  %v3010_v19 = vld [vmem:[#allocation23 + $0x3d8] sm:$0xff]  ;;  %v3263_v7 = vld [vmem:[#allocation23 + $0x4a0] sm:$0xff] }
 0x91d   :  { %v7943_v15 = vclamps-f32 %v2421_v23, 1.0  ;;  %v7955_v41 = vclamps-f32 %v2423_v24, 1.0  ;;  %v7965_v48 = vclamps-f32 %v2425_v25, 1.0  ;;  %v6237_v21 = vpack.c.bf16 %v3005_v14, %v3003_v13  ;;  %v3007_v23 = vld [vmem:[#allocation23 + $0x3c0] sm:$0xff]  ;;  %v3009_v24 = vld [vmem:[#allocation23 + $0x3d0] sm:$0xff]  ;;  %v3012_v25 = vld [vmem:[#allocation23 + $0x3e8] sm:$0xff] }
 0x91e   :  { %v7941_v31 = vclamps-f32 %v2422_v28, 1.0  ;;  %v7945_v37 = vclamps-f32 %v2424_v18, 1.0  ;;  %v7959_v44 = vclamps-f32 %v2426_v29, 1.0  ;;  %v6239_v22 = vpack.c.bf16 %v3010_v19, %v3008_v16  ;;  %v3011_v18 = vld [vmem:[#allocation23 + $0x3e0] sm:$0xff]  ;;  %v3013_v29 = vld [vmem:[#allocation23 + $0x3f0] sm:$0xff]  ;;  %v3268_v9 = vld [vmem:[#allocation23 + $0x4c8] sm:$0xff] }
 0x91f   :  { %v6241_v17 = vpack.c.bf16 %v3009_v24, %v3007_v23  ;;  %v6243_v28 = vpack.c.bf16 %v3014_v26, %v3012_v25  ;;  %v3265_v8 = vld [vmem:[#allocation23 + $0x4b0] sm:$0xff]  ;;  %v3270_v10 = vld [vmem:[#allocation23 + $0x4d8] sm:$0xff]  ;;  %v3267_v13 = vld [vmem:[#allocation23 + $0x4c0] sm:$0xff] }
 0x920   :  { %5409 = vmatprep.mubr.msk.f32.mxu0 %vm2029_vm5, %v7941_v31  ;;  %5412 = vmatprep.mubr.msk.f32.mxu1 %vm2029_vm5, %v7941_v31  ;;  %v3269_v14 = vld [vmem:[#allocation23 + $0x4d0] sm:$0xff]  ;;  %v3272_v16 = vld [vmem:[#allocation23 + $0x4e8] sm:$0xff]  ;;  %v3274_v19 = vld [vmem:[#allocation23 + $0x4f8] sm:$0xff] }
 0x921   :  { %2563 = vmatmul.mubr.f32.vlgmr.msra.gmra.mrb[18].mxu0 %v7943_v15  ;;  %2698 = vmatmul.mubr.f32.vlgmr.msra.gmra.mrb[14].mxu1 %v7943_v15  ;;  %v3273_v23 = vld [vmem:[#allocation23 + $0x4f0] sm:$0xff]  ;;  %v3276_v24 = vld [vmem:[#allocation23 + $0x508] sm:$0xff]  ;;  %v3278_v25 = vld [vmem:[#allocation23 + $0x518] sm:$0xff] }
 0x922   :  { %6210 = vmatpush1.bf16.msra.mxu1 %v6209_v35  ;;  %5410 = vmatprep.mubr.msk.f32.mxu0 %vm2029_vm5, %v7945_v37  ;;  %v6245_v35 = vpack.c.bf16 %v3013_v29, %v3011_v18  ;;  %v3277_v18 = vld [vmem:[#allocation23 + $0x510] sm:$0xff]  ;;  %v3280_v29 = vld [vmem:[#allocation23 + $0x528] sm:$0xff] }
 0x923   :  { %5413 = vmatprep.mubr.msk.f32.mxu1 %vm2029_vm5, %v7945_v37  ;;  %6212 = vmatprep.subr.bf16.mxu1 %v6211_v20  ;;  %v6247_v20 = vpack.c.bf16 %v3018_v30, %v3016_v27  ;;  %v3282_v27 = vld [vmem:[#allocation23 + $0x538] sm:$0xff] }
 0x925   :  { %2569 = vmatmul.mubr.f32.gmra.mrb[20].mxu0 %v7955_v41  ;;  %2704 = vmatmul.mubr.f32.gmra.mrb[16].mxu1 %v7955_v41 }
 0x926   :  { %6214 = vmatpush1.bf16.msra.mxu1 %v6213_v40  ;;  %5411 = vmatprep.mubr.msk.f32.mxu0 %vm2029_vm5, %v7959_v44  ;;  %v6249_v40 = vpack.c.bf16 %v3017_v32, %v3015_v36  ;;  %v3281_v36 = vld [vmem:[#allocation23 + $0x530] sm:$0xff]  ;;  %v3284_v32 = vld [vmem:[#allocation23 + $0x548] sm:$0xff] }
 0x927   :  { %5414 = vmatprep.mubr.msk.f32.mxu1 %vm2029_vm5, %v7959_v44  ;;  %6216 = vmatprep.subr.bf16.mxu1 %v6215_v57  ;;  %v6255_v57 = vpack.c.bf16 %v3250_v39, %v3248_v38  ;;  %v3286_v38 = vld [vmem:[#allocation23 + $0x558] sm:$0xff] }
 0x929   :  { %2575 = vmatmul.mubr.f32.gmra.mrb[22].mxu0 %v7965_v48  ;;  %2710 = vmatmul.mubr.f32.gmra.mrb[18].mxu1 %v7965_v48 }
 0x92a   :  { %6218 = vmatpush1.bf16.msra.mxu1 %v6217_v47  ;;  %5431 = vmatprep.mubr.msk.f32.mxu1 %vm2029_vm5, %v7941_v31  ;;  %v6257_v47 = vpack.c.bf16 %v3249_v43, %v3247_v42  ;;  %v3285_v42 = vld [vmem:[#allocation23 + $0x550] sm:$0xff]  ;;  %v3288_v43 = vld [vmem:[#allocation23 + $0x568] sm:$0xff] }
 0x92b   :  { %6220 = vmatprep.subr.bf16.mxu1 %v6219_v49  ;;  %2805 = vmatprep.mubr.f32.mxu0 %v7337_v1  ;;  %v6259_v49 = vpack.c.bf16 %v3254_v46, %v3252_v45  ;;  %v3290_v45 = vld [vmem:[#allocation23 + $0x578] sm:$0xff] }
 0x92e   :  { %6222 = vmatpush1.bf16.msra.mxu1 %v6221_v54  ;;  %v6261_v54 = vpack.c.bf16 %v3253_v51, %v3251_v50  ;;  %v3289_v50 = vld [vmem:[#allocation23 + $0x570] sm:$0xff] }
 0x92f   :  { %6224 = vmatprep.subr.bf16.mxu1 %v6223_v55  ;;  %v6263_v55 = vpack.c.bf16 %v3258_v53, %v3256_v52  ;;  %v3754_v52 = vld [vmem:[#allocation28 + $0x188] sm:$0xff]  ;;  %v3756_v53 = vld [vmem:[#allocation28 + $0x198] sm:$0xff] }
 0x932   :  { %6226 = vmatpush1.bf16.msra.mxu1 %v6225_v61  ;;  %v6265_v61 = vpack.c.bf16 %v3257_v58, %v3255_v56  ;;  %v3755_v56 = vld [vmem:[#allocation28 + $0x190] sm:$0xff] }
 0x933   :  { %6228 = vmatprep.subr.bf16.mxu1 %v6227_v62  ;;  %v6267_v62 = vpack.c.bf16 %v3262_v60, %v3260_v59  ;;  %v3758_v59 = vld [vmem:[#allocation28 + $0x1a8] sm:$0xff]  ;;  %v3760_v60 = vld [vmem:[#allocation28 + $0x1b8] sm:$0xff] }
 0x936   :  { %6230 = vmatpush1.bf16.msra.mxu1 %v6229_v5  ;;  %v6269_v5 = vpack.c.bf16 %v3261_v2, %v3259_v63  ;;  %v3764_v2 = vld [vmem:[#allocation28 + $0x1d8] sm:$0xff] }
 0x937   :  { %6232 = vmatprep.subr.bf16.mxu1 %v6231_v6  ;;  %v6271_v6 = vpack.c.bf16 %v3266_v4, %v3264_v3 }
 0x93a   :  { %6234 = vmatpush1.bf16.msra.mxu1 %v6233_v11  ;;  %v6273_v11 = vpack.c.bf16 %v3265_v8, %v3263_v7  ;;  %v3766_v7 = vld [vmem:[#allocation28 + $0x1e8] sm:$0xff] }
 0x93b   :  { %6236 = vmatprep.subr.bf16.mxu1 %v6235_v12  ;;  %v6275_v12 = vpack.c.bf16 %v3270_v10, %v3268_v9  ;;  %v3768_v9 = vld [vmem:[#allocation28 + $0x1f8] sm:$0xff] }
 0x93e   :  { %6238 = vmatpush1.bf16.msra.mxu1 %v6237_v21  ;;  %v6277_v21 = vpack.c.bf16 %v3269_v14, %v3267_v13  ;;  %v3765_v13 = vld [vmem:[#allocation28 + $0x1e0] sm:$0xff]  ;;  %v3767_v14 = vld [vmem:[#allocation28 + $0x1f0] sm:$0xff] }
 0x93f   :  { %6240 = vmatprep.subr.bf16.mxu1 %v6239_v22  ;;  %v6279_v22 = vpack.c.bf16 %v3274_v19, %v3272_v16 }
 0x942   :  { %6242 = vmatpush1.bf16.msra.mxu1 %v6241_v17  ;;  %v6283_v17 = vpack.c.bf16 %v3278_v25, %v3276_v24 }
 0x943   :  { %6244 = vmatprep.subr.bf16.mxu1 %v6243_v28  ;;  %v3275_v28 = vld [vmem:[#allocation23 + $0x500] sm:$0xff] }
 0x944   :  { %v6285_v30 = vpack.c.bf16 %v3277_v18, %v3275_v28 }
 0x946   :  { %6246 = vmatpush1.bf16.msra.mxu1 %v6245_v35  ;;  %v6287_v35 = vpack.c.bf16 %v3282_v27, %v3280_v29 }
 0x947   :  { %6248 = vmatprep.subr.bf16.mxu1 %v6247_v20  ;;  %v3279_v20 = vld [vmem:[#allocation23 + $0x520] sm:$0xff] }
 0x948   :  { %v6289_v39 = vpack.c.bf16 %v3281_v36, %v3279_v20  ;;  %v3774_v20 = vld [vmem:[#allocation28 + $0x228] sm:$0xff]  ;;  %v3776_v36 = vld [vmem:[#allocation28 + $0x238] sm:$0xff] }
 0x94a   :  { %6250 = vmatpush1.bf16.msra.mxu1 %v6249_v40  ;;  %v6291_v40 = vpack.c.bf16 %v3286_v38, %v3284_v32  ;;  %v2582_v32 = vld [vmem:[#allocation25 + $0x30] sm:$0xff] }
 0x94b   :  { %6256 = vmatprep.subr.bf16.mxu1 %v6255_v57  ;;  %v3283_v57 = vld [vmem:[#allocation23 + $0x540] sm:$0xff] }
 0x94c   :  { %v6293_v46 = vpack.c.bf16 %v3285_v42, %v3283_v57  ;;  %v3775_v57 = vld [vmem:[#allocation28 + $0x230] sm:$0xff]  ;;  %v3778_v42 = vld [vmem:[#allocation28 + $0x248] sm:$0xff] }
 0x94d   :  { %3084 = vmatmul.mubr.f32.vlgmr.msra.gmra.mrb[20].mxu1 %v7943_v15 }
 0x94e   :  { %5432 = vmatprep.mubr.msk.f32.mxu1 %vm2029_vm5, %v7945_v37  ;;  %6258 = vmatpush1.bf16.msra.mxu1 %v6257_v47  ;;  %v6295_v47 = vpack.c.bf16 %v3290_v45, %v3288_v43  ;;  %v3780_v43 = vld [vmem:[#allocation28 + $0x258] sm:$0xff] }
 0x94f   :  { %6260 = vmatprep.subr.bf16.mxu1 %v6259_v49  ;;  %v3287_v49 = vld [vmem:[#allocation23 + $0x560] sm:$0xff]  ;;  %v2583_v45 = vld [vmem:[#allocation25 + $0x38] sm:$0xff] }
 0x950   :  { %v6297_v51 = vpack.c.bf16 %v3289_v50, %v3287_v49  ;;  %v3777_v49 = vld [vmem:[#allocation28 + $0x240] sm:$0xff]  ;;  %v3779_v50 = vld [vmem:[#allocation28 + $0x250] sm:$0xff] }
 0x951   :  { %3090 = vmatmul.mubr.f32.gmra.mrb[22].mxu1 %v7955_v41 }
 0x952   :  { %5433 = vmatprep.mubr.msk.f32.mxu1 %vm2029_vm5, %v7959_v44  ;;  %6262 = vmatpush1.bf16.msra.mxu1 %v6261_v54  ;;  %v6351_v54 = vpack.c.bf16 %v3756_v53, %v3754_v52  ;;  %v3784_v52 = vld [vmem:[#allocation28 + $0x278] sm:$0xff] }
 0x953   :  { %6264 = vmatprep.subr.bf16.mxu1 %v6263_v55  ;;  %v3753_v55 = vld [vmem:[#allocation28 + $0x180] sm:$0xff] }
 0x954   :  { %v6353_v58 = vpack.c.bf16 %v3755_v56, %v3753_v55  ;;  %v2584_v53 = vld [vmem:[#allocation25 + $0x40] sm:$0xff] }
 0x955   :  { %3096 = vmatmul.mubr.f32.gmra.mrb[24].mxu1 %v7965_v48  ;;  %v3781_v56 = vld [vmem:[#allocation28 + $0x260] sm:$0xff] }
 0x956   :  { %6266 = vmatpush1.bf16.msra.mxu1 %v6265_v61  ;;  %5442 = vmatprep.mubr.msk.f32.mxu1 %vm2029_vm5, %v7941_v31  ;;  %v3271_v31 = vld [vmem:[#allocation23 + $0x4e0] sm:$0xff] }
 0x957   :  { %6268 = vmatprep.subr.bf16.mxu1 %v6267_v62  ;;  %v6281_v26 = vpack.c.bf16 %v3273_v23, %v3271_v31  ;;  %v3757_v61 = vld [vmem:[#allocation28 + $0x1a0] sm:$0xff]  ;;  %v3770_v31 = vld [vmem:[#allocation28 + $0x208] sm:$0xff]  ;;  %v3772_v23 = vld [vmem:[#allocation28 + $0x218] sm:$0xff] }
 0x958   :  { %v6367_v18 = vpack.c.bf16 %v3772_v23, %v3770_v31 }
 0x95a   :  { %6270 = vmatpush1.bf16.msra.mxu1 %v6269_v5  ;;  %v3761_v5 = vld [vmem:[#allocation28 + $0x1c0] sm:$0xff] }
 0x95b   :  { %6272 = vmatprep.subr.bf16.mxu1 %v6271_v6  ;;  %v3763_v6 = vld [vmem:[#allocation28 + $0x1d0] sm:$0xff] }
 0x95c   :  { %v6361_v8 = vpack.c.bf16 %v3763_v6, %v3761_v5  ;;  %v3791_v5 = vld [vmem:[#allocation28 + $0x2b0] sm:$0xff]  ;;  %v3794_v6 = vld [vmem:[#allocation28 + $0x2c8] sm:$0xff] }
 0x95e   :  { %6274 = vmatpush1.bf16.msra.mxu1 %v6273_v11 }
 0x95f   :  { %6276 = vmatprep.subr.bf16.mxu1 %v6275_v12  ;;  %v6363_v12 = vpack.c.bf16 %v3768_v9, %v3766_v7  ;;  %v3796_v7 = vld [vmem:[#allocation28 + $0x2d8] sm:$0xff] }
 0x962   :  { %6278 = vmatpush1.bf16.msra.mxu1 %v6277_v21 }
 0x963   :  { %6280 = vmatprep.subr.bf16.mxu1 %v6279_v22 }
 0x966   :  { %6282 = vmatpush1.bf16.msra.mxu1 %v6281_v26  ;;  %v6365_v26 = vpack.c.bf16 %v3767_v14, %v3765_v13  ;;  %v2441_v13 = vld [vmem:[#allocation25 + $0x10] sm:$0xff] }
 0x967   :  { %6284 = vmatprep.subr.bf16.mxu1 %v6283_v17 }
 0x96a   :  { %6286 = vmatpush1.bf16.msra.mxu1 %v6285_v30  ;;  %v3769_v30 = vld [vmem:[#allocation28 + $0x200] sm:$0xff] }
 0x96b   :  { %6288 = vmatprep.subr.bf16.mxu1 %v6287_v35  ;;  %v3771_v35 = vld [vmem:[#allocation28 + $0x210] sm:$0xff] }
 0x96c   :  { %v6369_v38 = vpack.c.bf16 %v3771_v35, %v3769_v30  ;;  %v2972_v30 = vld [vmem:[#allocation25 + $0x80] sm:$0xff]  ;;  %v2973_v35 = vld [vmem:[#allocation25 + $0x88] sm:$0xff] }
 0x96e   :  { %6290 = vmatpush1.bf16.msra.mxu1 %v6289_v39  ;;  %v6371_v39 = vpack.c.bf16 %v3776_v36, %v3774_v20 }
 0x96f   :  { %6292 = vmatprep.subr.bf16.mxu1 %v6291_v40  ;;  %v3773_v40 = vld [vmem:[#allocation28 + $0x220] sm:$0xff] }
 0x972   :  { %6294 = vmatpush1.bf16.msra.mxu1 %v6293_v46  ;;  %v6373_v46 = vpack.c.bf16 %v3775_v57, %v3773_v40  ;;  %v3572_v57 = vld [vmem:[#allocation28 + $0x8] sm:$0xff] }
 0x973   :  { %6296 = vmatprep.subr.bf16.mxu1 %v6295_v47  ;;  %v6375_v47 = vpack.c.bf16 %v3780_v43, %v3778_v42  ;;  %v3574_v42 = vld [vmem:[#allocation28 + $0x18] sm:$0xff] }
 0x976   :  { %6298 = vmatpush1.bf16.msra.mxu1 %v6297_v51  ;;  %v3782_v51 = vld [vmem:[#allocation28 + $0x268] sm:$0xff] }
 0x977   :  { %6352 = vmatprep.subr.bf16.mxu1 %v6351_v54  ;;  %v6377_v54 = vpack.c.bf16 %v3779_v50, %v3777_v49  ;;  %v6379_v55 = vpack.c.bf16 %v3784_v52, %v3782_v51  ;;  %v3576_v49 = vld [vmem:[#allocation28 + $0x28] sm:$0xff]  ;;  %v3578_v50 = vld [vmem:[#allocation28 + $0x38] sm:$0xff]  ;;  %v6303_v51 = vpack.c.bf16 %v3574_v42, %v3572_v57  ;;  %v3605_v57 = vld [vmem:[#allocation28 + $0x110] sm:$0xff] }
 0x978   :  { %v3240_v52 = vld [vmem:[#allocation25 + $0x90] sm:$0xff] }
 0x979   :  { %3356 = vmatmul.mubr.f32.vlgmr.msra.gmra.mrb[26].mxu1 %v7943_v15  ;;  %v6355_v15 = vpack.c.bf16 %v3760_v60, %v3758_v59  ;;  %v3786_v59 = vld [vmem:[#allocation28 + $0x288] sm:$0xff]  ;;  %v3788_v60 = vld [vmem:[#allocation28 + $0x298] sm:$0xff] }
 0x97a   :  { %5443 = vmatprep.mubr.msk.f32.mxu1 %vm2029_vm5, %v7945_v37  ;;  %6354 = vmatpush1.bf16.msra.mxu1 %v6353_v58  ;;  %v3759_v37 = vld [vmem:[#allocation28 + $0x1b0] sm:$0xff]  ;;  %v3608_v42 = vld [vmem:[#allocation28 + $0x128] sm:$0xff] }
 0x97b   :  { %6356 = vmatprep.subr.bf16.mxu1 %v6355_v15  ;;  %v6357_v63 = vpack.c.bf16 %v3759_v37, %v3757_v61  ;;  %v3783_v58 = vld [vmem:[#allocation28 + $0x270] sm:$0xff]  ;;  %v2585_v15 = vld [vmem:[#allocation25 + $0x48] sm:$0xff]  ;;  %v6383_v37 = vpack.c.bf16 %v3788_v60, %v3786_v59  ;;  %v3582_v59 = vld [vmem:[#allocation28 + $0x58] sm:$0xff] }
 0x97c   :  { %v6381_v61 = vpack.c.bf16 %v3783_v58, %v3781_v56  ;;  %v3577_v56 = vld [vmem:[#allocation28 + $0x30] sm:$0xff]  ;;  %v3580_v58 = vld [vmem:[#allocation28 + $0x48] sm:$0xff] }
 0x97d   :  { %3362 = vmatmul.mubr.f32.gmra.mrb[28].mxu1 %v7955_v41  ;;  %v3241_v60 = vld [vmem:[#allocation25 + $0x98] sm:$0xff] }
 0x97e   :  { %5444 = vmatprep.mubr.msk.f32.mxu1 %vm2029_vm5, %v7959_v44  ;;  %v3762_v44 = vld [vmem:[#allocation28 + $0x1c8] sm:$0xff]  ;;  %6358 = vmatpush1.bf16.msra.mxu1 %v6357_v63 }
 0x97f   :  { %v6359_v4 = vpack.c.bf16 %v3764_v2, %v3762_v44  ;;  %v3790_v63 = vld [vmem:[#allocation28 + $0x2a8] sm:$0xff]  ;;  %v3792_v44 = vld [vmem:[#allocation28 + $0x2b8] sm:$0xff] }
 0x980   :  { %v2586_v2 = vld [vmem:[#allocation25 + $0x50] sm:$0xff] }
 0x981   :  { %3368 = vmatmul.mubr.f32.gmra.mrb[30].mxu1 %v7965_v48  ;;  %6360 = vmatprep.subr.bf16.mxu1 %v6359_v4  ;;  %v3789_v4 = vld [vmem:[#allocation28 + $0x2a0] sm:$0xff] }
 0x982   :  { %6362 = vmatpush1.bf16.msra.mxu1 %v6361_v8  ;;  %v2587_v8 = vld [vmem:[#allocation25 + $0x58] sm:$0xff]  ;;  %v6389_v9 = vpack.c.bf16 %v3791_v5, %v3789_v4  ;;  %v3588_v5 = vld [vmem:[#allocation28 + $0x88] sm:$0xff] }
 0x983   :  { %6364 = vmatprep.subr.bf16.mxu1 %v6363_v12  ;;  %v2440_v12 = vld [vmem:[#allocation25 + $0x8] sm:$0xff]  ;;  %v3585_v4 = vld [vmem:[#allocation28 + $0x70] sm:$0xff] }
 0x986   :  { %6366 = vmatpush1.bf16.msra.mxu1 %v6365_v26 }
 0x987   :  { %6368 = vmatprep.subr.bf16.mxu1 %v6367_v18  ;;  %v2969_v18 = vld [vmem:[#allocation25 + $0x68] sm:$0xff] }
 0x98a   :  { %6370 = vmatpush1.bf16.msra.mxu1 %v6369_v38 }
 0x98b   :  { %6372 = vmatprep.subr.bf16.mxu1 %v6371_v39 }
 0x98e   :  { %6374 = vmatpush1.bf16.msra.mxu1 %v6373_v46  ;;  %v3573_v46 = vld [vmem:[#allocation28 + $0x10] sm:$0xff] }
 0x98f   :  { %6376 = vmatprep.subr.bf16.mxu1 %v6375_v47 }
 0x992   :  { %6378 = vmatpush1.bf16.msra.mxu1 %v6377_v54  ;;  %v6307_v54 = vpack.c.bf16 %v3578_v50, %v3576_v49  ;;  %v3609_v49 = vld [vmem:[#allocation28 + $0x130] sm:$0xff]  ;;  %v3612_v50 = vld [vmem:[#allocation28 + $0x148] sm:$0xff] }
 0x993   :  { %6380 = vmatprep.subr.bf16.mxu1 %v6379_v55  ;;  %v3575_v55 = vld [vmem:[#allocation28 + $0x20] sm:$0xff] }
 0x996   :  { %6382 = vmatpush1.bf16.msra.mxu1 %v6381_v61  ;;  %v6311_v61 = vpack.c.bf16 %v3582_v59, %v3580_v58  ;;  %v3795_v59 = vld [vmem:[#allocation28 + $0x2d0] sm:$0xff] }
 0x997   :  { %6384 = vmatprep.subr.bf16.mxu1 %v6383_v37  ;;  %v3579_v37 = vld [vmem:[#allocation28 + $0x40] sm:$0xff] }
 0x9f4   :  { %v2564_v62 = vpop.f32.mrb[18].mxu0  ;;  %v2699_v41 = vpop.f32.mrb[14].mxu1 }
 0x9f5   :  { %v2566_v48 = vpop.f32.mrb[19].mxu0  ;;  %v2701_v3 = vpop.f32.mrb[15].mxu1 }
 0x9f8   :  { %v2570_v10 = vpop.f32.mrb[20].mxu0  ;;  %v2705_v11 = vpop.f32.mrb[16].mxu1 }
 0x9f9   :  { %v6205_v16 = vpack.c.bf16 %v2570_v10, %v2564_v62  ;;  %v6201_v19 = vpack.c.bf16 %v2705_v11, %v2699_v41  ;;  %v2572_v21 = vpop.f32.mrb[21].mxu0  ;;  %v2707_v22 = vpop.f32.mrb[17].mxu1  ;;  %v3785_v62 = vld [vmem:[#allocation28 + $0x280] sm:$0xff]  ;;  %v3787_v41 = vld [vmem:[#allocation28 + $0x290] sm:$0xff]  ;;  %v6391_v10 = vpack.c.bf16 %v3796_v7, %v3794_v6  ;;  %v3590_v6 = vld [vmem:[#allocation28 + $0x98] sm:$0xff] }
 0x9fa   :  { %v6203_v24 = vpack.c.bf16 %v2572_v21, %v2566_v48  ;;  %v6199_v25 = vpack.c.bf16 %v2707_v22, %v2701_v3  ;;  %v6385_v48 = vpack.c.bf16 %v3787_v41, %v3785_v62  ;;  %v6387_v3 = vpack.c.bf16 %v3792_v44, %v3790_v63  ;;  %v2439_v11 = vld [vmem:[#allocation25] sm:$0xff]  ;;  %v3581_v62 = vld [vmem:[#allocation28 + $0x50] sm:$0xff]  ;;  %v3584_v41 = vld [vmem:[#allocation28 + $0x68] sm:$0xff] }
 0x9fb   :  { %v3586_v63 = vld [vmem:[#allocation28 + $0x78] sm:$0xff]  ;;  %v3243_v7 = vld [vmem:[#allocation25 + $0xa8] sm:$0xff] }
 0x9fc   :  { %v2576_v17 = vpop.f32.mrb[22].mxu0  ;;  %v2711_v28 = vpop.f32.mrb[18].mxu1  ;;  %6200 = vmatprep.subr.bf16.mxu0 %v6199_v25  ;;  %6386 = vmatpush1.bf16.msra.mxu1 %v6385_v48  ;;  %v3242_v44 = vld [vmem:[#allocation25 + $0xa0] sm:$0xff]  ;;  %v6315_v48 = vpack.c.bf16 %v3586_v63, %v3584_v41 }
 0x9fd   :  { %v2578_v29 = vpop.f32.mrb[23].mxu0  ;;  %v2713_v27 = vpop.f32.mrb[19].mxu1  ;;  %6202 = vmatpush1.bf16.msra.mxu0 %v6201_v19  ;;  %6388 = vmatprep.subr.bf16.mxu1 %v6387_v3  ;;  %v2442_v19 = vld [vmem:[#allocation25 + $0x18] sm:$0xff]  ;;  %v3583_v3 = vld [vmem:[#allocation28 + $0x60] sm:$0xff] }
 0x9fe   :  { %5415 = vmatprep.subr.msk.mxu0 %vm2020_vm6, %v2713_v27  ;;  %v2971_v27 = vld [vmem:[#allocation25 + $0x78] sm:$0xff]  ;;  %v3615_v63 = vld [vmem:[#allocation28 + $0x160] sm:$0xff] }
 0x9ff   :  { %v3800_v41 = vld [vmem:[#allocation28 + $0x2f8] sm:$0xff] }
 0xa00   :  { %6390 = vmatpush1.bf16.msra.mxu1 %v6389_v9  ;;  %v6319_v9 = vpack.c.bf16 %v3590_v6, %v3588_v5  ;;  %v3511_v6 = vld [vmem:[#allocation26] sm:$0x3] }
 0xa01   :  { %5416 = vmatpush1.msk.msra.mxu0 %vm2020_vm6, %v2711_v28  ;;  %6392 = vmatprep.subr.bf16.mxu1 %v6391_v10  ;;  %v2968_v28 = vld [vmem:[#allocation25 + $0x60] sm:$0xff] }
 0xa02   :  { %6204 = vmatprep.subr.bf16.mxu0 %v6203_v24  ;;  %5417 = vmatmul.mubr.msk.f32.vlgmr.msra.gmra.mrb[24].mxu0 %vm2716_vm8, %v2582_v32  ;;  %v2443_v24 = vld [vmem:[#allocation25 + $0x20] sm:$0xff] }
 0xa03   :  { %6206 = vmatpush1.bf16.msra.mxu0 %v6205_v16  ;;  %2811 = vmatprep.mubr.f32.mxu0 %v7337_v1  ;;  %v3587_v10 = vld [vmem:[#allocation28 + $0x80] sm:$0xff] }
 0xa04   :  { %5423 = vmatprep.subr.msk.mxu0 %vm2020_vm6, %v2578_v29  ;;  %v2970_v29 = vld [vmem:[#allocation25 + $0x70] sm:$0xff] }
 0xa06   :  { %5418 = vmatmul.mubr.msk.f32.gmra.mrb[26].mxu0 %vm2716_vm8, %v2583_v45  ;;  %v3571_v45 = vld [vmem:[#allocation28] sm:$0xff] }
 0xa07   :  { %5424 = vmatpush1.msk.msra.mxu0 %vm2020_vm6, %v2576_v17  ;;  %2817 = vmatprep.mubr.f32.mxu0 %v7337_v1  ;;  %v2444_v17 = vld [vmem:[#allocation25 + $0x28] sm:$0xff] }
 0xa0a   :  { %5419 = vmatmul.mubr.msk.f32.gmra.mrb[28].mxu0 %vm2716_vm8, %v2584_v53  ;;  %v6305_v53 = vpack.c.bf16 %v3573_v46, %v3571_v45 }
 0xa0b   :  { %2823 = vmatprep.mubr.f32.mxu0 %v7337_v1 }
 0xa0e   :  { %5420 = vmatmul.mubr.msk.f32.gmra.mrb[30].mxu0 %vm2716_vm8, %v2585_v15  ;;  %v6309_v15 = vpack.c.bf16 %v3577_v56, %v3575_v55  ;;  %v3613_v55 = vld [vmem:[#allocation28 + $0x150] sm:$0xff]  ;;  %v3793_v56 = vld [vmem:[#allocation28 + $0x2c0] sm:$0xff] }
 0xa0f   :  { %2829 = vmatprep.mubr.f32.mxu0 %v7337_v1 }
 0xa12   :  { %5421 = vmatmul.mubr.msk.f32.gmra.mrb[32].mxu0 %vm2716_vm8, %v2586_v2  ;;  %v6313_v2 = vpack.c.bf16 %v3581_v62, %v3579_v37  ;;  %v3798_v37 = vld [vmem:[#allocation28 + $0x2e8] sm:$0xff] }
 0xa13   :  { %2835 = vmatprep.mubr.f32.mxu0 %v7337_v1 }
 0xa16   :  { %5422 = vmatmul.mubr.msk.f32.gmra.mrb[34].mxu0 %vm2716_vm8, %v2587_v8  ;;  %v6317_v8 = vpack.c.bf16 %v3585_v4, %v3583_v3  ;;  %v3797_v3 = vld [vmem:[#allocation28 + $0x2e0] sm:$0xff]  ;;  %v3799_v4 = vld [vmem:[#allocation28 + $0x2f0] sm:$0xff] }
 0xa17   :  { %2930 = vmatprep.mubr.f32.mxu0 %v7337_v1  ;;  %v6397_v5 = vpack.c.bf16 %v3799_v4, %v3797_v3  ;;  %v4304_v3 = vld [vmem:[#allocation32 + $0x40] sm:$0xff]  ;;  %v4305_v4 = vld [vmem:[#allocation32 + $0x48] sm:$0xff] }
 0xa1a   :  { %5425 = vmatmul.mubr.msk.f32.vlgmr.msra.gmra.mrb[24].mxu0 %vm2716_vm8, %v2439_v11  ;;  %v3589_v11 = vld [vmem:[#allocation28 + $0x90] sm:$0xff] }
 0xa1b   :  { %2936 = vmatprep.mubr.f32.mxu0 %v7337_v1 }
 0xa1e   :  { %5426 = vmatmul.mubr.msk.f32.gmra.mrb[26].mxu0 %vm2716_vm8, %v2440_v12  ;;  %v3592_v12 = vld [vmem:[#allocation28 + $0xa8] sm:$0xff] }
 0xa1f   :  { %2942 = vmatprep.mubr.f32.mxu0 %v7337_v1 }
 0xa20   :  { %v3085_v14 = vpop.f32.mrb[20].mxu1 }
 0xa21   :  { %v3087_v16 = vpop.f32.mrb[21].mxu1 }
 0xa22   :  { %5427 = vmatmul.mubr.msk.f32.gmra.mrb[28].mxu0 %vm2716_vm8, %v2441_v13  ;;  %v3594_v13 = vld [vmem:[#allocation28 + $0xb8] sm:$0xff] }
 0xa23   :  { %2948 = vmatprep.mubr.f32.mxu0 %v7337_v1 }
 0xa24   :  { %v3091_v21 = vpop.f32.mrb[22].mxu1 }
 0xa25   :  { %v6253_v22 = vpack.c.bf16 %v3091_v21, %v3085_v14  ;;  %v3093_v31 = vpop.f32.mrb[23].mxu1  ;;  %v3244_v14 = vld [vmem:[#allocation25 + $0xb0] sm:$0xff]  ;;  %v3591_v21 = vld [vmem:[#allocation28 + $0xa0] sm:$0xff] }
 0xa26   :  { %v6251_v23 = vpack.c.bf16 %v3093_v31, %v3087_v16  ;;  %5428 = vmatmul.mubr.msk.f32.gmra.mrb[30].mxu0 %vm2716_vm8, %v2442_v19  ;;  %v6321_v16 = vpack.c.bf16 %v3589_v11, %v3587_v10  ;;  %v6323_v19 = vpack.c.bf16 %v3594_v13, %v3592_v12  ;;  %v3596_v31 = vld [vmem:[#allocation28 + $0xc8] sm:$0xff] }
 0xa27   :  { %2954 = vmatprep.mubr.f32.mxu0 %v7337_v1 }
 0xa28   :  { %v3097_v25 = vpop.f32.mrb[24].mxu1  ;;  %6252 = vmatprep.subr.bf16.mxu0 %v6251_v23  ;;  %v3598_v23 = vld [vmem:[#allocation28 + $0xd8] sm:$0xff] }
 0xa29   :  { %v3099_v26 = vpop.f32.mrb[25].mxu1  ;;  %6254 = vmatpush1.bf16.msra.mxu0 %v6253_v22  ;;  %v3593_v22 = vld [vmem:[#allocation28 + $0xb0] sm:$0xff] }
 0xa2a   :  { %5434 = vmatprep.subr.msk.mxu0 %vm2020_vm6, %v3099_v26  ;;  %5429 = vmatmul.mubr.msk.f32.gmra.mrb[32].mxu0 %vm2716_vm8, %v2443_v24  ;;  %v3245_v24 = vld [vmem:[#allocation25 + $0xb8] sm:$0xff]  ;;  %v6327_v26 = vpack.c.bf16 %v3598_v23, %v3596_v31 }
 0xa2b   :  { %2960 = vmatprep.mubr.f32.mxu0 %v7337_v1 }
 0xa2d   :  { %5435 = vmatpush1.msk.msra.mxu0 %vm2020_vm6, %v3097_v25  ;;  %v6325_v25 = vpack.c.bf16 %v3593_v22, %v3591_v21 }
 0xa2e   :  { %5430 = vmatmul.mubr.msk.f32.gmra.mrb[34].mxu0 %vm2716_vm8, %v2444_v17  ;;  %v3595_v17 = vld [vmem:[#allocation28 + $0xc0] sm:$0xff] }
 0xa2f   :  { %3190 = vmatprep.mubr.f32.mxu0 %v7337_v1 }
 0xa32   :  { %5436 = vmatmul.mubr.msk.f32.vlgmr.msra.gmra.mrb[24].mxu0 %vm2716_vm8, %v2968_v28  ;;  %v3597_v28 = vld [vmem:[#allocation28 + $0xd0] sm:$0xff] }
 0xa33   :  { %3196 = vmatprep.mubr.f32.mxu0 %v7337_v1 }
 0xa36   :  { %5437 = vmatmul.mubr.msk.f32.gmra.mrb[26].mxu0 %vm2716_vm8, %v2969_v18  ;;  %v3600_v18 = vld [vmem:[#allocation28 + $0xe8] sm:$0xff] }
 0xa37   :  { %3202 = vmatprep.mubr.f32.mxu0 %v7337_v1 }
 0xa3a   :  { %5438 = vmatmul.mubr.msk.f32.gmra.mrb[28].mxu0 %vm2716_vm8, %v2970_v29  ;;  %v3602_v29 = vld [vmem:[#allocation28 + $0xf8] sm:$0xff] }
 0xa3b   :  { %3208 = vmatprep.mubr.f32.mxu0 %v7337_v1 }
 0xa3e   :  { %5439 = vmatmul.mubr.msk.f32.gmra.mrb[30].mxu0 %vm2716_vm8, %v2971_v27  ;;  %v6329_v27 = vpack.c.bf16 %v3597_v28, %v3595_v17 }
 0xa3f   :  { %3214 = vmatprep.mubr.f32.mxu0 %v7337_v1 }
 0xa42   :  { %5440 = vmatmul.mubr.msk.f32.gmra.mrb[32].mxu0 %vm2716_vm8, %v2972_v30  ;;  %v6331_v30 = vpack.c.bf16 %v3602_v29, %v3600_v18 }
 0xa43   :  { %3220 = vmatprep.mubr.f32.mxu0 %v7337_v1 }
 0xa46   :  { %5441 = vmatmul.mubr.msk.f32.gmra.mrb[34].mxu0 %vm2716_vm8, %v2973_v35  ;;  %v3599_v35 = vld [vmem:[#allocation28 + $0xe0] sm:$0xff] }
 0xa47   :  { %3462 = vmatprep.mubr.f32.mxu0 %v7337_v1 }
 0xa4c   :  { %v3357_v20 = vpop.f32.mrb[26].mxu1 }
 0xa4d   :  { %v3359_v36 = vpop.f32.mrb[27].mxu1 }
 0xa50   :  { %v3363_v32 = vpop.f32.mrb[28].mxu1 }
 0xa51   :  { %v6301_v38 = vpack.c.bf16 %v3363_v32, %v3357_v20  ;;  %v3365_v39 = vpop.f32.mrb[29].mxu1  ;;  %v3601_v20 = vld [vmem:[#allocation28 + $0xf0] sm:$0xff]  ;;  %v3606_v32 = vld [vmem:[#allocation28 + $0x118] sm:$0xff] }
 0xa52   :  { %v6299_v40 = vpack.c.bf16 %v3365_v39, %v3359_v36  ;;  %v3604_v36 = vld [vmem:[#allocation28 + $0x108] sm:$0xff] }
 0xa53   :  { %v6335_v39 = vpack.c.bf16 %v3606_v32, %v3604_v36 }
 0xa54   :  { %v3369_v43 = vpop.f32.mrb[30].mxu1  ;;  %6300 = vmatprep.subr.bf16.mxu0 %v6299_v40  ;;  %v3603_v40 = vld [vmem:[#allocation28 + $0x100] sm:$0xff] }
 0xa55   :  { %v3371_v47 = vpop.f32.mrb[31].mxu1  ;;  %6302 = vmatpush1.bf16.msra.mxu0 %v6301_v38  ;;  %v6333_v38 = vpack.c.bf16 %v3601_v20, %v3599_v35  ;;  %v6337_v45 = vpack.c.bf16 %v3605_v57, %v3603_v40 }
 0xa56   :  { %5445 = vmatprep.subr.msk.mxu0 %vm2020_vm6, %v3371_v47  ;;  %v3607_v47 = vld [vmem:[#allocation28 + $0x120] sm:$0xff] }
 0xa59   :  { %5446 = vmatpush1.msk.msra.mxu0 %vm2020_vm6, %v3369_v43  ;;  %v3610_v43 = vld [vmem:[#allocation28 + $0x138] sm:$0xff] }
 0xa5a   :  { %5447 = vmatmul.mubr.msk.f32.vlgmr.msra.gmra.mrb[24].mxu0 %vm2716_vm8, %v3240_v52  ;;  %6304 = vmatprep.subr.bf16.mxu0 %v6303_v51  ;;  %v6339_v46 = vpack.c.bf16 %v3610_v43, %v3608_v42  ;;  %v3614_v51 = vld [vmem:[#allocation28 + $0x158] sm:$0xff]  ;;  %v6341_v52 = vpack.c.bf16 %v3609_v49, %v3607_v47 }
 0xa5b   :  { %3468 = vmatprep.mubr.f32.mxu0 %v7337_v1  ;;  %6306 = vmatpush1.bf16.msra.mxu0 %v6305_v53  ;;  %v6343_v53 = vpack.c.bf16 %v3614_v51, %v3612_v50  ;;  %v4296_v51 = vld [vmem:[#allocation32] sm:$0xff] }
 0xa5c   :  { %6308 = vmatprep.subr.bf16.mxu0 %v6307_v54  ;;  %v3611_v54 = vld [vmem:[#allocation28 + $0x140] sm:$0xff] }
 0xa5d   :  { %v6345_v58 = vpack.c.bf16 %v3613_v55, %v3611_v54  ;;  %v4299_v55 = vld [vmem:[#allocation32 + $0x18] sm:$0xff] }
 0xa5e   :  { %5448 = vmatmul.mubr.msk.f32.gmra.mrb[26].mxu0 %vm2716_vm8, %v3241_v60  ;;  %v6393_v60 = vpack.c.bf16 %v3795_v59, %v3793_v56  ;;  %v4301_v59 = vld [vmem:[#allocation32 + $0x28] sm:$0xff] }
 0xa5f   :  { %3474 = vmatprep.mubr.f32.mxu0 %v7337_v1  ;;  %6310 = vmatpush1.bf16.msra.mxu0 %v6309_v15  ;;  %v3616_v15 = vld [vmem:[#allocation28 + $0x168] sm:$0xff] }
 0xa60   :  { %6312 = vmatprep.subr.bf16.mxu0 %v6311_v61  ;;  %v3618_v61 = vld [vmem:[#allocation28 + $0x178] sm:$0xff]  ;;  %6394 = vmatpush1.bf16.msra.mxu1 %v6393_v60 }
 0xa61   :  { %v6347_v62 = vpack.c.bf16 %v3618_v61, %v3616_v15 }
 0xa62   :  { %5449 = vmatmul.mubr.msk.f32.gmra.mrb[28].mxu0 %vm2716_vm8, %v3242_v44  ;;  %v3617_v44 = vld [vmem:[#allocation28 + $0x170] sm:$0xff] }
 0xa63   :  { %3480 = vmatprep.mubr.f32.mxu0 %v7337_v1  ;;  %6314 = vmatpush1.bf16.msra.mxu0 %v6313_v2  ;;  %v6395_v2 = vpack.c.bf16 %v3800_v41, %v3798_v37  ;;  %v4302_v37 = vld [vmem:[#allocation32 + $0x30] sm:$0xff] }
 0xa64   :  { %6316 = vmatprep.subr.bf16.mxu0 %v6315_v48  ;;  %v6349_v48 = vpack.c.bf16 %v3617_v44, %v3615_v63 }
 0xa65   :  { %6396 = vmatprep.subr.bf16.mxu1 %v6395_v2 }
 0xa66   :  { %5450 = vmatmul.mubr.msk.f32.gmra.mrb[30].mxu0 %vm2716_vm8, %v3243_v7  ;;  %6398 = vmatpush1.bf16.msra.mxu1 %v6397_v5  ;;  %v3516_v7 = vrot.slane %v3511_v6, %v7799_v33 }
 0xa67   :  { %3486 = vmatprep.mubr.f32.mxu0 %v7337_v1  ;;  %6318 = vmatpush1.bf16.msra.mxu0 %v6317_v8  ;;  %v3520_v8 = vrot.slane %v3511_v6, %v7801_v34 }
 0xa68   :  { %6320 = vmatprep.subr.bf16.mxu0 %v6319_v9  ;;  %6423 = vmatprep.subr.bf16.mxu1 %v7335_v0 }
 0xa6a   :  { %5451 = vmatmul.mubr.msk.f32.gmra.mrb[32].mxu0 %vm2716_vm8, %v3244_v14 }
 0xa6b   :  { %3492 = vmatprep.mubr.f32.mxu0 %v7337_v1  ;;  %6322 = vmatpush1.bf16.msra.mxu0 %v6321_v16 }
 0xa6c   :  { %6324 = vmatprep.subr.bf16.mxu0 %v6323_v19 }
 0xa6e   :  { %5452 = vmatmul.mubr.msk.f32.gmra.mrb[34].mxu0 %vm2716_vm8, %v3245_v24 }
 0xa6f   :  { %6326 = vmatpush1.bf16.msra.mxu0 %v6325_v25 }
 0xa70   :  { %6328 = vmatprep.subr.bf16.mxu0 %v6327_v26 }
 0xa73   :  { %6330 = vmatpush1.bf16.msra.mxu0 %v6329_v27 }
 0xa74   :  { %6332 = vmatprep.subr.bf16.mxu0 %v6331_v30 }
 0xa77   :  { %6334 = vmatpush1.bf16.msra.mxu0 %v6333_v38 }
 0xa78   :  { %6336 = vmatprep.subr.bf16.mxu0 %v6335_v39 }
 0xa7b   :  { %6338 = vmatpush1.bf16.msra.mxu0 %v6337_v45 }
 0xa7c   :  { %6340 = vmatprep.subr.bf16.mxu0 %v6339_v46 }
 0xa7f   :  { %6342 = vmatpush1.bf16.msra.mxu0 %v6341_v52  ;;  %v4297_v52 = vld [vmem:[#allocation32 + $0x8] sm:$0xff] }
 0xa80   :  { %6344 = vmatprep.subr.bf16.mxu0 %v6343_v53  ;;  %v4298_v53 = vld [vmem:[#allocation32 + $0x10] sm:$0xff]  ;;  %v6424_v54 = vpack.c.bf16 %v4297_v52, %v4296_v51 }
 0xa81   :  { %v6427_v56 = vpack.c.bf16 %v4299_v55, %v4298_v53  ;;  %v4315_v55 = vld [vmem:[#allocation32 + $0x98] sm:$0xff] }
 0xa83   :  { %6346 = vmatpush1.bf16.msra.mxu0 %v6345_v58  ;;  %v4300_v58 = vld [vmem:[#allocation32 + $0x20] sm:$0xff] }
 0xa84   :  { %6348 = vmatprep.subr.bf16.mxu0 %v6347_v62  ;;  %v6430_v60 = vpack.c.bf16 %v4301_v59, %v4300_v58  ;;  %v4303_v62 = vld [vmem:[#allocation32 + $0x38] sm:$0xff]  ;;  %v4316_v59 = vld [vmem:[#allocation32 + $0xa0] sm:$0xff] }
 0xa85   :  { %v6433_v44 = vpack.c.bf16 %v4303_v62, %v4302_v37  ;;  %v3742_v62 = vld [vmem:[#allocation29 + $0x70] sm:$0xff] }
 0xa87   :  { %6350 = vmatpush1.bf16.msra.mxu0 %v6349_v48 }
 0xb2d   :  { %v3464_v9 = vpop.f32.mrb[24].mxu0 }
 0xb2e   :  { %v3523_v10 = vadd.f32 %v3516_v7, %v3464_v9  ;;  %v3466_v11 = vpop.f32.mrb[25].mxu0 }
 0xb2f   :  { %v3524_v12 = vadd.f32 %v3520_v8, %v3466_v11  ;;  %v6436_v11 = vpack.c.bf16 %v4305_v4, %v4304_v3  ;;  %v3749_v3 = vld [vmem:[#allocation29 + $0xa8] sm:$0xff]  ;;  %v3750_v4 = vld [vmem:[#allocation29 + $0xb0] sm:$0xff] }
 0xb30   :  { %v5453_v16 = vclamps-f32 %v3523_v10, 1.0 }
 0xb31   :  { %v5454_v13 = vclamps-f32 %v3524_v12, 1.0  ;;  %v3470_v14 = vpop.f32.mrb[26].mxu0 }
 0xb32   :  { %v3525_v19 = vadd.f32 %v3516_v7, %v3470_v14  ;;  %v3472_v21 = vpop.f32.mrb[27].mxu0  ;;  %v4306_v14 = vld [vmem:[#allocation32 + $0x50] sm:$0xff] }
 0xb33   :  { %v3526_v22 = vadd.f32 %v3520_v8, %v3472_v21  ;;  %5465 = vmatprep.mubr.msk.f32.mxu0 %vm3619_vm9, %v5454_v13  ;;  %5471 = vmatprep.mubr.msk.f32.mxu1 %vm3619_vm9, %v5454_v13 }
 0xb34   :  { %3703 = vmatmul.mubr.f32.vlgmr.msra.gmra.mrb[36].mxu0 %v5453_v16  ;;  %3866 = vmatmul.mubr.f32.vlgmr.msra.gmra.mrb[32].mxu1 %v5453_v16  ;;  %v5455_v24 = vclamps-f32 %v3525_v19, 1.0  ;;  %v4307_v16 = vld [vmem:[#allocation32 + $0x58] sm:$0xff] }
 0xb35   :  { %v5456_v31 = vclamps-f32 %v3526_v22, 1.0  ;;  %v3476_v23 = vpop.f32.mrb[28].mxu0  ;;  %6425 = vmatpush1.bf16.msra.mxu1 %v6424_v54  ;;  %v6439_v22 = vpack.c.bf16 %v4307_v16, %v4306_v14  ;;  %v4314_v54 = vld [vmem:[#allocation32 + $0x90] sm:$0xff]  ;;  %v3567_v14 = vld [vmem:[#allocation29 + $0x40] sm:$0xff]  ;;  %v3568_v16 = vld [vmem:[#allocation29 + $0x48] sm:$0xff] }
 0xb36   :  { %v3527_v25 = vadd.f32 %v3516_v7, %v3476_v23  ;;  %v3478_v26 = vpop.f32.mrb[29].mxu0  ;;  %6426 = vmatprep.subr.bf16.mxu1 %v7335_v0  ;;  %v6451_v58 = vpack.c.bf16 %v4315_v55, %v4314_v54  ;;  %v4503_v55 = vld [vmem:[#allocation32 + $0x100] sm:$0xff] }
 0xb37   :  { %v3528_v17 = vadd.f32 %v3520_v8, %v3478_v26  ;;  %5466 = vmatprep.mubr.msk.f32.mxu0 %vm3619_vm9, %v5456_v31  ;;  %5472 = vmatprep.mubr.msk.f32.mxu1 %vm3619_vm9, %v5456_v31 }
 0xb38   :  { %3709 = vmatmul.mubr.f32.gmra.mrb[38].mxu0 %v5455_v24  ;;  %3872 = vmatmul.mubr.f32.gmra.mrb[34].mxu1 %v5455_v24  ;;  %v5457_v29 = vclamps-f32 %v3527_v25, 1.0  ;;  %v4308_v24 = vld [vmem:[#allocation32 + $0x60] sm:$0xff]  ;;  %v4309_v25 = vld [vmem:[#allocation32 + $0x68] sm:$0xff] }
 0xb39   :  { %v5458_v28 = vclamps-f32 %v3528_v17, 1.0  ;;  %v3482_v18 = vpop.f32.mrb[30].mxu0  ;;  %6428 = vmatpush1.bf16.msra.mxu1 %v6427_v56  ;;  %v3740_v56 = vld [vmem:[#allocation29 + $0x60] sm:$0xff] }
 0xb3a   :  { %v3529_v27 = vadd.f32 %v3516_v7, %v3482_v18  ;;  %v3484_v30 = vpop.f32.mrb[31].mxu0  ;;  %6429 = vmatprep.subr.bf16.mxu1 %v7335_v0 }
 0xb3b   :  { %v3530_v35 = vadd.f32 %v3520_v8, %v3484_v30  ;;  %5467 = vmatprep.mubr.msk.f32.mxu0 %vm3619_vm9, %v5458_v28  ;;  %5473 = vmatprep.mubr.msk.f32.mxu1 %vm3619_vm9, %v5458_v28  ;;  %v6442_v30 = vpack.c.bf16 %v4309_v25, %v4308_v24  ;;  %v4248_v24 = vld [vmem:[#allocation31] sm:$0x3] }
 0xb3c   :  { %3715 = vmatmul.mubr.f32.gmra.mrb[40].mxu0 %v5457_v29  ;;  %3878 = vmatmul.mubr.f32.gmra.mrb[36].mxu1 %v5457_v29  ;;  %v5459_v32 = vclamps-f32 %v3529_v27, 1.0  ;;  %v8136_v25 = vrot.slane %v4248_v24, %v7801_v34 }
 0xb3d   :  { %v5460_v20 = vclamps-f32 %v3530_v35, 1.0  ;;  %v3488_v36 = vpop.f32.mrb[32].mxu0  ;;  %6431 = vmatpush1.bf16.msra.mxu1 %v6430_v60  ;;  %v4317_v60 = vld [vmem:[#allocation32 + $0xa8] sm:$0xff] }
 0xb3e   :  { %v3531_v38 = vadd.f32 %v3516_v7, %v3488_v36  ;;  %v3490_v39 = vpop.f32.mrb[33].mxu0  ;;  %6432 = vmatprep.subr.bf16.mxu1 %v7335_v0  ;;  %v4310_v36 = vld [vmem:[#allocation32 + $0x70] sm:$0xff]  ;;  %v6454_v37 = vpack.c.bf16 %v4317_v60, %v4316_v59 }
 0xb3f   :  { %v3532_v40 = vadd.f32 %v3520_v8, %v3490_v39  ;;  %5468 = vmatprep.mubr.msk.f32.mxu0 %vm3619_vm9, %v5460_v20  ;;  %5474 = vmatprep.mubr.msk.f32.mxu1 %vm3619_vm9, %v5460_v20 }
 0xb40   :  { %3721 = vmatmul.mubr.f32.gmra.mrb[42].mxu0 %v5459_v32  ;;  %3884 = vmatmul.mubr.f32.gmra.mrb[38].mxu1 %v5459_v32  ;;  %v5461_v43 = vclamps-f32 %v3531_v38, 1.0  ;;  %v4311_v32 = vld [vmem:[#allocation32 + $0x78] sm:$0xff] }
 0xb41   :  { %v5462_v57 = vclamps-f32 %v3532_v40, 1.0  ;;  %v3494_v42 = vpop.f32.mrb[34].mxu0  ;;  %6434 = vmatpush1.bf16.msra.mxu1 %v6433_v44  ;;  %v6445_v40 = vpack.c.bf16 %v4311_v32, %v4310_v36  ;;  %v3746_v44 = vld [vmem:[#allocation29 + $0x90] sm:$0xff] }
 0xb42   :  { %v3533_v45 = vadd.f32 %v3516_v7, %v3494_v42  ;;  %v3496_v46 = vpop.f32.mrb[35].mxu0  ;;  %6435 = vmatprep.subr.bf16.mxu1 %v7335_v0 }
 0xb43   :  { %v3534_v47 = vadd.f32 %v3520_v8, %v3496_v46  ;;  %5469 = vmatprep.mubr.msk.f32.mxu0 %vm3619_vm9, %v5462_v57  ;;  %5475 = vmatprep.mubr.msk.f32.mxu1 %vm3619_vm9, %v5462_v57 }
 0xb44   :  { %3727 = vmatmul.mubr.f32.gmra.mrb[44].mxu0 %v5461_v43  ;;  %3890 = vmatmul.mubr.f32.gmra.mrb[40].mxu1 %v5461_v43  ;;  %v5463_v50 = vclamps-f32 %v3533_v45, 1.0  ;;  %v4312_v43 = vld [vmem:[#allocation32 + $0x80] sm:$0xff]  ;;  %v4313_v45 = vld [vmem:[#allocation32 + $0x88] sm:$0xff] }
 0xb45   :  { %v5464_v49 = vclamps-f32 %v3534_v47, 1.0  ;;  %6437 = vmatpush1.bf16.msra.mxu1 %v6436_v11  ;;  %v6448_v53 = vpack.c.bf16 %v4313_v45, %v4312_v43  ;;  %v3564_v11 = vld [vmem:[#allocation29 + $0x28] sm:$0xff] }
 0xb46   :  { %6438 = vmatprep.subr.bf16.mxu1 %v7335_v0 }
 0xb47   :  { %5470 = vmatprep.mubr.msk.f32.mxu0 %vm3619_vm9, %v5464_v49  ;;  %5476 = vmatprep.mubr.msk.f32.mxu1 %vm3619_vm9, %v5464_v49 }
 0xb48   :  { %3733 = vmatmul.mubr.f32.gmra.mrb[46].mxu0 %v5463_v50  ;;  %3896 = vmatmul.mubr.f32.gmra.mrb[42].mxu1 %v5463_v50 }
 0xb49   :  { %4002 = vmatprep.mubr.f32.mxu0 %v7337_v1  ;;  %6440 = vmatpush1.bf16.msra.mxu1 %v6439_v22  ;;  %v4318_v22 = vld [vmem:[#allocation32 + $0xb0] sm:$0xff] }
 0xb4a   :  { %6441 = vmatprep.subr.bf16.mxu1 %v7335_v0 }
 0xb4d   :  { %6443 = vmatpush1.bf16.msra.mxu1 %v6442_v30 }
 0xb4e   :  { %6444 = vmatprep.subr.bf16.mxu1 %v7335_v0 }
 0xb51   :  { %6446 = vmatpush1.bf16.msra.mxu1 %v6445_v40  ;;  %v4500_v40 = vld [vmem:[#allocation32 + $0xe8] sm:$0xff] }
 0xb52   :  { %6447 = vmatprep.subr.bf16.mxu1 %v7335_v0 }
 0xb55   :  { %6449 = vmatpush1.bf16.msra.mxu1 %v6448_v53 }
 0xb56   :  { %6450 = vmatprep.subr.bf16.mxu1 %v7335_v0 }
 0xb59   :  { %6452 = vmatpush1.bf16.msra.mxu1 %v6451_v58 }
 0xb5a   :  { %6453 = vmatprep.subr.bf16.mxu1 %v7335_v0 }
 0xb5d   :  { %6455 = vmatpush1.bf16.msra.mxu1 %v6454_v37 }
 0xb5e   :  { %6456 = vmatprep.subr.bf16.mxu1 %v7335_v0 }
 0xc07   :  { %v8062_v15 = vpop.f32.mrb[36].mxu0  ;;  %v3867_v61 = vpop.f32.mrb[32].mxu1 }
 0xc08   :  { %v8065_v41 = vpop.f32.mrb[37].mxu0  ;;  %v3869_v63 = vpop.f32.mrb[33].mxu1 }
 0xc0b   :  { %v8067_v2 = vpop.f32.mrb[38].mxu0  ;;  %v3873_v48 = vpop.f32.mrb[34].mxu1 }
 0xc0c   :  { %v6413_v5 = vpack.c.bf16 %v8067_v2, %v8062_v15  ;;  %v6401_v6 = vpack.c.bf16 %v3873_v48, %v3867_v61  ;;  %v3712_v7 = vpop.f32.mrb[39].mxu0  ;;  %v3875_v8 = vpop.f32.mrb[35].mxu1  ;;  %v3741_v61 = vld [vmem:[#allocation29 + $0x68] sm:$0xff]  ;;  %v3743_v15 = vld [vmem:[#allocation29 + $0x78] sm:$0xff]  ;;  %v3748_v48 = vld [vmem:[#allocation29 + $0xa0] sm:$0xff] }
 0xc0d   :  { %v6411_v9 = vpack.c.bf16 %v3712_v7, %v8065_v41  ;;  %v6399_v10 = vpack.c.bf16 %v3875_v8, %v3869_v63  ;;  %v3744_v41 = vld [vmem:[#allocation29 + $0x80] sm:$0xff]  ;;  %v3745_v63 = vld [vmem:[#allocation29 + $0x88] sm:$0xff]  ;;  %v3747_v2 = vld [vmem:[#allocation29 + $0x98] sm:$0xff] }
 0xc0e   :  { %v3560_v7 = vld [vmem:[#allocation29 + $0x8] sm:$0xff]  ;;  %v3561_v8 = vld [vmem:[#allocation29 + $0x10] sm:$0xff] }
 0xc0f   :  { %v8073_v12 = vpop.f32.mrb[40].mxu0  ;;  %v3879_v13 = vpop.f32.mrb[36].mxu1  ;;  %6400 = vmatprep.subr.bf16.mxu0 %v6399_v10  ;;  %v3563_v10 = vld [vmem:[#allocation29 + $0x20] sm:$0xff] }
 0xc10   :  { %v3718_v19 = vpop.f32.mrb[41].mxu0  ;;  %v3881_v21 = vpop.f32.mrb[37].mxu1  ;;  %6402 = vmatpush1.bf16.msra.mxu0 %v6401_v6  ;;  %v3559_v6 = vld [vmem:[#allocation29] sm:$0xff] }
 0xc13   :  { %v3722_v31 = vpop.f32.mrb[42].mxu0  ;;  %v3885_v23 = vpop.f32.mrb[38].mxu1 }
 0xc14   :  { %v6417_v26 = vpack.c.bf16 %v3722_v31, %v8073_v12  ;;  %v6405_v17 = vpack.c.bf16 %v3885_v23, %v3879_v13  ;;  %v3724_v28 = vpop.f32.mrb[43].mxu0  ;;  %v3887_v18 = vpop.f32.mrb[39].mxu1  ;;  %v3565_v12 = vld [vmem:[#allocation29 + $0x30] sm:$0xff]  ;;  %v3566_v13 = vld [vmem:[#allocation29 + $0x38] sm:$0xff] }
 0xc15   :  { %v6415_v29 = vpack.c.bf16 %v3724_v28, %v3718_v19  ;;  %v6403_v27 = vpack.c.bf16 %v3887_v18, %v3881_v21  ;;  %v3569_v19 = vld [vmem:[#allocation29 + $0x50] sm:$0xff]  ;;  %v3570_v21 = vld [vmem:[#allocation29 + $0x58] sm:$0xff] }
 0xc16   :  { %v4319_v31 = vld [vmem:[#allocation32 + $0xb8] sm:$0xff]  ;;  %v4496_v28 = vld [vmem:[#allocation32 + $0xc8] sm:$0xff] }
 0xc17   :  { %v3728_v35 = vpop.f32.mrb[44].mxu0  ;;  %v3891_v20 = vpop.f32.mrb[40].mxu1  ;;  %6404 = vmatprep.subr.bf16.mxu0 %v6403_v27  ;;  %v6457_v23 = vpack.c.bf16 %v4319_v31, %v4318_v22  ;;  %v4512_v22 = vld [vmem:[#allocation32 + $0x148] sm:$0xff] }
 0xc18   :  { %v3730_v38 = vpop.f32.mrb[45].mxu0  ;;  %v3893_v39 = vpop.f32.mrb[41].mxu1  ;;  %6406 = vmatpush1.bf16.msra.mxu0 %v6405_v17  ;;  %v4495_v17 = vld [vmem:[#allocation32 + $0xc0] sm:$0xff] }
 0xc19   :  { %6458 = vmatpush1.bf16.msra.mxu1 %v6457_v23  ;;  %v6460_v27 = vpack.c.bf16 %v4496_v28, %v4495_v17 }
 0xc1a   :  { %6459 = vmatprep.subr.bf16.mxu1 %v7335_v0 }
 0xc1b   :  { %v3734_v57 = vpop.f32.mrb[46].mxu0  ;;  %v3897_v42 = vpop.f32.mrb[42].mxu1 }
 0xc1c   :  { %v6421_v46 = vpack.c.bf16 %v3734_v57, %v3728_v35  ;;  %v6409_v47 = vpack.c.bf16 %v3897_v42, %v3891_v20  ;;  %v3736_v49 = vpop.f32.mrb[47].mxu0  ;;  %v3899_v50 = vpop.f32.mrb[43].mxu1  ;;  %v4497_v35 = vld [vmem:[#allocation32 + $0xd0] sm:$0xff]  ;;  %v4498_v20 = vld [vmem:[#allocation32 + $0xd8] sm:$0xff] }
 0xc1d   :  { %v6419_v51 = vpack.c.bf16 %v3736_v49, %v3730_v38  ;;  %v6407_v52 = vpack.c.bf16 %v3899_v50, %v3893_v39  ;;  %v6463_v32 = vpack.c.bf16 %v4498_v20, %v4497_v35  ;;  %v4499_v39 = vld [vmem:[#allocation32 + $0xe0] sm:$0xff]  ;;  %v4502_v49 = vld [vmem:[#allocation32 + $0xf8] sm:$0xff] }
 0xc1e   :  { %v6466_v45 = vpack.c.bf16 %v4500_v40, %v4499_v39  ;;  %v4516_v39 = vld [vmem:[#allocation32 + $0x168] sm:$0xff] }
 0xc1f   :  { %6408 = vmatprep.subr.bf16.mxu0 %v6407_v52 }
 0xc20   :  { %6410 = vmatpush1.bf16.msra.mxu0 %v6409_v47  ;;  %v4501_v47 = vld [vmem:[#allocation32 + $0xf0] sm:$0xff] }
 0xc21   :  { %6412 = vmatprep.subr.bf16.mxu0 %v6411_v9  ;;  %v3562_v9 = vld [vmem:[#allocation29 + $0x18] sm:$0xff]  ;;  %v6469_v53 = vpack.c.bf16 %v4502_v49, %v4501_v47 }
 0xc22   :  { %v4517_v49 = vld [vmem:[#allocation32 + $0x170] sm:$0xff] }
 0xc23   :  { %5477 = vmatmul.mubr.msk.f32.vlgmr.msra.gmra.mrb[48].mxu0 %vm2029_vm5, %v3740_v56  ;;  %v4504_v56 = vld [vmem:[#allocation32 + $0x108] sm:$0xff] }
 0xc24   :  { %6414 = vmatpush1.bf16.msra.mxu0 %v6413_v5  ;;  %4008 = vmatprep.mubr.f32.mxu0 %v7337_v1  ;;  %v3751_v5 = vld [vmem:[#allocation29 + $0xb8] sm:$0xff] }
 0xc25   :  { %6416 = vmatprep.subr.bf16.mxu0 %v6415_v29 }
 0xc27   :  { %5478 = vmatmul.mubr.msk.f32.gmra.mrb[50].mxu0 %vm2029_vm5, %v3741_v61  ;;  %v6472_v61 = vpack.c.bf16 %v4504_v56, %v4503_v55 }
 0xc28   :  { %6418 = vmatpush1.bf16.msra.mxu0 %v6417_v26  ;;  %4014 = vmatprep.mubr.f32.mxu0 %v7337_v1  ;;  %v8139_v26 = vrot.slane %v4248_v24, %v7799_v33 }
 0xc29   :  { %6420 = vmatprep.subr.bf16.mxu0 %v6419_v51 }
 0xc2b   :  { %5479 = vmatmul.mubr.msk.f32.gmra.mrb[52].mxu0 %vm2029_vm5, %v3742_v62  ;;  %v4505_v62 = vld [vmem:[#allocation32 + $0x110] sm:$0xff] }
 0xc2c   :  { %6422 = vmatpush1.bf16.msra.mxu0 %v6421_v46  ;;  %4020 = vmatprep.mubr.f32.mxu0 %v7337_v1 }
 0xc2f   :  { %5480 = vmatmul.mubr.msk.f32.gmra.mrb[54].mxu0 %vm2029_vm5, %v3743_v15  ;;  %v4506_v15 = vld [vmem:[#allocation32 + $0x118] sm:$0xff] }
 0xc30   :  { %4026 = vmatprep.mubr.f32.mxu0 %v7337_v1 }
 0xc33   :  { %5481 = vmatmul.mubr.msk.f32.gmra.mrb[56].mxu0 %vm2029_vm5, %v3744_v41 }
 0xc34   :  { %4032 = vmatprep.mubr.f32.mxu0 %v7337_v1 }
 0xc37   :  { %5482 = vmatmul.mubr.msk.f32.gmra.mrb[58].mxu0 %vm2029_vm5, %v3745_v63 }
 0xc38   :  { %4038 = vmatprep.mubr.f32.mxu0 %v7337_v1 }
 0xc3b   :  { %5483 = vmatmul.mubr.msk.f32.gmra.mrb[60].mxu0 %vm2029_vm5, %v3746_v44 }
 0xc3c   :  { %4044 = vmatprep.mubr.f32.mxu0 %v7337_v1 }
 0xc3f   :  { %5484 = vmatmul.mubr.msk.f32.gmra.mrb[62].mxu0 %vm2029_vm5, %v3747_v2  ;;  %v6475_v2 = vpack.c.bf16 %v4506_v15, %v4505_v62  ;;  %v4983_v62 = vld [vmem:[#allocation32 + $0x190] sm:$0xff]  ;;  %v4984_v15 = vld [vmem:[#allocation32 + $0x198] sm:$0xff] }
 0xc40   :  { %4050 = vmatprep.mubr.f32.mxu0 %v7337_v1 }
 0xc43   :  { %5485 = vmatmul.mubr.msk.f32.gmra.mrb[64].mxu0 %vm2029_vm5, %v3748_v48 }
 0xc44   :  { %4056 = vmatprep.mubr.f32.mxu0 %v7337_v1 }
 0xc47   :  { %5486 = vmatmul.mubr.msk.f32.gmra.mrb[66].mxu0 %vm2029_vm5, %v3749_v3  ;;  %v4507_v3 = vld [vmem:[#allocation32 + $0x120] sm:$0xff] }
 0xc48   :  { %4062 = vmatprep.mubr.f32.mxu0 %v7337_v1 }
 0xc4b   :  { %5487 = vmatmul.mubr.msk.f32.gmra.mrb[68].mxu0 %vm2029_vm5, %v3750_v4  ;;  %v4508_v4 = vld [vmem:[#allocation32 + $0x128] sm:$0xff] }
 0xc4c   :  { %4068 = vmatprep.mubr.f32.mxu0 %v7337_v1 }
 0xc4f   :  { %5488 = vmatmul.mubr.msk.f32.gmra.mrb[70].mxu0 %vm2029_vm5, %v3751_v5 }
 0xc50   :  { %4175 = vmatprep.mubr.f32.mxu0 %v7337_v1 }
 0xc53   :  { %5489 = vmatmul.mubr.msk.f32.vlgmr.msra.gmra.mrb[48].mxu0 %vm2029_vm5, %v3559_v6 }
 0xc54   :  { %4181 = vmatprep.mubr.f32.mxu0 %v7337_v1 }
 0xc57   :  { %5490 = vmatmul.mubr.msk.f32.gmra.mrb[50].mxu0 %vm2029_vm5, %v3560_v7 }
 0xc58   :  { %4187 = vmatprep.mubr.f32.mxu0 %v7337_v1 }
 0xc5b   :  { %5491 = vmatmul.mubr.msk.f32.gmra.mrb[52].mxu0 %vm2029_vm5, %v3561_v8  ;;  %v6478_v8 = vpack.c.bf16 %v4508_v4, %v4507_v3  ;;  %v4987_v3 = vld [vmem:[#allocation32 + $0x1b0] sm:$0xff]  ;;  %v4988_v4 = vld [vmem:[#allocation32 + $0x1b8] sm:$0xff] }
 0xc5c   :  { %4193 = vmatprep.mubr.f32.mxu0 %v7337_v1 }
 0xc5f   :  { %5492 = vmatmul.mubr.msk.f32.gmra.mrb[54].mxu0 %vm2029_vm5, %v3562_v9 }
 0xc60   :  { %4199 = vmatprep.mubr.f32.mxu0 %v7337_v1 }
 0xc63   :  { %5493 = vmatmul.mubr.msk.f32.gmra.mrb[56].mxu0 %vm2029_vm5, %v3563_v10  ;;  %v4509_v10 = vld [vmem:[#allocation32 + $0x130] sm:$0xff] }
 0xc64   :  { %4205 = vmatprep.mubr.f32.mxu0 %v7337_v1 }
 0xc67   :  { %5494 = vmatmul.mubr.msk.f32.gmra.mrb[58].mxu0 %vm2029_vm5, %v3564_v11  ;;  %v4510_v11 = vld [vmem:[#allocation32 + $0x138] sm:$0xff] }
 0xc68   :  { %4211 = vmatprep.mubr.f32.mxu0 %v7337_v1 }
 0xc6b   :  { %5495 = vmatmul.mubr.msk.f32.gmra.mrb[60].mxu0 %vm2029_vm5, %v3565_v12 }
 0xc6c   :  { %4217 = vmatprep.mubr.f32.mxu0 %v7337_v1 }
 0xc6f   :  { %5496 = vmatmul.mubr.msk.f32.gmra.mrb[62].mxu0 %vm2029_vm5, %v3566_v13 }
 0xc70   :  { %4223 = vmatprep.mubr.f32.mxu0 %v7337_v1 }
 0xc73   :  { %5497 = vmatmul.mubr.msk.f32.gmra.mrb[64].mxu0 %vm2029_vm5, %v3567_v14 }
 0xc74   :  { %4229 = vmatprep.mubr.f32.mxu0 %v7337_v1 }
 0xc77   :  { %5498 = vmatmul.mubr.msk.f32.gmra.mrb[66].mxu0 %vm2029_vm5, %v3568_v16  ;;  %v6481_v16 = vpack.c.bf16 %v4510_v11, %v4509_v10  ;;  %v4991_v11 = vld [vmem:[#allocation32 + $0x1d0] sm:$0xff] }
 0xc78   :  { %4235 = vmatprep.mubr.f32.mxu0 %v7337_v1 }
 0xc7b   :  { %5499 = vmatmul.mubr.msk.f32.gmra.mrb[68].mxu0 %vm2029_vm5, %v3569_v19 }
 0xc7c   :  { %4241 = vmatprep.mubr.f32.mxu0 %v7337_v1 }
 0xc7f   :  { %5500 = vmatmul.mubr.msk.f32.gmra.mrb[70].mxu0 %vm2029_vm5, %v3570_v21  ;;  %v4511_v21 = vld [vmem:[#allocation32 + $0x140] sm:$0xff] }
 0xc80   :  { %v6484_v17 = vpack.c.bf16 %v4512_v22, %v4511_v21  ;;  %v4994_v21 = vld [vmem:[#allocation32 + $0x1e8] sm:$0xff] }
 0xd26   :  { %v4177_v18 = vpop.f32.mrb[48].mxu0 }
 0xd27   :  { %v4179_v1 = vpop.f32.mrb[49].mxu0  ;;  %v8145_v30 = vadd.f32 %v8139_v26, %v4177_v18  ;;  %v4513_v18 = vld [vmem:[#allocation32 + $0x150] sm:$0xff] }
 0xd28   :  { %v8142_v29 = vadd.f32 %v8136_v25, %v4179_v1  ;;  %v4514_v1 = vld [vmem:[#allocation32 + $0x158] sm:$0xff] }
 0xd2a   :  { %v4183_v36 = vpop.f32.mrb[50].mxu0  ;;  %5501 = vmatprep.mubr.msk.f32.mxu1 %vm3619_vm9, %v8142_v29 }
 0xd2b   :  { %v4185_v34 = vpop.f32.mrb[51].mxu0  ;;  %4421 = vmatmul.mubr.f32.vlgmr.msra.gmra.mrb[44].mxu1 %v8145_v30  ;;  %v8154_v38 = vadd.f32 %v8139_v26, %v4183_v36  ;;  %v6487_v36 = vpack.c.bf16 %v4514_v1, %v4513_v18  ;;  %v4997_v18 = vld [vmem:[#allocation32 + $0x200] sm:$0xff]  ;;  %v4998_v1 = vld [vmem:[#allocation32 + $0x208] sm:$0xff] }
 0xd2c   :  { %v8151_v33 = vadd.f32 %v8136_v25, %v4185_v34  ;;  %6461 = vmatpush1.bf16.msra.mxu1 %v6460_v27 }
 0xd2d   :  { %6462 = vmatprep.subr.bf16.mxu1 %v7335_v0 }
 0xd2e   :  { %v4189_v57 = vpop.f32.mrb[52].mxu0  ;;  %5502 = vmatprep.mubr.msk.f32.mxu1 %vm3619_vm9, %v8151_v33 }
 0xd2f   :  { %v4191_v42 = vpop.f32.mrb[53].mxu0  ;;  %4426 = vmatmul.mubr.f32.gmra.mrb[46].mxu1 %v8154_v38  ;;  %v8164_v46 = vadd.f32 %v8139_v26, %v4189_v57 }
 0xd30   :  { %v8161_v43 = vadd.f32 %v8136_v25, %v4191_v42  ;;  %6464 = vmatpush1.bf16.msra.mxu1 %v6463_v32  ;;  %v4515_v32 = vld [vmem:[#allocation32 + $0x160] sm:$0xff] }
 0xd31   :  { %6465 = vmatprep.subr.bf16.mxu1 %v7335_v0 }
 0xd32   :  { %v4195_v50 = vpop.f32.mrb[54].mxu0  ;;  %5503 = vmatprep.mubr.msk.f32.mxu1 %vm3619_vm9, %v8161_v43 }
 0xd33   :  { %v4197_v51 = vpop.f32.mrb[55].mxu0  ;;  %4431 = vmatmul.mubr.f32.gmra.mrb[48].mxu1 %v8164_v46  ;;  %v8174_v54 = vadd.f32 %v8139_v26, %v4195_v50  ;;  %v4518_v50 = vld [vmem:[#allocation32 + $0x178] sm:$0xff] }
 0xd34   :  { %v8171_v52 = vadd.f32 %v8136_v25, %v4197_v51  ;;  %6467 = vmatpush1.bf16.msra.mxu1 %v6466_v45  ;;  %v6490_v45 = vpack.c.bf16 %v4516_v39, %v4515_v32  ;;  %v6493_v56 = vpack.c.bf16 %v4518_v50, %v4517_v49  ;;  %v5001_v39 = vld [vmem:[#allocation32 + $0x220] sm:$0xff]  ;;  %v5004_v49 = vld [vmem:[#allocation32 + $0x238] sm:$0xff] }
 0xd35   :  { %6468 = vmatprep.subr.bf16.mxu1 %v7335_v0 }
 0xd36   :  { %v4201_v58 = vpop.f32.mrb[56].mxu0  ;;  %5504 = vmatprep.mubr.msk.f32.mxu1 %vm3619_vm9, %v8171_v52 }
 0xd37   :  { %v4203_v59 = vpop.f32.mrb[57].mxu0  ;;  %4436 = vmatmul.mubr.f32.gmra.mrb[50].mxu1 %v8174_v54  ;;  %v8184_v37 = vadd.f32 %v8139_v26, %v4201_v58 }
 0xd38   :  { %v8181_v60 = vadd.f32 %v8136_v25, %v4203_v59  ;;  %6470 = vmatpush1.bf16.msra.mxu1 %v6469_v53  ;;  %v4981_v59 = vld [vmem:[#allocation32 + $0x180] sm:$0xff] }
 0xd39   :  { %6471 = vmatprep.subr.bf16.mxu1 %v7335_v0 }
 0xd3a   :  { %v4207_v41 = vpop.f32.mrb[58].mxu0  ;;  %5505 = vmatprep.mubr.msk.f32.mxu1 %vm3619_vm9, %v8181_v60 }
 0xd3b   :  { %v4209_v63 = vpop.f32.mrb[59].mxu0  ;;  %4441 = vmatmul.mubr.f32.gmra.mrb[52].mxu1 %v8184_v37  ;;  %v8194_v48 = vadd.f32 %v8139_v26, %v4207_v41  ;;  %v4985_v41 = vld [vmem:[#allocation32 + $0x1a0] sm:$0xff] }
 0xd3c   :  { %v8191_v44 = vadd.f32 %v8136_v25, %v4209_v63  ;;  %6473 = vmatpush1.bf16.msra.mxu1 %v6472_v61  ;;  %v4982_v61 = vld [vmem:[#allocation32 + $0x188] sm:$0xff] }
 0xd3d   :  { %6474 = vmatprep.subr.bf16.mxu1 %v7335_v0  ;;  %v4986_v63 = vld [vmem:[#allocation32 + $0x1a8] sm:$0xff] }
 0xd3e   :  { %v4213_v5 = vpop.f32.mrb[60].mxu0  ;;  %5506 = vmatprep.mubr.msk.f32.mxu1 %vm3619_vm9, %v8191_v44 }
 0xd3f   :  { %v4215_v6 = vpop.f32.mrb[61].mxu0  ;;  %4446 = vmatmul.mubr.f32.gmra.mrb[54].mxu1 %v8194_v48  ;;  %v8204_v9 = vadd.f32 %v8139_v26, %v4213_v5  ;;  %v6553_v5 = vpack.c.bf16 %v4988_v4, %v4987_v3 }
 0xd40   :  { %v8201_v7 = vadd.f32 %v8136_v25, %v4215_v6  ;;  %6476 = vmatpush1.bf16.msra.mxu1 %v6475_v2  ;;  %v6550_v2 = vpack.c.bf16 %v4986_v63, %v4985_v41  ;;  %v4989_v6 = vld [vmem:[#allocation32 + $0x1c0] sm:$0xff] }
 0xd41   :  { %6477 = vmatprep.subr.bf16.mxu1 %v7335_v0 }
 0xd42   :  { %v4219_v12 = vpop.f32.mrb[62].mxu0  ;;  %5507 = vmatprep.mubr.msk.f32.mxu1 %vm3619_vm9, %v8201_v7 }
 0xd43   :  { %v4221_v13 = vpop.f32.mrb[63].mxu0  ;;  %4451 = vmatmul.mubr.f32.gmra.mrb[56].mxu1 %v8204_v9  ;;  %v8214_v19 = vadd.f32 %v8139_v26, %v4219_v12  ;;  %v4992_v12 = vld [vmem:[#allocation32 + $0x1d8] sm:$0xff] }
 0xd44   :  { %v8211_v14 = vadd.f32 %v8136_v25, %v4221_v13  ;;  %6479 = vmatpush1.bf16.msra.mxu1 %v6478_v8  ;;  %v4990_v8 = vld [vmem:[#allocation32 + $0x1c8] sm:$0xff]  ;;  %v6559_v13 = vpack.c.bf16 %v4992_v12, %v4991_v11 }
 0xd45   :  { %6480 = vmatprep.subr.bf16.mxu1 %v7335_v0  ;;  %v6556_v10 = vpack.c.bf16 %v4990_v8, %v4989_v6 }
 0xd46   :  { %v4225_v31 = vpop.f32.mrb[64].mxu0  ;;  %5508 = vmatprep.mubr.msk.f32.mxu1 %vm3619_vm9, %v8211_v14 }
 0xd47   :  { %v4227_v23 = vpop.f32.mrb[65].mxu0  ;;  %4456 = vmatmul.mubr.f32.gmra.mrb[58].mxu1 %v8214_v19  ;;  %v8224_v28 = vadd.f32 %v8139_v26, %v4225_v31  ;;  %v4995_v31 = vld [vmem:[#allocation32 + $0x1f0] sm:$0xff] }
 0xd48   :  { %v8221_v24 = vadd.f32 %v8136_v25, %v4227_v23  ;;  %6482 = vmatpush1.bf16.msra.mxu1 %v6481_v16  ;;  %v4993_v16 = vld [vmem:[#allocation32 + $0x1e0] sm:$0xff]  ;;  %v4996_v23 = vld [vmem:[#allocation32 + $0x1f8] sm:$0xff] }
 0xd49   :  { %6483 = vmatprep.subr.bf16.mxu1 %v7335_v0  ;;  %v6562_v22 = vpack.c.bf16 %v4994_v21, %v4993_v16 }
 0xd4a   :  { %v4231_v27 = vpop.f32.mrb[66].mxu0  ;;  %5509 = vmatprep.mubr.msk.f32.mxu1 %vm3619_vm9, %v8221_v24 }
 0xd4b   :  { %v4233_v35 = vpop.f32.mrb[67].mxu0  ;;  %4461 = vmatmul.mubr.f32.gmra.mrb[60].mxu1 %v8224_v28  ;;  %v8234_v34 = vadd.f32 %v8139_v26, %v4231_v27  ;;  %v6568_v27 = vpack.c.bf16 %v4998_v1, %v4997_v18 }
 0xd4c   :  { %v8231_v20 = vadd.f32 %v8136_v25, %v4233_v35  ;;  %6485 = vmatpush1.bf16.msra.mxu1 %v6484_v17  ;;  %v6565_v17 = vpack.c.bf16 %v4996_v23, %v4995_v31  ;;  %v4999_v35 = vld [vmem:[#allocation32 + $0x210] sm:$0xff] }
 0xd4d   :  { %6486 = vmatprep.subr.bf16.mxu1 %v7335_v0 }
 0xd4e   :  { %v4237_v40 = vpop.f32.mrb[68].mxu0  ;;  %5510 = vmatprep.mubr.msk.f32.mxu1 %vm3619_vm9, %v8231_v20 }
 0xd4f   :  { %v4239_v57 = vpop.f32.mrb[69].mxu0  ;;  %4466 = vmatmul.mubr.f32.gmra.mrb[62].mxu1 %v8234_v34  ;;  %v8244_v47 = vadd.f32 %v8139_v26, %v4237_v40  ;;  %v5002_v40 = vld [vmem:[#allocation32 + $0x228] sm:$0xff] }
 0xd50   :  { %v8241_v42 = vadd.f32 %v8136_v25, %v4239_v57  ;;  %6488 = vmatpush1.bf16.msra.mxu1 %v6487_v36  ;;  %v5000_v36 = vld [vmem:[#allocation32 + $0x218] sm:$0xff]  ;;  %v6574_v57 = vpack.c.bf16 %v5002_v40, %v5001_v39 }
 0xd51   :  { %6489 = vmatprep.subr.bf16.mxu1 %v7335_v0  ;;  %v6571_v32 = vpack.c.bf16 %v5000_v36, %v4999_v35 }
 0xd52   :  { %v4243_v51 = vpop.f32.mrb[70].mxu0  ;;  %5511 = vmatprep.mubr.msk.f32.mxu1 %vm3619_vm9, %v8241_v42 }
 0xd53   :  { %v4245_v53 = vpop.f32.mrb[71].mxu0  ;;  %4471 = vmatmul.mubr.f32.gmra.mrb[64].mxu1 %v8244_v47  ;;  %v8254_v58 = vadd.f32 %v8139_v26, %v4243_v51  ;;  %v6547_v26 = vpack.c.bf16 %v4984_v15, %v4983_v62 }
 0xd54   :  { %v8251_v55 = vadd.f32 %v8136_v25, %v4245_v53  ;;  %6491 = vmatpush1.bf16.msra.mxu1 %v6490_v45  ;;  %v6544_v25 = vpack.c.bf16 %v4982_v61, %v4981_v59  ;;  %v5003_v45 = vld [vmem:[#allocation32 + $0x230] sm:$0xff] }
 0xd55   :  { %6492 = vmatprep.subr.bf16.mxu1 %v7335_v0  ;;  %v6577_v50 = vpack.c.bf16 %v5004_v49, %v5003_v45  ;;  %v4483_v49 = vld [vmem:[#allocation34 + $0x68] sm:$0xff] }
 0xd56   :  { %5512 = vmatprep.mubr.msk.f32.mxu1 %vm3619_vm9, %v8251_v55 }
 0xd57   :  { %4476 = vmatmul.mubr.f32.gmra.mrb[66].mxu1 %v8254_v58 }
 0xd58   :  { %6494 = vmatpush1.bf16.msra.mxu1 %v6493_v56  ;;  %5513 = vmatprep.mubr.msk.f32.mxu1 %vm3619_vm9, %v8142_v29 }
 0xd59   :  { %6543 = vmatprep.subr.bf16.mxu1 %v7335_v0 }
 0xd5b   :  { %4584 = vmatmul.mubr.f32.vlgmr.msra.gmra.mrb[68].mxu1 %v8145_v30 }
 0xd5c   :  { %5514 = vmatprep.mubr.msk.f32.mxu1 %vm3619_vm9, %v8151_v33  ;;  %6545 = vmatpush1.bf16.msra.mxu1 %v6544_v25 }
 0xd5d   :  { %6546 = vmatprep.subr.bf16.mxu1 %v7335_v0 }
 0xd5f   :  { %4589 = vmatmul.mubr.f32.gmra.mrb[70].mxu1 %v8154_v38 }
 0xd60   :  { %5515 = vmatprep.mubr.msk.f32.mxu1 %vm3619_vm9, %v8161_v43  ;;  %6548 = vmatpush1.bf16.msra.mxu1 %v6547_v26 }
 0xd61   :  { %6549 = vmatprep.subr.bf16.mxu1 %v7335_v0 }
 0xd63   :  { %4594 = vmatmul.mubr.f32.gmra.mrb[72].mxu1 %v8164_v46 }
 0xd64   :  { %5516 = vmatprep.mubr.msk.f32.mxu1 %vm3619_vm9, %v8171_v52  ;;  %6551 = vmatpush1.bf16.msra.mxu1 %v6550_v2 }
 0xd65   :  { %6552 = vmatprep.subr.bf16.mxu1 %v7335_v0 }
 0xd67   :  { %4599 = vmatmul.mubr.f32.gmra.mrb[74].mxu1 %v8174_v54 }
 0xd68   :  { %5517 = vmatprep.mubr.msk.f32.mxu1 %vm3619_vm9, %v8181_v60  ;;  %6554 = vmatpush1.bf16.msra.mxu1 %v6553_v5 }
 0xd69   :  { %6555 = vmatprep.subr.bf16.mxu1 %v7335_v0 }
 0xd6b   :  { %4604 = vmatmul.mubr.f32.gmra.mrb[76].mxu1 %v8184_v37 }
 0xd6c   :  { %5518 = vmatprep.mubr.msk.f32.mxu1 %vm3619_vm9, %v8191_v44  ;;  %6557 = vmatpush1.bf16.msra.mxu1 %v6556_v10 }
 0xd6d   :  { %6558 = vmatprep.subr.bf16.mxu1 %v7335_v0 }
 0xd6f   :  { %4609 = vmatmul.mubr.f32.gmra.mrb[78].mxu1 %v8194_v48 }
 0xd70   :  { %5519 = vmatprep.mubr.msk.f32.mxu1 %vm3619_vm9, %v8201_v7  ;;  %6560 = vmatpush1.bf16.msra.mxu1 %v6559_v13 }
 0xd71   :  { %6561 = vmatprep.subr.bf16.mxu1 %v7335_v0 }
 0xd73   :  { %4614 = vmatmul.mubr.f32.gmra.mrb[80].mxu1 %v8204_v9 }
 0xd74   :  { %5520 = vmatprep.mubr.msk.f32.mxu1 %vm3619_vm9, %v8211_v14  ;;  %6563 = vmatpush1.bf16.msra.mxu1 %v6562_v22 }
 0xd75   :  { %6564 = vmatprep.subr.bf16.mxu1 %v7335_v0 }
 0xd77   :  { %4619 = vmatmul.mubr.f32.gmra.mrb[82].mxu1 %v8214_v19 }
 0xd78   :  { %5521 = vmatprep.mubr.msk.f32.mxu1 %vm3619_vm9, %v8221_v24  ;;  %6566 = vmatpush1.bf16.msra.mxu1 %v6565_v17 }
 0xd79   :  { %6567 = vmatprep.subr.bf16.mxu1 %v7335_v0 }
 0xd7b   :  { %4624 = vmatmul.mubr.f32.gmra.mrb[84].mxu1 %v8224_v28 }
 0xd7c   :  { %5522 = vmatprep.mubr.msk.f32.mxu1 %vm3619_vm9, %v8231_v20  ;;  %6569 = vmatpush1.bf16.msra.mxu1 %v6568_v27 }
 0xd7d   :  { %6570 = vmatprep.subr.bf16.mxu1 %v7335_v0 }
 0xd7f   :  { %4629 = vmatmul.mubr.f32.gmra.mrb[86].mxu1 %v8234_v34 }
 0xd80   :  { %5523 = vmatprep.mubr.msk.f32.mxu1 %vm3619_vm9, %v8241_v42  ;;  %6572 = vmatpush1.bf16.msra.mxu1 %v6571_v32 }
 0xd81   :  { %6573 = vmatprep.subr.bf16.mxu1 %v7335_v0 }
 0xd83   :  { %4634 = vmatmul.mubr.f32.gmra.mrb[88].mxu1 %v8244_v47 }
 0xd84   :  { %5524 = vmatprep.mubr.msk.f32.mxu1 %vm3619_vm9, %v8251_v55  ;;  %6575 = vmatpush1.bf16.msra.mxu1 %v6574_v57 }
 0xd85   :  { %6576 = vmatprep.subr.bf16.mxu1 %v7335_v0  ;;  %v4482_v0 = vld [vmem:[#allocation34 + $0x60] sm:$0xff] }
 0xd86   :  { %5708 = vmatprep.mubr.msk.f32.mxu0 %vm4644_vm10, %v4482_v0  ;;  %v4484_v0 = vld [vmem:[#allocation34 + $0x70] sm:$0xff] }
 0xd87   :  { %4639 = vmatmul.mubr.f32.gmra.mrb[90].mxu1 %v8254_v58 }
 0xd88   :  { %6578 = vmatpush1.bf16.msra.mxu1 %v6577_v50  ;;  %5549 = vmatprep.mubr.msk.f32.mxu1 %vm3619_vm9, %v8142_v29 }
 0xd8b   :  { %5070 = vmatmul.mubr.f32.vlgmr.msra.gmra.mrb[92].mxu1 %v8145_v30 }
 0xd8c   :  { %5550 = vmatprep.mubr.msk.f32.mxu1 %vm3619_vm9, %v8151_v33 }
 0xd8f   :  { %5075 = vmatmul.mubr.f32.gmra.mrb[94].mxu1 %v8154_v38 }
 0xd90   :  { %5551 = vmatprep.mubr.msk.f32.mxu1 %vm3619_vm9, %v8161_v43 }
 0xd93   :  { %5080 = vmatmul.mubr.f32.gmra.mrb[96].mxu1 %v8164_v46 }
 0xd94   :  { %5552 = vmatprep.mubr.msk.f32.mxu1 %vm3619_vm9, %v8171_v52 }
 0xd97   :  { %5085 = vmatmul.mubr.f32.gmra.mrb[98].mxu1 %v8174_v54 }
 0xd98   :  { %5553 = vmatprep.mubr.msk.f32.mxu1 %vm3619_vm9, %v8181_v60 }
 0xd9b   :  { %5090 = vmatmul.mubr.f32.gmra.mrb[100].mxu1 %v8184_v37 }
 0xd9c   :  { %5554 = vmatprep.mubr.msk.f32.mxu1 %vm3619_vm9, %v8191_v44 }
 0xd9f   :  { %5095 = vmatmul.mubr.f32.gmra.mrb[102].mxu1 %v8194_v48 }
 0xda0   :  { %5555 = vmatprep.mubr.msk.f32.mxu1 %vm3619_vm9, %v8201_v7 }
 0xda3   :  { %5100 = vmatmul.mubr.f32.gmra.mrb[104].mxu1 %v8204_v9 }
 0xda4   :  { %5556 = vmatprep.mubr.msk.f32.mxu1 %vm3619_vm9, %v8211_v14 }
 0xda7   :  { %5105 = vmatmul.mubr.f32.gmra.mrb[106].mxu1 %v8214_v19 }
 0xda8   :  { %5557 = vmatprep.mubr.msk.f32.mxu1 %vm3619_vm9, %v8221_v24 }
 0xdab   :  { %5110 = vmatmul.mubr.f32.gmra.mrb[108].mxu1 %v8224_v28 }
 0xdac   :  { %5558 = vmatprep.mubr.msk.f32.mxu1 %vm3619_vm9, %v8231_v20 }
 0xdaf   :  { %5115 = vmatmul.mubr.f32.gmra.mrb[110].mxu1 %v8234_v34 }
 0xdb0   :  { %5559 = vmatprep.mubr.msk.f32.mxu1 %vm3619_vm9, %v8241_v42 }
 0xdb3   :  { %5120 = vmatmul.mubr.f32.gmra.mrb[112].mxu1 %v8244_v47 }
 0xdb4   :  { %5560 = vmatprep.mubr.msk.f32.mxu1 %vm3619_vm9, %v8251_v55 }
 0xdb7   :  { %5125 = vmatmul.mubr.f32.gmra.mrb[114].mxu1 %v8254_v58 }
 0xdfe   :  { %v4422_v29 = vpop.f32.mrb[44].mxu1 }
 0xdff   :  { %v4424_v30 = vpop.f32.mrb[45].mxu1 }
 0xe00   :  { %v4485_v30 = vld [vmem:[#allocation34 + $0x78] sm:$0xff] }
 0xe02   :  { %v4427_v33 = vpop.f32.mrb[46].mxu1 }
 0xe03   :  { %v8345_v38 = vpack.c.bf16 %v4427_v33, %v4422_v29  ;;  %v4429_v43 = vpop.f32.mrb[47].mxu1 }
 0xe06   :  { %v4432_v46 = vpop.f32.mrb[48].mxu1 }
 0xe07   :  { %v4434_v52 = vpop.f32.mrb[49].mxu1 }
 0xe0a   :  { %v4437_v54 = vpop.f32.mrb[50].mxu1 }
 0xe0b   :  { %v8347_v60 = vpack.c.bf16 %v4437_v54, %v4432_v46  ;;  %v4439_v37 = vpop.f32.mrb[51].mxu1  ;;  %v4486_v46 = vld [vmem:[#allocation34 + $0x80] sm:$0xff]  ;;  %v4487_v54 = vld [vmem:[#allocation34 + $0x88] sm:$0xff] }
 0xe0c   :  { %v4488_v37 = vld [vmem:[#allocation34 + $0x90] sm:$0xff] }
 0xe0e   :  { %v4442_v44 = vpop.f32.mrb[52].mxu1 }
 0xe0f   :  { %v4444_v48 = vpop.f32.mrb[53].mxu1 }
 0xe10   :  { %v4489_v48 = vld [vmem:[#allocation34 + $0x98] sm:$0xff] }
 0xe12   :  { %v4447_v7 = vpop.f32.mrb[54].mxu1 }
 0xe13   :  { %v8349_v9 = vpack.c.bf16 %v4447_v7, %v4442_v44  ;;  %v4449_v14 = vpop.f32.mrb[55].mxu1 }
 0xe14   :  { %v4490_v14 = vld [vmem:[#allocation34 + $0xa0] sm:$0xff] }
 0xe16   :  { %v4452_v19 = vpop.f32.mrb[56].mxu1 }
 0xe17   :  { %v4454_v24 = vpop.f32.mrb[57].mxu1 }
 0xe18   :  { %v4491_v24 = vld [vmem:[#allocation34 + $0xa8] sm:$0xff] }
 0xe1a   :  { %v4457_v28 = vpop.f32.mrb[58].mxu1 }
 0xe1b   :  { %v8351_v20 = vpack.c.bf16 %v4457_v28, %v4452_v19  ;;  %v4459_v34 = vpop.f32.mrb[59].mxu1  ;;  %v4492_v28 = vld [vmem:[#allocation34 + $0xb0] sm:$0xff] }
 0xe1e   :  { %v4462_v42 = vpop.f32.mrb[60].mxu1 }
 0xe1f   :  { %v4464_v47 = vpop.f32.mrb[61].mxu1 }
 0xe22   :  { %v4467_v51 = vpop.f32.mrb[62].mxu1 }
 0xe23   :  { %v8353_v53 = vpack.c.bf16 %v4467_v51, %v4462_v42  ;;  %v4469_v55 = vpop.f32.mrb[63].mxu1  ;;  %v4493_v42 = vld [vmem:[#allocation34 + $0xb8] sm:$0xff]  ;;  %v4284_v51 = vld [vmem:[#allocation34] sm:$0xff] }
 0xe26   :  { %v4472_v56 = vpop.f32.mrb[64].mxu1 }
 0xe27   :  { %v4474_v58 = vpop.f32.mrb[65].mxu1 }
 0xe2a   :  { %v4477_v59 = vpop.f32.mrb[66].mxu1 }
 0xe2b   :  { %v8355_v61 = vpack.c.bf16 %v4477_v59, %v4472_v56  ;;  %v4479_v25 = vpop.f32.mrb[67].mxu1  ;;  %v4285_v56 = vld [vmem:[#allocation34 + $0x8] sm:$0xff] }
 0xe2c   :  { %v4287_v25 = vld [vmem:[#allocation34 + $0x18] sm:$0xff] }
 0xe2e   :  { %v4585_v62 = vpop.f32.mrb[68].mxu1 }
 0xe2f   :  { %v4587_v15 = vpop.f32.mrb[69].mxu1 }
 0xe32   :  { %v4590_v26 = vpop.f32.mrb[70].mxu1 }
 0xe33   :  { %v6495_v41 = vpack.c.bf16 %v4590_v26, %v4585_v62  ;;  %v4592_v63 = vpop.f32.mrb[71].mxu1  ;;  %v4288_v26 = vld [vmem:[#allocation34 + $0x20] sm:$0xff] }
 0xe35   :  { %6496 = vmatprep.subr.bf16.mxu0 %v6495_v41 }
 0xe36   :  { %v4595_v2 = vpop.f32.mrb[72].mxu1  ;;  %6498 = vmatpush3.bf16.msra.mxu0 %v6495_v41  ;;  %v4289_v41 = vld [vmem:[#allocation34 + $0x28] sm:$0xff] }
 0xe37   :  { %v4597_v3 = vpop.f32.mrb[73].mxu1 }
 0xe3a   :  { %v4600_v4 = vpop.f32.mrb[74].mxu1 }
 0xe3b   :  { %v6499_v5 = vpack.c.bf16 %v4600_v4, %v4595_v2  ;;  %v4602_v6 = vpop.f32.mrb[75].mxu1  ;;  %v4290_v2 = vld [vmem:[#allocation34 + $0x30] sm:$0xff]  ;;  %v4291_v4 = vld [vmem:[#allocation34 + $0x38] sm:$0xff] }
 0xe3d   :  { %6500 = vmatprep.subr.bf16.mxu0 %v6499_v5 }
 0xe3e   :  { %v4605_v8 = vpop.f32.mrb[76].mxu1  ;;  %6502 = vmatpush3.bf16.msra.mxu0 %v6499_v5 }
 0xe3f   :  { %v4607_v10 = vpop.f32.mrb[77].mxu1 }
 0xe42   :  { %v4610_v11 = vpop.f32.mrb[78].mxu1 }
 0xe43   :  { %v6503_v12 = vpack.c.bf16 %v4610_v11, %v4605_v8  ;;  %v4612_v13 = vpop.f32.mrb[79].mxu1  ;;  %v4292_v8 = vld [vmem:[#allocation34 + $0x40] sm:$0xff]  ;;  %v4293_v11 = vld [vmem:[#allocation34 + $0x48] sm:$0xff] }
 0xe44   :  { %v4294_v13 = vld [vmem:[#allocation34 + $0x50] sm:$0xff] }
 0xe45   :  { %6504 = vmatprep.subr.bf16.mxu0 %v6503_v12 }
 0xe46   :  { %v4615_v16 = vpop.f32.mrb[80].mxu1  ;;  %6506 = vmatpush3.bf16.msra.mxu0 %v6503_v12 }
 0xe47   :  { %v4617_v21 = vpop.f32.mrb[81].mxu1 }
 0xe48   :  { %v4295_v21 = vld [vmem:[#allocation34 + $0x58] sm:$0xff] }
 0xe4a   :  { %v4620_v22 = vpop.f32.mrb[82].mxu1 }
 0xe4b   :  { %v6507_v31 = vpack.c.bf16 %v4620_v22, %v4615_v16  ;;  %v4622_v23 = vpop.f32.mrb[83].mxu1 }
 0xe4c   :  { %v4968_v23 = vld [vmem:[#allocation34 + $0xc0] sm:$0xff] }
 0xe4d   :  { %6508 = vmatprep.subr.bf16.mxu0 %v6507_v31 }
 0xe4e   :  { %v4625_v17 = vpop.f32.mrb[84].mxu1  ;;  %6510 = vmatpush3.bf16.msra.mxu0 %v6507_v31 }
 0xe4f   :  { %v4627_v18 = vpop.f32.mrb[85].mxu1 }
 0xe50   :  { %v4970_v18 = vld [vmem:[#allocation34 + $0xd0] sm:$0xff] }
 0xe52   :  { %v4630_v1 = vpop.f32.mrb[86].mxu1 }
 0xe53   :  { %v6511_v27 = vpack.c.bf16 %v4630_v1, %v4625_v17  ;;  %v4632_v35 = vpop.f32.mrb[87].mxu1  ;;  %v4969_v17 = vld [vmem:[#allocation34 + $0xc8] sm:$0xff]  ;;  %v4971_v1 = vld [vmem:[#allocation34 + $0xd8] sm:$0xff] }
 0xe54   :  { %v4973_v35 = vld [vmem:[#allocation34 + $0xe8] sm:$0xff] }
 0xe55   :  { %6512 = vmatprep.subr.bf16.mxu0 %v6511_v27 }
 0xe56   :  { %v4635_v36 = vpop.f32.mrb[88].mxu1  ;;  %6514 = vmatpush3.bf16.msra.mxu0 %v6511_v27  ;;  %v4972_v27 = vld [vmem:[#allocation34 + $0xe0] sm:$0xff] }
 0xe57   :  { %v4637_v32 = vpop.f32.mrb[89].mxu1 }
 0xe58   :  { %v4975_v32 = vld [vmem:[#allocation34 + $0xf8] sm:$0xff] }
 0xe5a   :  { %v4640_v39 = vpop.f32.mrb[90].mxu1 }
 0xe5b   :  { %v6515_v40 = vpack.c.bf16 %v4640_v39, %v4635_v36  ;;  %v4642_v57 = vpop.f32.mrb[91].mxu1  ;;  %v4974_v36 = vld [vmem:[#allocation34 + $0xf0] sm:$0xff]  ;;  %v4976_v39 = vld [vmem:[#allocation34 + $0x100] sm:$0xff] }
 0xe5c   :  { %v4978_v57 = vld [vmem:[#allocation34 + $0x110] sm:$0xff] }
 0xe5d   :  { %6516 = vmatprep.subr.bf16.mxu0 %v6515_v40 }
 0xe5e   :  { %6518 = vmatpush3.bf16.msra.mxu0 %v6515_v40  ;;  %v5071_v45 = vpop.f32.mrb[92].mxu1  ;;  %v4977_v40 = vld [vmem:[#allocation34 + $0x108] sm:$0xff] }
 0xe5f   :  { %6520 = vmatprep.subr.bf16.mxu0 %v8345_v38  ;;  %v5073_v50 = vpop.f32.mrb[93].mxu1 }
 0xe61   :  { %5709 = vmatmul.mubr.msk.f32.vlgmr.msra.gmra.mrb[72].mxu0 %vm4644_vm10, %v4483_v49  ;;  %v5573_v49 = vld [vmem:[#allocation35] ss:$0 sm:$0xff] }
 0xe62   :  { %6522 = vmatpush3.bf16.msra.mxu0 %v8345_v38  ;;  %v5076_v29 = vpop.f32.mrb[94].mxu1  ;;  %5711 = vmatprep.mubr.msk.f32.mxu0 %vm4644_vm10, %v4484_v0 }
 0xe63   :  { %v6579_v33 = vpack.c.bf16 %v5076_v29, %v5071_v45  ;;  %6524 = vmatprep.subr.bf16.mxu0 %v8347_v60  ;;  %v5078_v43 = vpop.f32.mrb[95].mxu1  ;;  %v4979_v45 = vld [vmem:[#allocation34 + $0x118] sm:$0xff] }
 0xe65   :  { %5712 = vmatmul.mubr.msk.f32.gmra.mrb[74].mxu0 %vm4644_vm10, %v4485_v30 }
 0xe66   :  { %6526 = vmatpush3.bf16.msra.mxu0 %v8347_v60  ;;  %v5081_v52 = vpop.f32.mrb[96].mxu1  ;;  %5714 = vmatprep.mubr.msk.f32.mxu0 %vm4644_vm10, %v4486_v46 }
 0xe67   :  { %6528 = vmatprep.subr.bf16.mxu0 %v8349_v9  ;;  %v5083_v38 = vpop.f32.mrb[97].mxu1 }
 0xe69   :  { %5715 = vmatmul.mubr.msk.f32.gmra.mrb[76].mxu0 %vm4644_vm10, %v4487_v54 }
 0xe6a   :  { %6530 = vmatpush3.bf16.msra.mxu0 %v8349_v9  ;;  %v5086_v44 = vpop.f32.mrb[98].mxu1  ;;  %5717 = vmatprep.mubr.msk.f32.mxu0 %vm4644_vm10, %v4488_v37 }
 0xe6b   :  { %v6583_v7 = vpack.c.bf16 %v5086_v44, %v5081_v52  ;;  %6532 = vmatprep.subr.bf16.mxu0 %v8351_v20  ;;  %v5088_v60 = vpop.f32.mrb[99].mxu1 }
 0xe6d   :  { %5718 = vmatmul.mubr.msk.f32.gmra.mrb[78].mxu0 %vm4644_vm10, %v4489_v48 }
 0xe6e   :  { %6534 = vmatpush3.bf16.msra.mxu0 %v8351_v20  ;;  %v5091_v19 = vpop.f32.mrb[100].mxu1  ;;  %5720 = vmatprep.mubr.msk.f32.mxu0 %vm4644_vm10, %v4490_v14 }
 0xe6f   :  { %6536 = vmatprep.subr.bf16.mxu0 %v8353_v53  ;;  %v5093_v9 = vpop.f32.mrb[101].mxu1 }
 0xe71   :  { %5721 = vmatmul.mubr.msk.f32.gmra.mrb[80].mxu0 %vm4644_vm10, %v4491_v24 }
 0xe72   :  { %6538 = vmatpush3.bf16.msra.mxu0 %v8353_v53  ;;  %v5096_v34 = vpop.f32.mrb[102].mxu1  ;;  %5723 = vmatprep.mubr.msk.f32.mxu0 %vm4644_vm10, %v4492_v28  ;;  %v4286_v53 = vld [vmem:[#allocation34 + $0x10] sm:$0xff] }
 0xe73   :  { %v6587_v47 = vpack.c.bf16 %v5096_v34, %v5091_v19  ;;  %6540 = vmatprep.subr.bf16.mxu0 %v8355_v61  ;;  %v5098_v20 = vpop.f32.mrb[103].mxu1 }
 0xe75   :  { %5724 = vmatmul.mubr.msk.f32.gmra.mrb[82].mxu0 %vm4644_vm10, %v4493_v42 }
 0xe76   :  { %6542 = vmatpush3.bf16.msra.mxu0 %v8355_v61  ;;  %v5101_v55 = vpop.f32.mrb[104].mxu1  ;;  %5750 = vmatprep.mubr.msk.f32.mxu0 %vm4644_vm10, %v4284_v51 }
 0xe77   :  { %v5103_v58 = vpop.f32.mrb[105].mxu1  ;;  %6580 = vmatprep.subr.bf16.mxu0 %v6579_v33 }
 0xe79   :  { %5751 = vmatmul.mubr.msk.f32.vlgmr.msra.gmra.mrb[72].mxu0 %vm4644_vm10, %v4285_v56 }
 0xe7a   :  { %v5106_v59 = vpop.f32.mrb[106].mxu1  ;;  %6582 = vmatpush3.bf16.msra.mxu0 %v6579_v33  ;;  %5753 = vmatprep.mubr.msk.f32.mxu0 %vm4644_vm10, %v4286_v53 }
 0xe7b   :  { %v6591_v62 = vpack.c.bf16 %v5106_v59, %v5101_v55  ;;  %v5108_v15 = vpop.f32.mrb[107].mxu1  ;;  %6584 = vmatprep.subr.bf16.mxu0 %v6583_v7 }
 0xe7d   :  { %5754 = vmatmul.mubr.msk.f32.gmra.mrb[74].mxu0 %vm4644_vm10, %v4287_v25 }
 0xe7e   :  { %v5111_v61 = vpop.f32.mrb[108].mxu1  ;;  %6586 = vmatpush3.bf16.msra.mxu0 %v6583_v7  ;;  %5756 = vmatprep.mubr.msk.f32.mxu0 %vm4644_vm10, %v4288_v26 }
 0xe7f   :  { %v5113_v63 = vpop.f32.mrb[109].mxu1  ;;  %6588 = vmatprep.subr.bf16.mxu0 %v6587_v47 }
 0xe81   :  { %5757 = vmatmul.mubr.msk.f32.gmra.mrb[76].mxu0 %vm4644_vm10, %v4289_v41 }
 0xe82   :  { %v5116_v3 = vpop.f32.mrb[110].mxu1  ;;  %6590 = vmatpush3.bf16.msra.mxu0 %v6587_v47  ;;  %5759 = vmatprep.mubr.msk.f32.mxu0 %vm4644_vm10, %v4290_v2 }
 0xe83   :  { %v6595_v5 = vpack.c.bf16 %v5116_v3, %v5111_v61  ;;  %v5118_v6 = vpop.f32.mrb[111].mxu1  ;;  %6592 = vmatprep.subr.bf16.mxu0 %v6591_v62 }
 0xe85   :  { %5760 = vmatmul.mubr.msk.f32.gmra.mrb[78].mxu0 %vm4644_vm10, %v4291_v4 }
 0xe86   :  { %v5121_v10 = vpop.f32.mrb[112].mxu1  ;;  %6594 = vmatpush3.bf16.msra.mxu0 %v6591_v62  ;;  %5762 = vmatprep.mubr.msk.f32.mxu0 %vm4644_vm10, %v4292_v8 }
 0xe87   :  { %v5123_v12 = vpop.f32.mrb[113].mxu1  ;;  %6596 = vmatprep.subr.bf16.mxu0 %v6595_v5 }
 0xe89   :  { %5763 = vmatmul.mubr.msk.f32.gmra.mrb[80].mxu0 %vm4644_vm10, %v4293_v11 }
 0xe8a   :  { %v5126_v16 = vpop.f32.mrb[114].mxu1  ;;  %6598 = vmatpush3.bf16.msra.mxu0 %v6595_v5  ;;  %5765 = vmatprep.mubr.msk.f32.mxu0 %vm4644_vm10, %v4294_v13 }
 0xe8b   :  { %v6599_v22 = vpack.c.bf16 %v5126_v16, %v5121_v10  ;;  %v5128_v31 = vpop.f32.mrb[115].mxu1 }
 0xe8d   :  { %5766 = vmatmul.mubr.msk.f32.gmra.mrb[82].mxu0 %vm4644_vm10, %v4295_v21  ;;  %6600 = vmatprep.subr.bf16.mxu0 %v6599_v22 }
 0xe8e   :  { %6602 = vmatpush3.bf16.msra.mxu0 %v6599_v22  ;;  %5792 = vmatprep.mubr.msk.f32.mxu0 %vm4644_vm10, %v4968_v23 }
 0xe91   :  { %5793 = vmatmul.mubr.msk.f32.vlgmr.msra.gmra.mrb[72].mxu0 %vm4644_vm10, %v4969_v17 }
 0xe92   :  { %5795 = vmatprep.mubr.msk.f32.mxu0 %vm4644_vm10, %v4970_v18 }
 0xe95   :  { %5796 = vmatmul.mubr.msk.f32.gmra.mrb[74].mxu0 %vm4644_vm10, %v4971_v1 }
 0xe96   :  { %5798 = vmatprep.mubr.msk.f32.mxu0 %vm4644_vm10, %v4972_v27 }
 0xe99   :  { %5799 = vmatmul.mubr.msk.f32.gmra.mrb[76].mxu0 %vm4644_vm10, %v4973_v35 }
 0xe9a   :  { %5801 = vmatprep.mubr.msk.f32.mxu0 %vm4644_vm10, %v4974_v36 }
 0xe9d   :  { %5802 = vmatmul.mubr.msk.f32.gmra.mrb[78].mxu0 %vm4644_vm10, %v4975_v32 }
 0xe9e   :  { %5804 = vmatprep.mubr.msk.f32.mxu0 %vm4644_vm10, %v4976_v39 }
 0xea1   :  { %5805 = vmatmul.mubr.msk.f32.gmra.mrb[80].mxu0 %vm4644_vm10, %v4977_v40 }
 0xea2   :  { %5807 = vmatprep.mubr.msk.f32.mxu0 %vm4644_vm10, %v4978_v57 }
 0xea5   :  { %5808 = vmatmul.mubr.msk.f32.gmra.mrb[82].mxu0 %vm4644_vm10, %v4979_v45 }
 0xf64   :  { %v5794_v50 = vpop.f32.mrb[72].mxu0 }
 0xf65   :  { %v5311_v0 = vadd.f32 %v5794_v50, %v5573_v49  ;;  %v5232_v29 = vpop.f32.mrb[73].mxu0 }
 0xf66   :  { %v5310_v30 = vadd.f32 %v5573_v49, %v5232_v29 }
 0xf67   :  { %6751 = vtanh.f32 %v5311_v0 }
 0xf68   :  { %6753 = vtanh.f32 %v5310_v30  ;;  %v5797_v33 = vpop.f32.mrb[74].mxu0 }
 0xf69   :  { %v5313_v43 = vadd.f32 %v5797_v33, %v5573_v49  ;;  %v5242_v46 = vpop.f32.mrb[75].mxu0 }
 0xf6a   :  { %v5312_v52 = vadd.f32 %v5573_v49, %v5242_v46 }
 0xf6b   :  { %6755 = vtanh.f32 %v5313_v43 }
 0xf6c   :  { %6757 = vtanh.f32 %v5312_v52  ;;  %v5800_v54 = vpop.f32.mrb[76].mxu0 }
 0xf6d   :  { %v5315_v38 = vadd.f32 %v5800_v54, %v5573_v49  ;;  %v5252_v37 = vpop.f32.mrb[77].mxu0 }
 0xf6e   :  { %v5314_v44 = vadd.f32 %v5573_v49, %v5252_v37 }
 0xf6f   :  { %6759 = vtanh.f32 %v5315_v38 }
 0xf70   :  { %6761 = vtanh.f32 %v5314_v44  ;;  %v5803_v48 = vpop.f32.mrb[78].mxu0 }
 0xf71   :  { %v6752_v7 = vpop.eup %6751  ;;  %v5317_v60 = vadd.f32 %v5803_v48, %v5573_v49  ;;  %v5262_v14 = vpop.f32.mrb[79].mxu0 }
 0xf72   :  { %v6754_v19 = vpop.eup %6753  ;;  %5335 = vst [vmem:[#allocation37 + $0x8] sm:$0xff] %v6752_v7  ;;  %v5316_v24 = vadd.f32 %v5573_v49, %v5262_v14 }
 0xf73   :  { %5334 = vst [vmem:[#allocation37] sm:$0xff] %v6754_v19  ;;  %6763 = vtanh.f32 %v5317_v60 }
 0xf74   :  { %6765 = vtanh.f32 %v5316_v24  ;;  %v5806_v9 = vpop.f32.mrb[80].mxu0 }
 0xf75   :  { %v6756_v28 = vpop.eup %6755  ;;  %v5319_v34 = vadd.f32 %v5806_v9, %v5573_v49  ;;  %v5272_v42 = vpop.f32.mrb[81].mxu0 }
 0xf76   :  { %v6758_v47 = vpop.eup %6757  ;;  %5337 = vst [vmem:[#allocation37 + $0x18] sm:$0xff] %v6756_v28  ;;  %v5318_v20 = vadd.f32 %v5573_v49, %v5272_v42 }
 0xf77   :  { %5336 = vst [vmem:[#allocation37 + $0x10] sm:$0xff] %v6758_v47  ;;  %6767 = vtanh.f32 %v5319_v34 }
 0xf78   :  { %6769 = vtanh.f32 %v5318_v20  ;;  %v5809_v51 = vpop.f32.mrb[82].mxu0 }
 0xf79   :  { %v6760_v55 = vpop.eup %6759  ;;  %v5321_v56 = vadd.f32 %v5809_v51, %v5573_v49  ;;  %v5282_v58 = vpop.f32.mrb[83].mxu0 }
 0xf7a   :  { %v6762_v53 = vpop.eup %6761  ;;  %5339 = vst [vmem:[#allocation37 + $0x28] sm:$0xff] %v6760_v55  ;;  %v5320_v59 = vadd.f32 %v5573_v49, %v5282_v58 }
 0xf7b   :  { %5338 = vst [vmem:[#allocation37 + $0x20] sm:$0xff] %v6762_v53  ;;  %6771 = vtanh.f32 %v5321_v56 }
 0xf7c   :  { %6773 = vtanh.f32 %v5320_v59 }
 0xf7d   :  { %v6764_v25 = vpop.eup %6763 }
 0xf7e   :  { %v6766_v62 = vpop.eup %6765  ;;  %5341 = vst [vmem:[#allocation37 + $0x38] sm:$0xff] %v6764_v25 }
 0xf7f   :  { %5340 = vst [vmem:[#allocation37 + $0x30] sm:$0xff] %v6766_v62 }
 0xf81   :  { %v6768_v15 = vpop.eup %6767 }
 0xf82   :  { %v6770_v26 = vpop.eup %6769  ;;  %5343 = vst [vmem:[#allocation37 + $0x48] sm:$0xff] %v6768_v15 }
 0xf83   :  { %5342 = vst [vmem:[#allocation37 + $0x40] sm:$0xff] %v6770_v26 }
 0xf85   :  { %v6772_v61 = vpop.eup %6771 }
 0xf86   :  { %v6774_v41 = vpop.eup %6773  ;;  %5345 = vst [vmem:[#allocation37 + $0x58] sm:$0xff] %v6772_v61 }
 0xf87   :  { %5344 = vst [vmem:[#allocation37 + $0x50] sm:$0xff] %v6774_v41 }
 0xf88   :  { %7270 = shalt.err (!%p7267_p12)
}
 0xf89   :  { %s8477_s13 = sld [smem:[#allocation60_spill]] }
 0xf8f   :  { %s7271_s11 = scalar_lea.hbm %s8477_s13, 1536 }
 0xf90   :  { %p7272_p13 = scmp.ne.s32.totalorder %s8477_s13, %s7271_s11  ;;  %p7275_p0 = scmp.lt.u32.totalorder %s7271_s11, %s8477_s13 }
 0xf92   :  { %p7277_p1 = pnand %p7275_p0, %p7272_p13 }
 0xf94   :  { %7280 = shalt.err (!%p7277_p1)
}
 0xf95   :  { %5357 = dma.vmem_to_hbm [thread:$0]  %s5352_s4, 1536, %s8477_s13, [#allocation4], %s8470_s28, %s8470_s28, %s8469_s23  }
 0xf96   :  { %7305 = dma.done.wait [#allocation4], 1536  }
 0xf97   :  { %7306 = vsyncadd [#allocation4], 4294965760 }
 0xf98   :  { %5361 = vsyncpa [#allocation3], 1 }
 0xf99   :  { %5362 = vsyncpa [#allocation6], 1 }
 0xf9a   :  { %5363 = vsyncpa [#allocation9], 1 }
 0xf9b   :  { %5364 = vsyncpa [#allocation12], 1 }
 0xf9c   :  { %5365 = vsyncpa [#allocation15], 1 }
 0xf9d   :  { %5366 = vsyncpa [#allocation18], 1 }
 0xf9e   :  { %5367 = vsyncpa [#allocation21], 1 }
 0xf9f   :  { %5368 = vsyncpa [#allocation24], 1 }
 0xfa0   :  { %5369 = vsyncpa [#allocation27], 1 }
 0xfa1   :  { %5370 = vsyncpa [#allocation30], 1 }
 0xfa2   :  { %5371 = vsyncpa [#allocation33], 1 }
 0xfa3   :  { %5372 = vsyncpa [#allocation36], 1 }
 0xfa4   :  { %5373 = vsyncpa [#allocation4], 1 }

</bundles_post_ra>
